<compile_context>
chip_gen: v6e
topology: v6e:2x2x1
jax: 0.10.0
libtpu: 0.0.40
codegen_flags: <defaults>
</compile_context>

<pallas_src>
import functools

import jax
import jax.numpy as jnp
from jax.experimental import pallas as pl
from jax.experimental.pallas import tpu as pltpu

# ----------------------------- hyperparameters ------------------------------
NUM_CLASSES = 5
IMG = 32          # image spatial size (vit-base uses 224)
PS = 8            # patch size        (vit-base uses 16)
C = 3             # input channels
HID = 32          # hidden size       (vit-base uses 768)
NHEAD = 4
DHEAD = HID // NHEAD
NLAYER = 2        # encoder layers    (vit-base uses 12)
MLP = 4 * HID
NPATCH = (IMG // PS) ** 2          # 16
SEQ = NPATCH + 1                   # 17 = CLS + patches
SEQP = 24                          # sequence padded to a multiple of 8 sublanes
PATCH_DIM = C * PS * PS            # 192
LN_EPS = 1e-12                     # HF ViT layer_norm_eps
LOGIT_PAD = 128                    # lane-dense output width (sliced to NUM_CLASSES on host)
MAX_BB = 128                       # images per grid step (batch tile)


# ------------------------------ kernel helpers -------------------------------
def _layernorm(x, g, b):
    mu = jnp.mean(x, axis=-1, keepdims=True)
    var = jnp.mean((x - mu) ** 2, axis=-1, keepdims=True)
    return (x - mu) * jax.lax.rsqrt(var + LN_EPS) * g + b


def _gelu(x):
    # TODO(synk): HF ViT uses exact erf-based GELU; tanh approximation used here
    # to stay within guaranteed Mosaic transcendental lowering (exp/tanh).
    return 0.5 * x * (1.0 + jnp.tanh(0.7978845608028654 * (x + 0.044715 * x * x * x)))


# --------------------------------- kernel ------------------------------------
def vit_cls_kernel(patches_ref, pw_ref, pb_ref, cls_ref, pos_ref,
                   wqkv_ref, bqkv_ref, wo_ref, vec_ref,
                   w1_ref, b1_ref, w2_ref,
                   lnf_ref, wc_ref, bc_ref,
                   out_ref, x_sc, *, bb):
    flat = bb * SEQP

    # --- patch embedding (== Conv2d(C, HID, kernel=PS, stride=PS)), batch folded into M ---
    p = patches_ref[...].reshape(bb * NPATCH, PATCH_DIM)
    tok = jnp.dot(p, pw_ref[...], preferred_element_type=jnp.float32) + pb_ref[...]
    tok3 = tok.reshape(bb, NPATCH, HID)

    # --- assemble [CLS | patches | pad] directly in VMEM scratch (no concatenate) ---------
    x_sc[:, 0:1, :] = jnp.broadcast_to(cls_ref[...].reshape(1, 1, HID), (bb, 1, HID))
    x_sc[:, 1:SEQ, :] = tok3
    x_sc[:, SEQ:SEQP, :] = jnp.zeros((bb, SEQP - SEQ, HID), jnp.float32)
    x = x_sc[...] + pos_ref[...][None, :, :]                       # (BB, SEQP, HID)

    # additive mask so padded key positions never contribute to the softmax
    col = jax.lax.broadcasted_iota(jnp.int32, (1, 1, SEQP), 2)
    key_mask = jnp.where(col < SEQ, 0.0, -1e30).astype(jnp.float32)

    scale = 1.0 / (DHEAD ** 0.5)
    for l in range(NLAYER):
        vl = vec_ref[l]                                            # (6, HID): ln1_g, ln1_b, bo, ln2_g, ln2_b, b2

        # --- multi-head self-attention block (pre-LN), batched over BB images -------------
        h = _layernorm(x, vl[0:1, :], vl[1:2, :])
        hf = h.reshape(flat, HID)
        qkv = jnp.dot(hf, wqkv_ref[l], preferred_element_type=jnp.float32) + bqkv_ref[l]
        q = qkv[:, 0:HID].reshape(bb, SEQP, HID)
        k = qkv[:, HID:2 * HID].reshape(bb, SEQP, HID)
        v = qkv[:, 2 * HID:3 * HID].reshape(bb, SEQP, HID)

        heads = []
        for hh in range(NHEAD):
            sl = slice(hh * DHEAD, (hh + 1) * DHEAD)
            s = jnp.einsum('bqd,bkd->bqk', q[:, :, sl], k[:, :, sl],
                           preferred_element_type=jnp.float32) * scale
            s = s + key_mask
            s = s - jnp.max(s, axis=-1, keepdims=True)
            e = jnp.exp(s)
            attn = e * pl.reciprocal(jnp.sum(e, axis=-1, keepdims=True), approx=True)
            heads.append(jnp.einsum('bqk,bkd->bqd', attn, v[:, :, sl],
                                    preferred_element_type=jnp.float32))
        # single K=HID output projection (instead of NHEAD K=DHEAD projections)
        o = jnp.concatenate(heads, axis=-1).reshape(flat, HID)
        proj = jnp.dot(o, wo_ref[l], preferred_element_type=jnp.float32) + vl[2:3, :]
        x = x + proj.reshape(bb, SEQP, HID)

        # --- MLP block (pre-LN, GELU), batch folded into M ---------------------------------
        h2 = _layernorm(x, vl[3:4, :], vl[4:5, :])
        m = jnp.dot(h2.reshape(flat, HID), w1_ref[l],
                    preferred_element_type=jnp.float32) + b1_ref[l]
        m = _gelu(m)
        m = jnp.dot(m, w2_ref[l], preferred_element_type=jnp.float32) + vl[5:6, :]
        x = x + m.reshape(bb, SEQP, HID)

    # --- CLS pooling (masked sublane reduce), final LayerNorm, classifier -----------------
    row = jax.lax.broadcasted_iota(jnp.int32, (bb, SEQP, HID), 1)
    pooled = jnp.sum(jnp.where(row == 0, x, 0.0), axis=1)          # (BB, HID) = CLS tokens
    pooled = _layernorm(pooled, lnf_ref[0:1, :], lnf_ref[1:2, :])
    # dropout(p=0.1) is identity in eval mode
    logits = jnp.dot(pooled, wc_ref[...], preferred_element_type=jnp.float32) + bc_ref[...]
    out_ref[...] = logits.astype(out_ref.dtype)                    # (BB, LOGIT_PAD), lane-dense


# ------------------------------ host-side glue --------------------------------
def _rep_spec(shape):
    """Weight BlockSpec: full array, same block for every grid step."""
    nd = len(shape)
    return pl.BlockSpec(shape, lambda b, _nd=nd: (0,) * _nd)


def extract_patches(pixel_values):
    """NCHW image -> (B, NPATCH, C*PS*PS), matching Conv2d(kernel=PS, stride=PS)."""
    B = pixel_values.shape[0]
    g = IMG // PS
    x = pixel_values.reshape(B, C, g, PS, g, PS)
    x = x.transpose(0, 2, 4, 1, 3, 5)            # (B, gh, gw, C, ps, ps)
    return x.reshape(B, NPATCH, PATCH_DIM)


def init_params(key):
    ks = jax.random.split(key, 10)
    std = 0.02
    zeros = lambda *s: jnp.zeros(s, jnp.float32)
    ones = lambda *s: jnp.ones(s, jnp.float32)
    nrm = lambda k, *s: (std * jax.random.normal(k, s)).astype(jnp.float32)
    return dict(
        patch_w=nrm(ks[0], PATCH_DIM, HID), patch_b=zeros(1, HID),
        cls=nrm(ks[1], 1, HID), pos=nrm(ks[2], SEQ, HID),
        ln1_g=ones(NLAYER, 1, HID), ln1_b=zeros(NLAYER, 1, HID),
        wq=nrm(ks[3], NLAYER, HID, HID), bq=zeros(NLAYER, 1, HID),
        wk=nrm(ks[4], NLAYER, HID, HID), bk=zeros(NLAYER, 1, HID),
        wv=nrm(ks[5], NLAYER, HID, HID), bv=zeros(NLAYER, 1, HID),
        wo=nrm(ks[6], NLAYER, HID, HID), bo=zeros(NLAYER, 1, HID),
        ln2_g=ones(NLAYER, 1, HID), ln2_b=zeros(NLAYER, 1, HID),
        w1=nrm(ks[7], NLAYER, HID, MLP), b1=zeros(NLAYER, 1, MLP),
        w2=nrm(ks[8], NLAYER, MLP, HID), b2=zeros(NLAYER, 1, HID),
        lnf_g=ones(1, HID), lnf_b=zeros(1, HID),
        wc=nrm(ks[9], HID, NUM_CLASSES), bc=zeros(1, NUM_CLASSES),
    )


@jax.jit
def satellite_risk_forward(pixel_values, params):
    patches = extract_patches(pixel_values.astype(jnp.float32))    # (B, NPATCH, PATCH_DIM)
    B = patches.shape[0]
    BB = B if B <= MAX_BB else MAX_BB
    b_pad = ((B + BB - 1) // BB) * BB
    if b_pad != B:
        patches = jnp.pad(patches, ((0, b_pad - B), (0, 0), (0, 0)))

    # Pack the many tiny bias / LayerNorm vectors into a few slabs (fewer DMA descriptors),
    # fuse QKV weights, pad pos to SEQP and the classifier to 128 output lanes.
    pos_pad = jnp.pad(params["pos"], ((0, SEQP - SEQ), (0, 0)))
    wqkv = jnp.concatenate([params["wq"], params["wk"], params["wv"]], axis=-1)   # (L, HID, 3*HID)
    bqkv = jnp.concatenate([params["bq"], params["bk"], params["bv"]], axis=-1)   # (L, 1, 3*HID)
    vec_h = jnp.concatenate([params["ln1_g"], params["ln1_b"], params["bo"],
                             params["ln2_g"], params["ln2_b"], params["b2"]], axis=1)  # (L, 6, HID)
    lnf = jnp.concatenate([params["lnf_g"], params["lnf_b"]], axis=0)             # (2, HID)
    wc_pad = jnp.pad(params["wc"], ((0, 0), (0, LOGIT_PAD - NUM_CLASSES)))
    bc_pad = jnp.pad(params["bc"], ((0, 0), (0, LOGIT_PAD - NUM_CLASSES)))

    weights = [params["patch_w"], params["patch_b"], params["cls"], pos_pad,
               wqkv, bqkv, params["wo"], vec_h,
               params["w1"], params["b1"], params["w2"],
               lnf, wc_pad, bc_pad]

    in_specs = [pl.BlockSpec((BB, NPATCH, PATCH_DIM), lambda b: (b, 0, 0))]
    in_specs += [_rep_spec(w.shape) for w in weights]

    logits_pad = pl.pallas_call(
        functools.partial(vit_cls_kernel, bb=BB),
        out_shape=jax.ShapeDtypeStruct((b_pad, LOGIT_PAD), jnp.float32),
        grid=(b_pad // BB,),
        in_specs=in_specs,
        out_specs=pl.BlockSpec((BB, LOGIT_PAD), lambda b: (b, 0)),
        scratch_shapes=[pltpu.VMEM((BB, SEQP, HID), jnp.float32)],
        compiler_params=pltpu.CompilerParams(
            dimension_semantics=("parallel",),
            vmem_limit_bytes=48 * 1024 * 1024),
    )(patches, *weights)
    return logits_pad[:B, :NUM_CLASSES]


if __name__ == "__main__":
    key = jax.random.PRNGKey(0)
    k_img, k_par = jax.random.split(key)
    # pixel_values in NCHW, like the PyTorch module's forward()
    pixel_values = jax.random.normal(k_img, (2, C, IMG, IMG), dtype=jnp.float32)
    params = init_params(k_par)

    logits = satellite_risk_forward(pixel_values, params)
    jax.block_until_ready(logits)
    assert logits.shape == (2, NUM_CLASSES), logits.shape
    assert bool(jnp.all(jnp.isfinite(logits))), "non-finite logits"
    print("KERNEL_OK")
</pallas_src>

<mosaic_0001>
module attributes {stable_mosaic.version = 11 : i64} {
  func.func @vit_cls_kernel(%arg0: i32, %arg1: memref<2x16x192xf32, #tpu.memory_space<vmem>>, %arg2: memref<192x32xf32, #tpu.memory_space<vmem>>, %arg3: memref<1x32xf32, #tpu.memory_space<vmem>>, %arg4: memref<1x32xf32, #tpu.memory_space<vmem>>, %arg5: memref<24x32xf32, #tpu.memory_space<vmem>>, %arg6: memref<2x32x96xf32, #tpu.memory_space<vmem>>, %arg7: memref<2x1x96xf32, #tpu.memory_space<vmem>>, %arg8: memref<2x32x32xf32, #tpu.memory_space<vmem>>, %arg9: memref<2x6x32xf32, #tpu.memory_space<vmem>>, %arg10: memref<2x32x128xf32, #tpu.memory_space<vmem>>, %arg11: memref<2x1x128xf32, #tpu.memory_space<vmem>>, %arg12: memref<2x128x32xf32, #tpu.memory_space<vmem>>, %arg13: memref<2x32xf32, #tpu.memory_space<vmem>>, %arg14: memref<32x128xf32, #tpu.memory_space<vmem>>, %arg15: memref<1x128xf32, #tpu.memory_space<vmem>>, %arg16: memref<2x128xf32, #tpu.memory_space<vmem>>, %arg17: memref<2x24x32xf32, #tpu.memory_space<vmem>>) attributes {dimension_semantics = [#tpu.dimension_semantics<parallel>], iteration_bounds = array<i64: 1>, scalar_prefetch = 0 : i64, scratch_operands = 1 : i64, tpu.core_type = #tpu.core_type<tc>, window_params = [{transform_indices = @transform_0, window_bounds = array<i64: 2, 16, 192>}, {pipeline_mode = #tpu.pipeline_mode<synchronous>, transform_indices = @transform_1, window_bounds = array<i64: 192, 32>}, {pipeline_mode = #tpu.pipeline_mode<synchronous>, transform_indices = @transform_2, window_bounds = array<i64: 1, 32>}, {pipeline_mode = #tpu.pipeline_mode<synchronous>, transform_indices = @transform_3, window_bounds = array<i64: 1, 32>}, {pipeline_mode = #tpu.pipeline_mode<synchronous>, transform_indices = @transform_4, window_bounds = array<i64: 24, 32>}, {pipeline_mode = #tpu.pipeline_mode<synchronous>, transform_indices = @transform_5, window_bounds = array<i64: 2, 32, 96>}, {pipeline_mode = #tpu.pipeline_mode<synchronous>, transform_indices = @transform_6, window_bounds = array<i64: 2, 1, 96>}, {pipeline_mode = #tpu.pipeline_mode<synchronous>, transform_indices = @transform_7, window_bounds = array<i64: 2, 32, 32>}, {pipeline_mode = #tpu.pipeline_mode<synchronous>, transform_indices = @transform_8, window_bounds = array<i64: 2, 6, 32>}, {pipeline_mode = #tpu.pipeline_mode<synchronous>, transform_indices = @transform_9, window_bounds = array<i64: 2, 32, 128>}, {pipeline_mode = #tpu.pipeline_mode<synchronous>, transform_indices = @transform_10, window_bounds = array<i64: 2, 1, 128>}, {pipeline_mode = #tpu.pipeline_mode<synchronous>, transform_indices = @transform_11, window_bounds = array<i64: 2, 128, 32>}, {pipeline_mode = #tpu.pipeline_mode<synchronous>, transform_indices = @transform_12, window_bounds = array<i64: 2, 32>}, {pipeline_mode = #tpu.pipeline_mode<synchronous>, transform_indices = @transform_13, window_bounds = array<i64: 32, 128>}, {pipeline_mode = #tpu.pipeline_mode<synchronous>, transform_indices = @transform_14, window_bounds = array<i64: 1, 128>}, {transform_indices = @transform_15, window_bounds = array<i64: 2, 128>}]} {
    %c0 = arith.constant 0 : index
    %c0_0 = arith.constant 0 : index
    %c0_1 = arith.constant 0 : index
    %0 = vector.load %arg1[%c0, %c0_0, %c0_1] : memref<2x16x192xf32, #tpu.memory_space<vmem>>, vector<2x16x192xf32>
    %1 = vector.shape_cast %0 : vector<2x16x192xf32> to vector<32x192xf32>
    %c0_2 = arith.constant 0 : index
    %c0_3 = arith.constant 0 : index
    %2 = vector.load %arg2[%c0_2, %c0_3] : memref<192x32xf32, #tpu.memory_space<vmem>>, vector<192x32xf32>
    %cst = arith.constant dense<0.000000e+00> : vector<32x32xf32>
    %3 = tpu.matmul %1, %2, %cst {dimension_numbers = #tpu.dot_dimension_numbers<[1], [0], [0], [1], [0, 0, 1, 1], [], []>} : vector<32x192xf32>, vector<192x32xf32>, vector<32x32xf32> -> vector<32x32xf32>
    %c0_4 = arith.constant 0 : index
    %c0_5 = arith.constant 0 : index
    %4 = vector.load %arg3[%c0_4, %c0_5] : memref<1x32xf32, #tpu.memory_space<vmem>>, vector<1x32xf32>
    %5 = vector.broadcast %4 : vector<1x32xf32> to vector<32x32xf32>
    %6 = arith.addf %3, %5 : vector<32x32xf32>
    %7 = vector.shape_cast %6 : vector<32x32xf32> to vector<2x16x32xf32>
    %c0_6 = arith.constant 0 : index
    %c0_7 = arith.constant 0 : index
    %8 = vector.load %arg4[%c0_6, %c0_7] : memref<1x32xf32, #tpu.memory_space<vmem>>, vector<1x32xf32>
    %9 = vector.shape_cast %8 : vector<1x32xf32> to vector<1x1x32xf32>
    %10 = vector.shape_cast %9 : vector<1x1x32xf32> to vector<1x1x32xf32>
    %11 = vector.broadcast %10 : vector<1x1x32xf32> to vector<2x1x32xf32>
    %c0_8 = arith.constant 0 : index
    %c0_9 = arith.constant 0 : index
    %c0_10 = arith.constant 0 : index
    %12 = vector.load %arg17[%c0_8, %c0_9, %c0_10] : memref<2x24x32xf32, #tpu.memory_space<vmem>>, vector<2x1x32xf32>
    tpu.vector_store %arg17[%c0_8, %c0_9, %c0_10], %11 {strides = array<i32>} : memref<2x24x32xf32, #tpu.memory_space<vmem>>, vector<2x1x32xf32>,
    %c0_11 = arith.constant 0 : index
    %c1 = arith.constant 1 : index
    %c0_12 = arith.constant 0 : index
    %13 = vector.load %arg17[%c0_11, %c1, %c0_12] : memref<2x24x32xf32, #tpu.memory_space<vmem>>, vector<2x16x32xf32>
    tpu.vector_store %arg17[%c0_11, %c1, %c0_12], %7 {strides = array<i32>} : memref<2x24x32xf32, #tpu.memory_space<vmem>>, vector<2x16x32xf32>,
    %cst_13 = arith.constant 0.000000e+00 : f32
    %14 = vector.broadcast %cst_13 : f32 to vector<2x7x32xf32>
    %c0_14 = arith.constant 0 : index
    %c17 = arith.constant 17 : index
    %c0_15 = arith.constant 0 : index
    %15 = vector.load %arg17[%c0_14, %c17, %c0_15] : memref<2x24x32xf32, #tpu.memory_space<vmem>>, vector<2x7x32xf32>
    tpu.vector_store %arg17[%c0_14, %c17, %c0_15], %14 {strides = array<i32>} : memref<2x24x32xf32, #tpu.memory_space<vmem>>, vector<2x7x32xf32>,
    %c0_16 = arith.constant 0 : index
    %c0_17 = arith.constant 0 : index
    %c0_18 = arith.constant 0 : index
    %16 = vector.load %arg17[%c0_16, %c0_17, %c0_18] : memref<2x24x32xf32, #tpu.memory_space<vmem>>, vector<2x24x32xf32>
    %c0_19 = arith.constant 0 : index
    %c0_20 = arith.constant 0 : index
    %17 = vector.load %arg5[%c0_19, %c0_20] : memref<24x32xf32, #tpu.memory_space<vmem>>, vector<24x32xf32>
    %18 = vector.shape_cast %17 : vector<24x32xf32> to vector<1x24x32xf32>
    %19 = vector.broadcast %18 : vector<1x24x32xf32> to vector<2x24x32xf32>
    %20 = arith.addf %16, %19 : vector<2x24x32xf32>
    %21 = tpu.iota {dimensions = array<i32: 2>} : vector<1x1x24xi32>
    %c17_i32 = arith.constant 17 : i32
    %22 = vector.broadcast %c17_i32 : i32 to vector<1x1x24xi32>
    %23 = arith.cmpi slt, %21, %22 : vector<1x1x24xi32>
    %cst_21 = arith.constant 0.000000e+00 : f32
    %cst_22 = arith.constant -1.000000e+30 : f32
    %24 = vector.broadcast %cst_21 : f32 to vector<1x1x24xf32>
    %25 = vector.broadcast %cst_22 : f32 to vector<1x1x24xf32>
    %26 = arith.select %23, %24, %25 : vector<1x1x24xi1>, vector<1x1x24xf32>
    %c0_23 = arith.constant 0 : index
    %c0_24 = arith.constant 0 : index
    %c0_25 = arith.constant 0 : index
    %27 = vector.load %arg9[%c0_23, %c0_24, %c0_25] : memref<2x6x32xf32, #tpu.memory_space<vmem>>, vector<1x6x32xf32>
    %28 = vector.shape_cast %27 : vector<1x6x32xf32> to vector<6x32xf32>
    %29 = vector.extract_strided_slice %28 {offsets = [0, 0], sizes = [1, 32], strides = [1, 1]} : vector<6x32xf32> to vector<1x32xf32>
    %30 = vector.extract_strided_slice %28 {offsets = [1, 0], sizes = [1, 32], strides = [1, 1]} : vector<6x32xf32> to vector<1x32xf32>
    %cst_26 = arith.constant dense<0.000000e+00> : vector<2x24xf32>
    %31 = vector.multi_reduction <add>, %20, %cst_26 [2] : vector<2x24x32xf32> to vector<2x24xf32>
    %32 = vector.shape_cast %31 : vector<2x24xf32> to vector<2x24x1xf32>
    %cst_27 = arith.constant 3.200000e+01 : f32
    %33 = vector.broadcast %cst_27 : f32 to vector<2x24x1xf32>
    %34 = arith.divf %32, %33 : vector<2x24x1xf32>
    %35 = vector.broadcast %34 : vector<2x24x1xf32> to vector<2x24x32xf32>
    %36 = arith.subf %20, %35 : vector<2x24x32xf32>
    %37 = arith.mulf %36, %36 : vector<2x24x32xf32>
    %cst_28 = arith.constant dense<0.000000e+00> : vector<2x24xf32>
    %38 = vector.multi_reduction <add>, %37, %cst_28 [2] : vector<2x24x32xf32> to vector<2x24xf32>
    %39 = vector.shape_cast %38 : vector<2x24xf32> to vector<2x24x1xf32>
    %cst_29 = arith.constant 3.200000e+01 : f32
    %40 = vector.broadcast %cst_29 : f32 to vector<2x24x1xf32>
    %41 = arith.divf %39, %40 : vector<2x24x1xf32>
    %42 = vector.broadcast %34 : vector<2x24x1xf32> to vector<2x24x32xf32>
    %43 = arith.subf %20, %42 : vector<2x24x32xf32>
    %cst_30 = arith.constant 9.99999996E-13 : f32
    %44 = vector.broadcast %cst_30 : f32 to vector<2x24x1xf32>
    %45 = arith.addf %41, %44 : vector<2x24x1xf32>
    %46 = math.rsqrt %45 : vector<2x24x1xf32>
    %47 = vector.broadcast %46 : vector<2x24x1xf32> to vector<2x24x32xf32>
    %48 = arith.mulf %43, %47 : vector<2x24x32xf32>
    %49 = vector.shape_cast %29 : vector<1x32xf32> to vector<1x1x32xf32>
    %50 = vector.broadcast %49 : vector<1x1x32xf32> to vector<2x24x32xf32>
    %51 = arith.mulf %48, %50 : vector<2x24x32xf32>
    %52 = vector.shape_cast %30 : vector<1x32xf32> to vector<1x1x32xf32>
    %53 = vector.broadcast %52 : vector<1x1x32xf32> to vector<2x24x32xf32>
    %54 = arith.addf %51, %53 : vector<2x24x32xf32>
    %55 = vector.shape_cast %54 : vector<2x24x32xf32> to vector<48x32xf32>
    %c0_31 = arith.constant 0 : index
    %c0_32 = arith.constant 0 : index
    %c0_33 = arith.constant 0 : index
    %56 = vector.load %arg6[%c0_31, %c0_32, %c0_33] : memref<2x32x96xf32, #tpu.memory_space<vmem>>, vector<1x32x96xf32>
    %57 = vector.shape_cast %56 : vector<1x32x96xf32> to vector<32x96xf32>
    %cst_34 = arith.constant dense<0.000000e+00> : vector<48x96xf32>
    %58 = tpu.matmul %55, %57, %cst_34 {dimension_numbers = #tpu.dot_dimension_numbers<[1], [0], [0], [1], [0, 0, 1, 1], [], []>} : vector<48x32xf32>, vector<32x96xf32>, vector<48x96xf32> -> vector<48x96xf32>
    %c0_35 = arith.constant 0 : index
    %c0_36 = arith.constant 0 : index
    %c0_37 = arith.constant 0 : index
    %59 = vector.load %arg7[%c0_35, %c0_36, %c0_37] : memref<2x1x96xf32, #tpu.memory_space<vmem>>, vector<1x1x96xf32>
    %60 = vector.shape_cast %59 : vector<1x1x96xf32> to vector<1x96xf32>
    %61 = vector.broadcast %60 : vector<1x96xf32> to vector<48x96xf32>
    %62 = arith.addf %58, %61 : vector<48x96xf32>
    %63 = vector.extract_strided_slice %62 {offsets = [0, 0], sizes = [48, 32], strides = [1, 1]} : vector<48x96xf32> to vector<48x32xf32>
    %64 = vector.shape_cast %63 : vector<48x32xf32> to vector<2x24x32xf32>
    %65 = vector.extract_strided_slice %62 {offsets = [0, 32], sizes = [48, 32], strides = [1, 1]} : vector<48x96xf32> to vector<48x32xf32>
    %66 = vector.shape_cast %65 : vector<48x32xf32> to vector<2x24x32xf32>
    %67 = vector.extract_strided_slice %62 {offsets = [0, 64], sizes = [48, 32], strides = [1, 1]} : vector<48x96xf32> to vector<48x32xf32>
    %68 = vector.shape_cast %67 : vector<48x32xf32> to vector<2x24x32xf32>
    %69 = vector.extract_strided_slice %64 {offsets = [0, 0, 0], sizes = [2, 24, 8], strides = [1, 1, 1]} : vector<2x24x32xf32> to vector<2x24x8xf32>
    %70 = vector.extract_strided_slice %66 {offsets = [0, 0, 0], sizes = [2, 24, 8], strides = [1, 1, 1]} : vector<2x24x32xf32> to vector<2x24x8xf32>
    "tpu.trace_start"() <{level = 10 : i32, message = "bqd,bkd->bqk"}> : () -> ()
    %cst_38 = arith.constant dense<0.000000e+00> : vector<2x24x24xf32>
    %71 = tpu.matmul %69, %70, %cst_38 {dimension_numbers = #tpu.dot_dimension_numbers<[2], [2], [1], [1], [0, 0, 0, 1, 1, 1], [0], [0]>} : vector<2x24x8xf32>, vector<2x24x8xf32>, vector<2x24x24xf32> -> vector<2x24x24xf32>
    "tpu.trace_stop"() : () -> ()
    %cst_39 = arith.constant 0.353553385 : f32
    %72 = vector.broadcast %cst_39 : f32 to vector<2x24x24xf32>
    %73 = arith.mulf %71, %72 : vector<2x24x24xf32>
    %74 = vector.broadcast %26 : vector<1x1x24xf32> to vector<2x24x24xf32>
    %75 = arith.addf %73, %74 : vector<2x24x24xf32>
    %cst_40 = arith.constant dense<0xFF800000> : vector<2x24xf32>
    %76 = vector.multi_reduction <maximumf>, %75, %cst_40 [2] : vector<2x24x24xf32> to vector<2x24xf32>
    %77 = vector.shape_cast %76 : vector<2x24xf32> to vector<2x24x1xf32>
    %78 = vector.broadcast %77 : vector<2x24x1xf32> to vector<2x24x24xf32>
    %79 = arith.subf %75, %78 : vector<2x24x24xf32>
    %80 = math.exp %79 : vector<2x24x24xf32>
    %cst_41 = arith.constant dense<0.000000e+00> : vector<2x24xf32>
    %81 = vector.multi_reduction <add>, %80, %cst_41 [2] : vector<2x24x24xf32> to vector<2x24xf32>
    %82 = vector.shape_cast %81 : vector<2x24xf32> to vector<2x24x1xf32>
    %83 = tpu.reciprocal %82 {approx = true} : vector<2x24x1xf32> -> vector<2x24x1xf32>
    %84 = vector.broadcast %83 : vector<2x24x1xf32> to vector<2x24x24xf32>
    %85 = arith.mulf %80, %84 : vector<2x24x24xf32>
    %86 = vector.extract_strided_slice %68 {offsets = [0, 0, 0], sizes = [2, 24, 8], strides = [1, 1, 1]} : vector<2x24x32xf32> to vector<2x24x8xf32>
    "tpu.trace_start"() <{level = 10 : i32, message = "bqk,bkd->bqd"}> : () -> ()
    %cst_42 = arith.constant dense<0.000000e+00> : vector<2x24x8xf32>
    %87 = tpu.matmul %85, %86, %cst_42 {dimension_numbers = #tpu.dot_dimension_numbers<[2], [1], [1], [2], [0, 0, 0, 1, 1, 2], [0], [0]>} : vector<2x24x24xf32>, vector<2x24x8xf32>, vector<2x24x8xf32> -> vector<2x24x8xf32>
    "tpu.trace_stop"() : () -> ()
    %88 = vector.extract_strided_slice %64 {offsets = [0, 0, 8], sizes = [2, 24, 8], strides = [1, 1, 1]} : vector<2x24x32xf32> to vector<2x24x8xf32>
    %89 = vector.extract_strided_slice %66 {offsets = [0, 0, 8], sizes = [2, 24, 8], strides = [1, 1, 1]} : vector<2x24x32xf32> to vector<2x24x8xf32>
    "tpu.trace_start"() <{level = 10 : i32, message = "bqd,bkd->bqk"}> : () -> ()
    %cst_43 = arith.constant dense<0.000000e+00> : vector<2x24x24xf32>
    %90 = tpu.matmul %88, %89, %cst_43 {dimension_numbers = #tpu.dot_dimension_numbers<[2], [2], [1], [1], [0, 0, 0, 1, 1, 1], [0], [0]>} : vector<2x24x8xf32>, vector<2x24x8xf32>, vector<2x24x24xf32> -> vector<2x24x24xf32>
    "tpu.trace_stop"() : () -> ()
    %cst_44 = arith.constant 0.353553385 : f32
    %91 = vector.broadcast %cst_44 : f32 to vector<2x24x24xf32>
    %92 = arith.mulf %90, %91 : vector<2x24x24xf32>
    %93 = vector.broadcast %26 : vector<1x1x24xf32> to vector<2x24x24xf32>
    %94 = arith.addf %92, %93 : vector<2x24x24xf32>
    %cst_45 = arith.constant dense<0xFF800000> : vector<2x24xf32>
    %95 = vector.multi_reduction <maximumf>, %94, %cst_45 [2] : vector<2x24x24xf32> to vector<2x24xf32>
    %96 = vector.shape_cast %95 : vector<2x24xf32> to vector<2x24x1xf32>
    %97 = vector.broadcast %96 : vector<2x24x1xf32> to vector<2x24x24xf32>
    %98 = arith.subf %94, %97 : vector<2x24x24xf32>
    %99 = math.exp %98 : vector<2x24x24xf32>
    %cst_46 = arith.constant dense<0.000000e+00> : vector<2x24xf32>
    %100 = vector.multi_reduction <add>, %99, %cst_46 [2] : vector<2x24x24xf32> to vector<2x24xf32>
    %101 = vector.shape_cast %100 : vector<2x24xf32> to vector<2x24x1xf32>
    %102 = tpu.reciprocal %101 {approx = true} : vector<2x24x1xf32> -> vector<2x24x1xf32>
    %103 = vector.broadcast %102 : vector<2x24x1xf32> to vector<2x24x24xf32>
    %104 = arith.mulf %99, %103 : vector<2x24x24xf32>
    %105 = vector.extract_strided_slice %68 {offsets = [0, 0, 8], sizes = [2, 24, 8], strides = [1, 1, 1]} : vector<2x24x32xf32> to vector<2x24x8xf32>
    "tpu.trace_start"() <{level = 10 : i32, message = "bqk,bkd->bqd"}> : () -> ()
    %cst_47 = arith.constant dense<0.000000e+00> : vector<2x24x8xf32>
    %106 = tpu.matmul %104, %105, %cst_47 {dimension_numbers = #tpu.dot_dimension_numbers<[2], [1], [1], [2], [0, 0, 0, 1, 1, 2], [0], [0]>} : vector<2x24x24xf32>, vector<2x24x8xf32>, vector<2x24x8xf32> -> vector<2x24x8xf32>
    "tpu.trace_stop"() : () -> ()
    %107 = vector.extract_strided_slice %64 {offsets = [0, 0, 16], sizes = [2, 24, 8], strides = [1, 1, 1]} : vector<2x24x32xf32> to vector<2x24x8xf32>
    %108 = vector.extract_strided_slice %66 {offsets = [0, 0, 16], sizes = [2, 24, 8], strides = [1, 1, 1]} : vector<2x24x32xf32> to vector<2x24x8xf32>
    "tpu.trace_start"() <{level = 10 : i32, message = "bqd,bkd->bqk"}> : () -> ()
    %cst_48 = arith.constant dense<0.000000e+00> : vector<2x24x24xf32>
    %109 = tpu.matmul %107, %108, %cst_48 {dimension_numbers = #tpu.dot_dimension_numbers<[2], [2], [1], [1], [0, 0, 0, 1, 1, 1], [0], [0]>} : vector<2x24x8xf32>, vector<2x24x8xf32>, vector<2x24x24xf32> -> vector<2x24x24xf32>
    "tpu.trace_stop"() : () -> ()
    %cst_49 = arith.constant 0.353553385 : f32
    %110 = vector.broadcast %cst_49 : f32 to vector<2x24x24xf32>
    %111 = arith.mulf %109, %110 : vector<2x24x24xf32>
    %112 = vector.broadcast %26 : vector<1x1x24xf32> to vector<2x24x24xf32>
    %113 = arith.addf %111, %112 : vector<2x24x24xf32>
    %cst_50 = arith.constant dense<0xFF800000> : vector<2x24xf32>
    %114 = vector.multi_reduction <maximumf>, %113, %cst_50 [2] : vector<2x24x24xf32> to vector<2x24xf32>
    %115 = vector.shape_cast %114 : vector<2x24xf32> to vector<2x24x1xf32>
    %116 = vector.broadcast %115 : vector<2x24x1xf32> to vector<2x24x24xf32>
    %117 = arith.subf %113, %116 : vector<2x24x24xf32>
    %118 = math.exp %117 : vector<2x24x24xf32>
    %cst_51 = arith.constant dense<0.000000e+00> : vector<2x24xf32>
    %119 = vector.multi_reduction <add>, %118, %cst_51 [2] : vector<2x24x24xf32> to vector<2x24xf32>
    %120 = vector.shape_cast %119 : vector<2x24xf32> to vector<2x24x1xf32>
    %121 = tpu.reciprocal %120 {approx = true} : vector<2x24x1xf32> -> vector<2x24x1xf32>
    %122 = vector.broadcast %121 : vector<2x24x1xf32> to vector<2x24x24xf32>
    %123 = arith.mulf %118, %122 : vector<2x24x24xf32>
    %124 = vector.extract_strided_slice %68 {offsets = [0, 0, 16], sizes = [2, 24, 8], strides = [1, 1, 1]} : vector<2x24x32xf32> to vector<2x24x8xf32>
    "tpu.trace_start"() <{level = 10 : i32, message = "bqk,bkd->bqd"}> : () -> ()
    %cst_52 = arith.constant dense<0.000000e+00> : vector<2x24x8xf32>
    %125 = tpu.matmul %123, %124, %cst_52 {dimension_numbers = #tpu.dot_dimension_numbers<[2], [1], [1], [2], [0, 0, 0, 1, 1, 2], [0], [0]>} : vector<2x24x24xf32>, vector<2x24x8xf32>, vector<2x24x8xf32> -> vector<2x24x8xf32>
    "tpu.trace_stop"() : () -> ()
    %126 = vector.extract_strided_slice %64 {offsets = [0, 0, 24], sizes = [2, 24, 8], strides = [1, 1, 1]} : vector<2x24x32xf32> to vector<2x24x8xf32>
    %127 = vector.extract_strided_slice %66 {offsets = [0, 0, 24], sizes = [2, 24, 8], strides = [1, 1, 1]} : vector<2x24x32xf32> to vector<2x24x8xf32>
    "tpu.trace_start"() <{level = 10 : i32, message = "bqd,bkd->bqk"}> : () -> ()
    %cst_53 = arith.constant dense<0.000000e+00> : vector<2x24x24xf32>
    %128 = tpu.matmul %126, %127, %cst_53 {dimension_numbers = #tpu.dot_dimension_numbers<[2], [2], [1], [1], [0, 0, 0, 1, 1, 1], [0], [0]>} : vector<2x24x8xf32>, vector<2x24x8xf32>, vector<2x24x24xf32> -> vector<2x24x24xf32>
    "tpu.trace_stop"() : () -> ()
    %cst_54 = arith.constant 0.353553385 : f32
    %129 = vector.broadcast %cst_54 : f32 to vector<2x24x24xf32>
    %130 = arith.mulf %128, %129 : vector<2x24x24xf32>
    %131 = vector.broadcast %26 : vector<1x1x24xf32> to vector<2x24x24xf32>
    %132 = arith.addf %130, %131 : vector<2x24x24xf32>
    %cst_55 = arith.constant dense<0xFF800000> : vector<2x24xf32>
    %133 = vector.multi_reduction <maximumf>, %132, %cst_55 [2] : vector<2x24x24xf32> to vector<2x24xf32>
    %134 = vector.shape_cast %133 : vector<2x24xf32> to vector<2x24x1xf32>
    %135 = vector.broadcast %134 : vector<2x24x1xf32> to vector<2x24x24xf32>
    %136 = arith.subf %132, %135 : vector<2x24x24xf32>
    %137 = math.exp %136 : vector<2x24x24xf32>
    %cst_56 = arith.constant dense<0.000000e+00> : vector<2x24xf32>
    %138 = vector.multi_reduction <add>, %137, %cst_56 [2] : vector<2x24x24xf32> to vector<2x24xf32>
    %139 = vector.shape_cast %138 : vector<2x24xf32> to vector<2x24x1xf32>
    %140 = tpu.reciprocal %139 {approx = true} : vector<2x24x1xf32> -> vector<2x24x1xf32>
    %141 = vector.broadcast %140 : vector<2x24x1xf32> to vector<2x24x24xf32>
    %142 = arith.mulf %137, %141 : vector<2x24x24xf32>
    %143 = vector.extract_strided_slice %68 {offsets = [0, 0, 24], sizes = [2, 24, 8], strides = [1, 1, 1]} : vector<2x24x32xf32> to vector<2x24x8xf32>
    "tpu.trace_start"() <{level = 10 : i32, message = "bqk,bkd->bqd"}> : () -> ()
    %cst_57 = arith.constant dense<0.000000e+00> : vector<2x24x8xf32>
    %144 = tpu.matmul %142, %143, %cst_57 {dimension_numbers = #tpu.dot_dimension_numbers<[2], [1], [1], [2], [0, 0, 0, 1, 1, 2], [0], [0]>} : vector<2x24x24xf32>, vector<2x24x8xf32>, vector<2x24x8xf32> -> vector<2x24x8xf32>
    "tpu.trace_stop"() : () -> ()
    %145 = tpu.concatenate %87, %106, %125, %144 in 2 : vector<2x24x8xf32>, vector<2x24x8xf32>, vector<2x24x8xf32>, vector<2x24x8xf32> -> vector<2x24x32xf32>
    %146 = vector.shape_cast %145 : vector<2x24x32xf32> to vector<48x32xf32>
    %c0_58 = arith.constant 0 : index
    %c0_59 = arith.constant 0 : index
    %c0_60 = arith.constant 0 : index
    %147 = vector.load %arg8[%c0_58, %c0_59, %c0_60] : memref<2x32x32xf32, #tpu.memory_space<vmem>>, vector<1x32x32xf32>
    %148 = vector.shape_cast %147 : vector<1x32x32xf32> to vector<32x32xf32>
    %cst_61 = arith.constant dense<0.000000e+00> : vector<48x32xf32>
    %149 = tpu.matmul %146, %148, %cst_61 {dimension_numbers = #tpu.dot_dimension_numbers<[1], [0], [0], [1], [0, 0, 1, 1], [], []>} : vector<48x32xf32>, vector<32x32xf32>, vector<48x32xf32> -> vector<48x32xf32>
    %150 = vector.extract_strided_slice %28 {offsets = [2, 0], sizes = [1, 32], strides = [1, 1]} : vector<6x32xf32> to vector<1x32xf32>
    %151 = vector.broadcast %150 : vector<1x32xf32> to vector<48x32xf32>
    %152 = arith.addf %149, %151 : vector<48x32xf32>
    %153 = vector.shape_cast %152 : vector<48x32xf32> to vector<2x24x32xf32>
    %154 = arith.addf %20, %153 : vector<2x24x32xf32>
    %155 = vector.extract_strided_slice %28 {offsets = [3, 0], sizes = [1, 32], strides = [1, 1]} : vector<6x32xf32> to vector<1x32xf32>
    %156 = vector.extract_strided_slice %28 {offsets = [4, 0], sizes = [1, 32], strides = [1, 1]} : vector<6x32xf32> to vector<1x32xf32>
    %cst_62 = arith.constant dense<0.000000e+00> : vector<2x24xf32>
    %157 = vector.multi_reduction <add>, %154, %cst_62 [2] : vector<2x24x32xf32> to vector<2x24xf32>
    %158 = vector.shape_cast %157 : vector<2x24xf32> to vector<2x24x1xf32>
    %cst_63 = arith.constant 3.200000e+01 : f32
    %159 = vector.broadcast %cst_63 : f32 to vector<2x24x1xf32>
    %160 = arith.divf %158, %159 : vector<2x24x1xf32>
    %161 = vector.broadcast %160 : vector<2x24x1xf32> to vector<2x24x32xf32>
    %162 = arith.subf %154, %161 : vector<2x24x32xf32>
    %163 = arith.mulf %162, %162 : vector<2x24x32xf32>
    %cst_64 = arith.constant dense<0.000000e+00> : vector<2x24xf32>
    %164 = vector.multi_reduction <add>, %163, %cst_64 [2] : vector<2x24x32xf32> to vector<2x24xf32>
    %165 = vector.shape_cast %164 : vector<2x24xf32> to vector<2x24x1xf32>
    %cst_65 = arith.constant 3.200000e+01 : f32
    %166 = vector.broadcast %cst_65 : f32 to vector<2x24x1xf32>
    %167 = arith.divf %165, %166 : vector<2x24x1xf32>
    %168 = vector.broadcast %160 : vector<2x24x1xf32> to vector<2x24x32xf32>
    %169 = arith.subf %154, %168 : vector<2x24x32xf32>
    %cst_66 = arith.constant 9.99999996E-13 : f32
    %170 = vector.broadcast %cst_66 : f32 to vector<2x24x1xf32>
    %171 = arith.addf %167, %170 : vector<2x24x1xf32>
    %172 = math.rsqrt %171 : vector<2x24x1xf32>
    %173 = vector.broadcast %172 : vector<2x24x1xf32> to vector<2x24x32xf32>
    %174 = arith.mulf %169, %173 : vector<2x24x32xf32>
    %175 = vector.shape_cast %155 : vector<1x32xf32> to vector<1x1x32xf32>
    %176 = vector.broadcast %175 : vector<1x1x32xf32> to vector<2x24x32xf32>
    %177 = arith.mulf %174, %176 : vector<2x24x32xf32>
    %178 = vector.shape_cast %156 : vector<1x32xf32> to vector<1x1x32xf32>
    %179 = vector.broadcast %178 : vector<1x1x32xf32> to vector<2x24x32xf32>
    %180 = arith.addf %177, %179 : vector<2x24x32xf32>
    %181 = vector.shape_cast %180 : vector<2x24x32xf32> to vector<48x32xf32>
    %c0_67 = arith.constant 0 : index
    %c0_68 = arith.constant 0 : index
    %c0_69 = arith.constant 0 : index
    %182 = vector.load %arg10[%c0_67, %c0_68, %c0_69] : memref<2x32x128xf32, #tpu.memory_space<vmem>>, vector<1x32x128xf32>
    %183 = vector.shape_cast %182 : vector<1x32x128xf32> to vector<32x128xf32>
    %cst_70 = arith.constant dense<0.000000e+00> : vector<48x128xf32>
    %184 = tpu.matmul %181, %183, %cst_70 {dimension_numbers = #tpu.dot_dimension_numbers<[1], [0], [0], [1], [0, 0, 1, 1], [], []>} : vector<48x32xf32>, vector<32x128xf32>, vector<48x128xf32> -> vector<48x128xf32>
    %c0_71 = arith.constant 0 : index
    %c0_72 = arith.constant 0 : index
    %c0_73 = arith.constant 0 : index
    %185 = vector.load %arg11[%c0_71, %c0_72, %c0_73] : memref<2x1x128xf32, #tpu.memory_space<vmem>>, vector<1x1x128xf32>
    %186 = vector.shape_cast %185 : vector<1x1x128xf32> to vector<1x128xf32>
    %187 = vector.broadcast %186 : vector<1x128xf32> to vector<48x128xf32>
    %188 = arith.addf %184, %187 : vector<48x128xf32>
    %cst_74 = arith.constant 5.000000e-01 : f32
    %189 = vector.broadcast %cst_74 : f32 to vector<48x128xf32>
    %190 = arith.mulf %189, %188 : vector<48x128xf32>
    %cst_75 = arith.constant 4.471500e-02 : f32
    %191 = vector.broadcast %cst_75 : f32 to vector<48x128xf32>
    %192 = arith.mulf %191, %188 : vector<48x128xf32>
    %193 = arith.mulf %192, %188 : vector<48x128xf32>
    %194 = arith.mulf %193, %188 : vector<48x128xf32>
    %195 = arith.addf %188, %194 : vector<48x128xf32>
    %cst_76 = arith.constant 0.797884583 : f32
    %196 = vector.broadcast %cst_76 : f32 to vector<48x128xf32>
    %197 = arith.mulf %196, %195 : vector<48x128xf32>
    %198 = math.tanh %197 : vector<48x128xf32>
    %cst_77 = arith.constant 1.000000e+00 : f32
    %199 = vector.broadcast %cst_77 : f32 to vector<48x128xf32>
    %200 = arith.addf %199, %198 : vector<48x128xf32>
    %201 = arith.mulf %190, %200 : vector<48x128xf32>
    %c0_78 = arith.constant 0 : index
    %c0_79 = arith.constant 0 : index
    %c0_80 = arith.constant 0 : index
    %202 = vector.load %arg12[%c0_78, %c0_79, %c0_80] : memref<2x128x32xf32, #tpu.memory_space<vmem>>, vector<1x128x32xf32>
    %203 = vector.shape_cast %202 : vector<1x128x32xf32> to vector<128x32xf32>
    %cst_81 = arith.constant dense<0.000000e+00> : vector<48x32xf32>
    %204 = tpu.matmul %201, %203, %cst_81 {dimension_numbers = #tpu.dot_dimension_numbers<[1], [0], [0], [1], [0, 0, 1, 1], [], []>} : vector<48x128xf32>, vector<128x32xf32>, vector<48x32xf32> -> vector<48x32xf32>
    %205 = vector.extract_strided_slice %28 {offsets = [5, 0], sizes = [1, 32], strides = [1, 1]} : vector<6x32xf32> to vector<1x32xf32>
    %206 = vector.broadcast %205 : vector<1x32xf32> to vector<48x32xf32>
    %207 = arith.addf %204, %206 : vector<48x32xf32>
    %208 = vector.shape_cast %207 : vector<48x32xf32> to vector<2x24x32xf32>
    %209 = arith.addf %154, %208 : vector<2x24x32xf32>
    %c1_82 = arith.constant 1 : index
    %c0_83 = arith.constant 0 : index
    %c0_84 = arith.constant 0 : index
    %210 = vector.load %arg9[%c1_82, %c0_83, %c0_84] : memref<2x6x32xf32, #tpu.memory_space<vmem>>, vector<1x6x32xf32>
    %211 = vector.shape_cast %210 : vector<1x6x32xf32> to vector<6x32xf32>
    %212 = vector.extract_strided_slice %211 {offsets = [0, 0], sizes = [1, 32], strides = [1, 1]} : vector<6x32xf32> to vector<1x32xf32>
    %213 = vector.extract_strided_slice %211 {offsets = [1, 0], sizes = [1, 32], strides = [1, 1]} : vector<6x32xf32> to vector<1x32xf32>
    %cst_85 = arith.constant dense<0.000000e+00> : vector<2x24xf32>
    %214 = vector.multi_reduction <add>, %209, %cst_85 [2] : vector<2x24x32xf32> to vector<2x24xf32>
    %215 = vector.shape_cast %214 : vector<2x24xf32> to vector<2x24x1xf32>
    %cst_86 = arith.constant 3.200000e+01 : f32
    %216 = vector.broadcast %cst_86 : f32 to vector<2x24x1xf32>
    %217 = arith.divf %215, %216 : vector<2x24x1xf32>
    %218 = vector.broadcast %217 : vector<2x24x1xf32> to vector<2x24x32xf32>
    %219 = arith.subf %209, %218 : vector<2x24x32xf32>
    %220 = arith.mulf %219, %219 : vector<2x24x32xf32>
    %cst_87 = arith.constant dense<0.000000e+00> : vector<2x24xf32>
    %221 = vector.multi_reduction <add>, %220, %cst_87 [2] : vector<2x24x32xf32> to vector<2x24xf32>
    %222 = vector.shape_cast %221 : vector<2x24xf32> to vector<2x24x1xf32>
    %cst_88 = arith.constant 3.200000e+01 : f32
    %223 = vector.broadcast %cst_88 : f32 to vector<2x24x1xf32>
    %224 = arith.divf %222, %223 : vector<2x24x1xf32>
    %225 = vector.broadcast %217 : vector<2x24x1xf32> to vector<2x24x32xf32>
    %226 = arith.subf %209, %225 : vector<2x24x32xf32>
    %cst_89 = arith.constant 9.99999996E-13 : f32
    %227 = vector.broadcast %cst_89 : f32 to vector<2x24x1xf32>
    %228 = arith.addf %224, %227 : vector<2x24x1xf32>
    %229 = math.rsqrt %228 : vector<2x24x1xf32>
    %230 = vector.broadcast %229 : vector<2x24x1xf32> to vector<2x24x32xf32>
    %231 = arith.mulf %226, %230 : vector<2x24x32xf32>
    %232 = vector.shape_cast %212 : vector<1x32xf32> to vector<1x1x32xf32>
    %233 = vector.broadcast %232 : vector<1x1x32xf32> to vector<2x24x32xf32>
    %234 = arith.mulf %231, %233 : vector<2x24x32xf32>
    %235 = vector.shape_cast %213 : vector<1x32xf32> to vector<1x1x32xf32>
    %236 = vector.broadcast %235 : vector<1x1x32xf32> to vector<2x24x32xf32>
    %237 = arith.addf %234, %236 : vector<2x24x32xf32>
    %238 = vector.shape_cast %237 : vector<2x24x32xf32> to vector<48x32xf32>
    %c1_90 = arith.constant 1 : index
    %c0_91 = arith.constant 0 : index
    %c0_92 = arith.constant 0 : index
    %239 = vector.load %arg6[%c1_90, %c0_91, %c0_92] : memref<2x32x96xf32, #tpu.memory_space<vmem>>, vector<1x32x96xf32>
    %240 = vector.shape_cast %239 : vector<1x32x96xf32> to vector<32x96xf32>
    %cst_93 = arith.constant dense<0.000000e+00> : vector<48x96xf32>
    %241 = tpu.matmul %238, %240, %cst_93 {dimension_numbers = #tpu.dot_dimension_numbers<[1], [0], [0], [1], [0, 0, 1, 1], [], []>} : vector<48x32xf32>, vector<32x96xf32>, vector<48x96xf32> -> vector<48x96xf32>
    %c1_94 = arith.constant 1 : index
    %c0_95 = arith.constant 0 : index
    %c0_96 = arith.constant 0 : index
    %242 = vector.load %arg7[%c1_94, %c0_95, %c0_96] : memref<2x1x96xf32, #tpu.memory_space<vmem>>, vector<1x1x96xf32>
    %243 = vector.shape_cast %242 : vector<1x1x96xf32> to vector<1x96xf32>
    %244 = vector.broadcast %243 : vector<1x96xf32> to vector<48x96xf32>
    %245 = arith.addf %241, %244 : vector<48x96xf32>
    %246 = vector.extract_strided_slice %245 {offsets = [0, 0], sizes = [48, 32], strides = [1, 1]} : vector<48x96xf32> to vector<48x32xf32>
    %247 = vector.shape_cast %246 : vector<48x32xf32> to vector<2x24x32xf32>
    %248 = vector.extract_strided_slice %245 {offsets = [0, 32], sizes = [48, 32], strides = [1, 1]} : vector<48x96xf32> to vector<48x32xf32>
    %249 = vector.shape_cast %248 : vector<48x32xf32> to vector<2x24x32xf32>
    %250 = vector.extract_strided_slice %245 {offsets = [0, 64], sizes = [48, 32], strides = [1, 1]} : vector<48x96xf32> to vector<48x32xf32>
    %251 = vector.shape_cast %250 : vector<48x32xf32> to vector<2x24x32xf32>
    %252 = vector.extract_strided_slice %247 {offsets = [0, 0, 0], sizes = [2, 24, 8], strides = [1, 1, 1]} : vector<2x24x32xf32> to vector<2x24x8xf32>
    %253 = vector.extract_strided_slice %249 {offsets = [0, 0, 0], sizes = [2, 24, 8], strides = [1, 1, 1]} : vector<2x24x32xf32> to vector<2x24x8xf32>
    "tpu.trace_start"() <{level = 10 : i32, message = "bqd,bkd->bqk"}> : () -> ()
    %cst_97 = arith.constant dense<0.000000e+00> : vector<2x24x24xf32>
    %254 = tpu.matmul %252, %253, %cst_97 {dimension_numbers = #tpu.dot_dimension_numbers<[2], [2], [1], [1], [0, 0, 0, 1, 1, 1], [0], [0]>} : vector<2x24x8xf32>, vector<2x24x8xf32>, vector<2x24x24xf32> -> vector<2x24x24xf32>
    "tpu.trace_stop"() : () -> ()
    %cst_98 = arith.constant 0.353553385 : f32
    %255 = vector.broadcast %cst_98 : f32 to vector<2x24x24xf32>
    %256 = arith.mulf %254, %255 : vector<2x24x24xf32>
    %257 = vector.broadcast %26 : vector<1x1x24xf32> to vector<2x24x24xf32>
    %258 = arith.addf %256, %257 : vector<2x24x24xf32>
    %cst_99 = arith.constant dense<0xFF800000> : vector<2x24xf32>
    %259 = vector.multi_reduction <maximumf>, %258, %cst_99 [2] : vector<2x24x24xf32> to vector<2x24xf32>
    %260 = vector.shape_cast %259 : vector<2x24xf32> to vector<2x24x1xf32>
    %261 = vector.broadcast %260 : vector<2x24x1xf32> to vector<2x24x24xf32>
    %262 = arith.subf %258, %261 : vector<2x24x24xf32>
    %263 = math.exp %262 : vector<2x24x24xf32>
    %cst_100 = arith.constant dense<0.000000e+00> : vector<2x24xf32>
    %264 = vector.multi_reduction <add>, %263, %cst_100 [2] : vector<2x24x24xf32> to vector<2x24xf32>
    %265 = vector.shape_cast %264 : vector<2x24xf32> to vector<2x24x1xf32>
    %266 = tpu.reciprocal %265 {approx = true} : vector<2x24x1xf32> -> vector<2x24x1xf32>
    %267 = vector.broadcast %266 : vector<2x24x1xf32> to vector<2x24x24xf32>
    %268 = arith.mulf %263, %267 : vector<2x24x24xf32>
    %269 = vector.extract_strided_slice %251 {offsets = [0, 0, 0], sizes = [2, 24, 8], strides = [1, 1, 1]} : vector<2x24x32xf32> to vector<2x24x8xf32>
    "tpu.trace_start"() <{level = 10 : i32, message = "bqk,bkd->bqd"}> : () -> ()
    %cst_101 = arith.constant dense<0.000000e+00> : vector<2x24x8xf32>
    %270 = tpu.matmul %268, %269, %cst_101 {dimension_numbers = #tpu.dot_dimension_numbers<[2], [1], [1], [2], [0, 0, 0, 1, 1, 2], [0], [0]>} : vector<2x24x24xf32>, vector<2x24x8xf32>, vector<2x24x8xf32> -> vector<2x24x8xf32>
    "tpu.trace_stop"() : () -> ()
    %271 = vector.extract_strided_slice %247 {offsets = [0, 0, 8], sizes = [2, 24, 8], strides = [1, 1, 1]} : vector<2x24x32xf32> to vector<2x24x8xf32>
    %272 = vector.extract_strided_slice %249 {offsets = [0, 0, 8], sizes = [2, 24, 8], strides = [1, 1, 1]} : vector<2x24x32xf32> to vector<2x24x8xf32>
    "tpu.trace_start"() <{level = 10 : i32, message = "bqd,bkd->bqk"}> : () -> ()
    %cst_102 = arith.constant dense<0.000000e+00> : vector<2x24x24xf32>
    %273 = tpu.matmul %271, %272, %cst_102 {dimension_numbers = #tpu.dot_dimension_numbers<[2], [2], [1], [1], [0, 0, 0, 1, 1, 1], [0], [0]>} : vector<2x24x8xf32>, vector<2x24x8xf32>, vector<2x24x24xf32> -> vector<2x24x24xf32>
    "tpu.trace_stop"() : () -> ()
    %cst_103 = arith.constant 0.353553385 : f32
    %274 = vector.broadcast %cst_103 : f32 to vector<2x24x24xf32>
    %275 = arith.mulf %273, %274 : vector<2x24x24xf32>
    %276 = vector.broadcast %26 : vector<1x1x24xf32> to vector<2x24x24xf32>
    %277 = arith.addf %275, %276 : vector<2x24x24xf32>
    %cst_104 = arith.constant dense<0xFF800000> : vector<2x24xf32>
    %278 = vector.multi_reduction <maximumf>, %277, %cst_104 [2] : vector<2x24x24xf32> to vector<2x24xf32>
    %279 = vector.shape_cast %278 : vector<2x24xf32> to vector<2x24x1xf32>
    %280 = vector.broadcast %279 : vector<2x24x1xf32> to vector<2x24x24xf32>
    %281 = arith.subf %277, %280 : vector<2x24x24xf32>
    %282 = math.exp %281 : vector<2x24x24xf32>
    %cst_105 = arith.constant dense<0.000000e+00> : vector<2x24xf32>
    %283 = vector.multi_reduction <add>, %282, %cst_105 [2] : vector<2x24x24xf32> to vector<2x24xf32>
    %284 = vector.shape_cast %283 : vector<2x24xf32> to vector<2x24x1xf32>
    %285 = tpu.reciprocal %284 {approx = true} : vector<2x24x1xf32> -> vector<2x24x1xf32>
    %286 = vector.broadcast %285 : vector<2x24x1xf32> to vector<2x24x24xf32>
    %287 = arith.mulf %282, %286 : vector<2x24x24xf32>
    %288 = vector.extract_strided_slice %251 {offsets = [0, 0, 8], sizes = [2, 24, 8], strides = [1, 1, 1]} : vector<2x24x32xf32> to vector<2x24x8xf32>
    "tpu.trace_start"() <{level = 10 : i32, message = "bqk,bkd->bqd"}> : () -> ()
    %cst_106 = arith.constant dense<0.000000e+00> : vector<2x24x8xf32>
    %289 = tpu.matmul %287, %288, %cst_106 {dimension_numbers = #tpu.dot_dimension_numbers<[2], [1], [1], [2], [0, 0, 0, 1, 1, 2], [0], [0]>} : vector<2x24x24xf32>, vector<2x24x8xf32>, vector<2x24x8xf32> -> vector<2x24x8xf32>
    "tpu.trace_stop"() : () -> ()
    %290 = vector.extract_strided_slice %247 {offsets = [0, 0, 16], sizes = [2, 24, 8], strides = [1, 1, 1]} : vector<2x24x32xf32> to vector<2x24x8xf32>
    %291 = vector.extract_strided_slice %249 {offsets = [0, 0, 16], sizes = [2, 24, 8], strides = [1, 1, 1]} : vector<2x24x32xf32> to vector<2x24x8xf32>
    "tpu.trace_start"() <{level = 10 : i32, message = "bqd,bkd->bqk"}> : () -> ()
    %cst_107 = arith.constant dense<0.000000e+00> : vector<2x24x24xf32>
    %292 = tpu.matmul %290, %291, %cst_107 {dimension_numbers = #tpu.dot_dimension_numbers<[2], [2], [1], [1], [0, 0, 0, 1, 1, 1], [0], [0]>} : vector<2x24x8xf32>, vector<2x24x8xf32>, vector<2x24x24xf32> -> vector<2x24x24xf32>
    "tpu.trace_stop"() : () -> ()
    %cst_108 = arith.constant 0.353553385 : f32
    %293 = vector.broadcast %cst_108 : f32 to vector<2x24x24xf32>
    %294 = arith.mulf %292, %293 : vector<2x24x24xf32>
    %295 = vector.broadcast %26 : vector<1x1x24xf32> to vector<2x24x24xf32>
    %296 = arith.addf %294, %295 : vector<2x24x24xf32>
    %cst_109 = arith.constant dense<0xFF800000> : vector<2x24xf32>
    %297 = vector.multi_reduction <maximumf>, %296, %cst_109 [2] : vector<2x24x24xf32> to vector<2x24xf32>
    %298 = vector.shape_cast %297 : vector<2x24xf32> to vector<2x24x1xf32>
    %299 = vector.broadcast %298 : vector<2x24x1xf32> to vector<2x24x24xf32>
    %300 = arith.subf %296, %299 : vector<2x24x24xf32>
    %301 = math.exp %300 : vector<2x24x24xf32>
    %cst_110 = arith.constant dense<0.000000e+00> : vector<2x24xf32>
    %302 = vector.multi_reduction <add>, %301, %cst_110 [2] : vector<2x24x24xf32> to vector<2x24xf32>
    %303 = vector.shape_cast %302 : vector<2x24xf32> to vector<2x24x1xf32>
    %304 = tpu.reciprocal %303 {approx = true} : vector<2x24x1xf32> -> vector<2x24x1xf32>
    %305 = vector.broadcast %304 : vector<2x24x1xf32> to vector<2x24x24xf32>
    %306 = arith.mulf %301, %305 : vector<2x24x24xf32>
    %307 = vector.extract_strided_slice %251 {offsets = [0, 0, 16], sizes = [2, 24, 8], strides = [1, 1, 1]} : vector<2x24x32xf32> to vector<2x24x8xf32>
    "tpu.trace_start"() <{level = 10 : i32, message = "bqk,bkd->bqd"}> : () -> ()
    %cst_111 = arith.constant dense<0.000000e+00> : vector<2x24x8xf32>
    %308 = tpu.matmul %306, %307, %cst_111 {dimension_numbers = #tpu.dot_dimension_numbers<[2], [1], [1], [2], [0, 0, 0, 1, 1, 2], [0], [0]>} : vector<2x24x24xf32>, vector<2x24x8xf32>, vector<2x24x8xf32> -> vector<2x24x8xf32>
    "tpu.trace_stop"() : () -> ()
    %309 = vector.extract_strided_slice %247 {offsets = [0, 0, 24], sizes = [2, 24, 8], strides = [1, 1, 1]} : vector<2x24x32xf32> to vector<2x24x8xf32>
    %310 = vector.extract_strided_slice %249 {offsets = [0, 0, 24], sizes = [2, 24, 8], strides = [1, 1, 1]} : vector<2x24x32xf32> to vector<2x24x8xf32>
    "tpu.trace_start"() <{level = 10 : i32, message = "bqd,bkd->bqk"}> : () -> ()
    %cst_112 = arith.constant dense<0.000000e+00> : vector<2x24x24xf32>
    %311 = tpu.matmul %309, %310, %cst_112 {dimension_numbers = #tpu.dot_dimension_numbers<[2], [2], [1], [1], [0, 0, 0, 1, 1, 1], [0], [0]>} : vector<2x24x8xf32>, vector<2x24x8xf32>, vector<2x24x24xf32> -> vector<2x24x24xf32>
    "tpu.trace_stop"() : () -> ()
    %cst_113 = arith.constant 0.353553385 : f32
    %312 = vector.broadcast %cst_113 : f32 to vector<2x24x24xf32>
    %313 = arith.mulf %311, %312 : vector<2x24x24xf32>
    %314 = vector.broadcast %26 : vector<1x1x24xf32> to vector<2x24x24xf32>
    %315 = arith.addf %313, %314 : vector<2x24x24xf32>
    %cst_114 = arith.constant dense<0xFF800000> : vector<2x24xf32>
    %316 = vector.multi_reduction <maximumf>, %315, %cst_114 [2] : vector<2x24x24xf32> to vector<2x24xf32>
    %317 = vector.shape_cast %316 : vector<2x24xf32> to vector<2x24x1xf32>
    %318 = vector.broadcast %317 : vector<2x24x1xf32> to vector<2x24x24xf32>
    %319 = arith.subf %315, %318 : vector<2x24x24xf32>
    %320 = math.exp %319 : vector<2x24x24xf32>
    %cst_115 = arith.constant dense<0.000000e+00> : vector<2x24xf32>
    %321 = vector.multi_reduction <add>, %320, %cst_115 [2] : vector<2x24x24xf32> to vector<2x24xf32>
    %322 = vector.shape_cast %321 : vector<2x24xf32> to vector<2x24x1xf32>
    %323 = tpu.reciprocal %322 {approx = true} : vector<2x24x1xf32> -> vector<2x24x1xf32>
    %324 = vector.broadcast %323 : vector<2x24x1xf32> to vector<2x24x24xf32>
    %325 = arith.mulf %320, %324 : vector<2x24x24xf32>
    %326 = vector.extract_strided_slice %251 {offsets = [0, 0, 24], sizes = [2, 24, 8], strides = [1, 1, 1]} : vector<2x24x32xf32> to vector<2x24x8xf32>
    "tpu.trace_start"() <{level = 10 : i32, message = "bqk,bkd->bqd"}> : () -> ()
    %cst_116 = arith.constant dense<0.000000e+00> : vector<2x24x8xf32>
    %327 = tpu.matmul %325, %326, %cst_116 {dimension_numbers = #tpu.dot_dimension_numbers<[2], [1], [1], [2], [0, 0, 0, 1, 1, 2], [0], [0]>} : vector<2x24x24xf32>, vector<2x24x8xf32>, vector<2x24x8xf32> -> vector<2x24x8xf32>
    "tpu.trace_stop"() : () -> ()
    %328 = tpu.concatenate %270, %289, %308, %327 in 2 : vector<2x24x8xf32>, vector<2x24x8xf32>, vector<2x24x8xf32>, vector<2x24x8xf32> -> vector<2x24x32xf32>
    %329 = vector.shape_cast %328 : vector<2x24x32xf32> to vector<48x32xf32>
    %c1_117 = arith.constant 1 : index
    %c0_118 = arith.constant 0 : index
    %c0_119 = arith.constant 0 : index
    %330 = vector.load %arg8[%c1_117, %c0_118, %c0_119] : memref<2x32x32xf32, #tpu.memory_space<vmem>>, vector<1x32x32xf32>
    %331 = vector.shape_cast %330 : vector<1x32x32xf32> to vector<32x32xf32>
    %cst_120 = arith.constant dense<0.000000e+00> : vector<48x32xf32>
    %332 = tpu.matmul %329, %331, %cst_120 {dimension_numbers = #tpu.dot_dimension_numbers<[1], [0], [0], [1], [0, 0, 1, 1], [], []>} : vector<48x32xf32>, vector<32x32xf32>, vector<48x32xf32> -> vector<48x32xf32>
    %333 = vector.extract_strided_slice %211 {offsets = [2, 0], sizes = [1, 32], strides = [1, 1]} : vector<6x32xf32> to vector<1x32xf32>
    %334 = vector.broadcast %333 : vector<1x32xf32> to vector<48x32xf32>
    %335 = arith.addf %332, %334 : vector<48x32xf32>
    %336 = vector.shape_cast %335 : vector<48x32xf32> to vector<2x24x32xf32>
    %337 = arith.addf %209, %336 : vector<2x24x32xf32>
    %338 = vector.extract_strided_slice %211 {offsets = [3, 0], sizes = [1, 32], strides = [1, 1]} : vector<6x32xf32> to vector<1x32xf32>
    %339 = vector.extract_strided_slice %211 {offsets = [4, 0], sizes = [1, 32], strides = [1, 1]} : vector<6x32xf32> to vector<1x32xf32>
    %cst_121 = arith.constant dense<0.000000e+00> : vector<2x24xf32>
    %340 = vector.multi_reduction <add>, %337, %cst_121 [2] : vector<2x24x32xf32> to vector<2x24xf32>
    %341 = vector.shape_cast %340 : vector<2x24xf32> to vector<2x24x1xf32>
    %cst_122 = arith.constant 3.200000e+01 : f32
    %342 = vector.broadcast %cst_122 : f32 to vector<2x24x1xf32>
    %343 = arith.divf %341, %342 : vector<2x24x1xf32>
    %344 = vector.broadcast %343 : vector<2x24x1xf32> to vector<2x24x32xf32>
    %345 = arith.subf %337, %344 : vector<2x24x32xf32>
    %346 = arith.mulf %345, %345 : vector<2x24x32xf32>
    %cst_123 = arith.constant dense<0.000000e+00> : vector<2x24xf32>
    %347 = vector.multi_reduction <add>, %346, %cst_123 [2] : vector<2x24x32xf32> to vector<2x24xf32>
    %348 = vector.shape_cast %347 : vector<2x24xf32> to vector<2x24x1xf32>
    %cst_124 = arith.constant 3.200000e+01 : f32
    %349 = vector.broadcast %cst_124 : f32 to vector<2x24x1xf32>
    %350 = arith.divf %348, %349 : vector<2x24x1xf32>
    %351 = vector.broadcast %343 : vector<2x24x1xf32> to vector<2x24x32xf32>
    %352 = arith.subf %337, %351 : vector<2x24x32xf32>
    %cst_125 = arith.constant 9.99999996E-13 : f32
    %353 = vector.broadcast %cst_125 : f32 to vector<2x24x1xf32>
    %354 = arith.addf %350, %353 : vector<2x24x1xf32>
    %355 = math.rsqrt %354 : vector<2x24x1xf32>
    %356 = vector.broadcast %355 : vector<2x24x1xf32> to vector<2x24x32xf32>
    %357 = arith.mulf %352, %356 : vector<2x24x32xf32>
    %358 = vector.shape_cast %338 : vector<1x32xf32> to vector<1x1x32xf32>
    %359 = vector.broadcast %358 : vector<1x1x32xf32> to vector<2x24x32xf32>
    %360 = arith.mulf %357, %359 : vector<2x24x32xf32>
    %361 = vector.shape_cast %339 : vector<1x32xf32> to vector<1x1x32xf32>
    %362 = vector.broadcast %361 : vector<1x1x32xf32> to vector<2x24x32xf32>
    %363 = arith.addf %360, %362 : vector<2x24x32xf32>
    %364 = vector.shape_cast %363 : vector<2x24x32xf32> to vector<48x32xf32>
    %c1_126 = arith.constant 1 : index
    %c0_127 = arith.constant 0 : index
    %c0_128 = arith.constant 0 : index
    %365 = vector.load %arg10[%c1_126, %c0_127, %c0_128] : memref<2x32x128xf32, #tpu.memory_space<vmem>>, vector<1x32x128xf32>
    %366 = vector.shape_cast %365 : vector<1x32x128xf32> to vector<32x128xf32>
    %cst_129 = arith.constant dense<0.000000e+00> : vector<48x128xf32>
    %367 = tpu.matmul %364, %366, %cst_129 {dimension_numbers = #tpu.dot_dimension_numbers<[1], [0], [0], [1], [0, 0, 1, 1], [], []>} : vector<48x32xf32>, vector<32x128xf32>, vector<48x128xf32> -> vector<48x128xf32>
    %c1_130 = arith.constant 1 : index
    %c0_131 = arith.constant 0 : index
    %c0_132 = arith.constant 0 : index
    %368 = vector.load %arg11[%c1_130, %c0_131, %c0_132] : memref<2x1x128xf32, #tpu.memory_space<vmem>>, vector<1x1x128xf32>
    %369 = vector.shape_cast %368 : vector<1x1x128xf32> to vector<1x128xf32>
    %370 = vector.broadcast %369 : vector<1x128xf32> to vector<48x128xf32>
    %371 = arith.addf %367, %370 : vector<48x128xf32>
    %cst_133 = arith.constant 5.000000e-01 : f32
    %372 = vector.broadcast %cst_133 : f32 to vector<48x128xf32>
    %373 = arith.mulf %372, %371 : vector<48x128xf32>
    %cst_134 = arith.constant 4.471500e-02 : f32
    %374 = vector.broadcast %cst_134 : f32 to vector<48x128xf32>
    %375 = arith.mulf %374, %371 : vector<48x128xf32>
    %376 = arith.mulf %375, %371 : vector<48x128xf32>
    %377 = arith.mulf %376, %371 : vector<48x128xf32>
    %378 = arith.addf %371, %377 : vector<48x128xf32>
    %cst_135 = arith.constant 0.797884583 : f32
    %379 = vector.broadcast %cst_135 : f32 to vector<48x128xf32>
    %380 = arith.mulf %379, %378 : vector<48x128xf32>
    %381 = math.tanh %380 : vector<48x128xf32>
    %cst_136 = arith.constant 1.000000e+00 : f32
    %382 = vector.broadcast %cst_136 : f32 to vector<48x128xf32>
    %383 = arith.addf %382, %381 : vector<48x128xf32>
    %384 = arith.mulf %373, %383 : vector<48x128xf32>
    %c1_137 = arith.constant 1 : index
    %c0_138 = arith.constant 0 : index
    %c0_139 = arith.constant 0 : index
    %385 = vector.load %arg12[%c1_137, %c0_138, %c0_139] : memref<2x128x32xf32, #tpu.memory_space<vmem>>, vector<1x128x32xf32>
    %386 = vector.shape_cast %385 : vector<1x128x32xf32> to vector<128x32xf32>
    %cst_140 = arith.constant dense<0.000000e+00> : vector<48x32xf32>
    %387 = tpu.matmul %384, %386, %cst_140 {dimension_numbers = #tpu.dot_dimension_numbers<[1], [0], [0], [1], [0, 0, 1, 1], [], []>} : vector<48x128xf32>, vector<128x32xf32>, vector<48x32xf32> -> vector<48x32xf32>
    %388 = vector.extract_strided_slice %211 {offsets = [5, 0], sizes = [1, 32], strides = [1, 1]} : vector<6x32xf32> to vector<1x32xf32>
    %389 = vector.broadcast %388 : vector<1x32xf32> to vector<48x32xf32>
    %390 = arith.addf %387, %389 : vector<48x32xf32>
    %391 = vector.shape_cast %390 : vector<48x32xf32> to vector<2x24x32xf32>
    %392 = arith.addf %337, %391 : vector<2x24x32xf32>
    %393 = tpu.iota {dimensions = array<i32: 1>} : vector<2x24x32xi32>
    %c0_i32 = arith.constant 0 : i32
    %394 = vector.broadcast %c0_i32 : i32 to vector<2x24x32xi32>
    %395 = arith.cmpi eq, %393, %394 : vector<2x24x32xi32>
    %cst_141 = arith.constant 0.000000e+00 : f32
    %396 = vector.broadcast %cst_141 : f32 to vector<2x24x32xf32>
    %397 = arith.select %395, %392, %396 : vector<2x24x32xi1>, vector<2x24x32xf32>
    %cst_142 = arith.constant dense<0.000000e+00> : vector<2x32xf32>
    %398 = vector.multi_reduction <add>, %397, %cst_142 [1] : vector<2x24x32xf32> to vector<2x32xf32>
    %c0_143 = arith.constant 0 : index
    %c0_144 = arith.constant 0 : index
    %399 = vector.load %arg13[%c0_143, %c0_144] : memref<2x32xf32, #tpu.memory_space<vmem>>, vector<1x32xf32>
    %c1_145 = arith.constant 1 : index
    %c0_146 = arith.constant 0 : index
    %400 = vector.load %arg13[%c1_145, %c0_146] : memref<2x32xf32, #tpu.memory_space<vmem>>, vector<1x32xf32>
    %cst_147 = arith.constant dense<0.000000e+00> : vector<2xf32>
    %401 = vector.multi_reduction <add>, %398, %cst_147 [1] : vector<2x32xf32> to vector<2xf32>
    %402 = vector.shape_cast %401 : vector<2xf32> to vector<2x1xf32>
    %cst_148 = arith.constant 3.200000e+01 : f32
    %403 = vector.broadcast %cst_148 : f32 to vector<2x1xf32>
    %404 = arith.divf %402, %403 : vector<2x1xf32>
    %405 = vector.broadcast %404 : vector<2x1xf32> to vector<2x32xf32>
    %406 = arith.subf %398, %405 : vector<2x32xf32>
    %407 = arith.mulf %406, %406 : vector<2x32xf32>
    %cst_149 = arith.constant dense<0.000000e+00> : vector<2xf32>
    %408 = vector.multi_reduction <add>, %407, %cst_149 [1] : vector<2x32xf32> to vector<2xf32>
    %409 = vector.shape_cast %408 : vector<2xf32> to vector<2x1xf32>
    %cst_150 = arith.constant 3.200000e+01 : f32
    %410 = vector.broadcast %cst_150 : f32 to vector<2x1xf32>
    %411 = arith.divf %409, %410 : vector<2x1xf32>
    %412 = vector.broadcast %404 : vector<2x1xf32> to vector<2x32xf32>
    %413 = arith.subf %398, %412 : vector<2x32xf32>
    %cst_151 = arith.constant 9.99999996E-13 : f32
    %414 = vector.broadcast %cst_151 : f32 to vector<2x1xf32>
    %415 = arith.addf %411, %414 : vector<2x1xf32>
    %416 = math.rsqrt %415 : vector<2x1xf32>
    %417 = vector.broadcast %416 : vector<2x1xf32> to vector<2x32xf32>
    %418 = arith.mulf %413, %417 : vector<2x32xf32>
    %419 = vector.broadcast %399 : vector<1x32xf32> to vector<2x32xf32>
    %420 = arith.mulf %418, %419 : vector<2x32xf32>
    %421 = vector.broadcast %400 : vector<1x32xf32> to vector<2x32xf32>
    %422 = arith.addf %420, %421 : vector<2x32xf32>
    %c0_152 = arith.constant 0 : index
    %c0_153 = arith.constant 0 : index
    %423 = vector.load %arg14[%c0_152, %c0_153] : memref<32x128xf32, #tpu.memory_space<vmem>>, vector<32x128xf32>
    %cst_154 = arith.constant dense<0.000000e+00> : vector<2x128xf32>
    %424 = tpu.matmul %422, %423, %cst_154 {dimension_numbers = #tpu.dot_dimension_numbers<[1], [0], [0], [1], [0, 0, 1, 1], [], []>} : vector<2x32xf32>, vector<32x128xf32>, vector<2x128xf32> -> vector<2x128xf32>
    %c0_155 = arith.constant 0 : index
    %c0_156 = arith.constant 0 : index
    %425 = vector.load %arg15[%c0_155, %c0_156] : memref<1x128xf32, #tpu.memory_space<vmem>>, vector<1x128xf32>
    %426 = vector.broadcast %425 : vector<1x128xf32> to vector<2x128xf32>
    %427 = arith.addf %424, %426 : vector<2x128xf32>
    %c0_157 = arith.constant 0 : index
    %c0_158 = arith.constant 0 : index
    %428 = vector.load %arg16[%c0_157, %c0_158] : memref<2x128xf32, #tpu.memory_space<vmem>>, vector<2x128xf32>
    tpu.vector_store %arg16[%c0_157, %c0_158], %427 {strides = array<i32>} : memref<2x128xf32, #tpu.memory_space<vmem>>, vector<2x128xf32>,
    return
  }
  func.func @transform_0(%arg0: i32) -> (i32, i32, i32) {
    %c0_i32 = arith.constant 0 : i32
    %c0_i32_0 = arith.constant 0 : i32
    %c0_i32_1 = arith.constant 0 : i32
    return %arg0, %c0_i32, %c0_i32_0 : i32, i32, i32
  }
  func.func @transform_1(%arg0: i32) -> (i32, i32) {
    %c0_i32 = arith.constant 0 : i32
    %c0_i32_0 = arith.constant 0 : i32
    %c0_i32_1 = arith.constant 0 : i32
    return %c0_i32, %c0_i32_0 : i32, i32
  }
  func.func @transform_2(%arg0: i32) -> (i32, i32) {
    %c0_i32 = arith.constant 0 : i32
    %c0_i32_0 = arith.constant 0 : i32
    %c0_i32_1 = arith.constant 0 : i32
    return %c0_i32, %c0_i32_0 : i32, i32
  }
  func.func @transform_3(%arg0: i32) -> (i32, i32) {
    %c0_i32 = arith.constant 0 : i32
    %c0_i32_0 = arith.constant 0 : i32
    %c0_i32_1 = arith.constant 0 : i32
    return %c0_i32, %c0_i32_0 : i32, i32
  }
  func.func @transform_4(%arg0: i32) -> (i32, i32) {
    %c0_i32 = arith.constant 0 : i32
    %c0_i32_0 = arith.constant 0 : i32
    %c0_i32_1 = arith.constant 0 : i32
    return %c0_i32, %c0_i32_0 : i32, i32
  }
  func.func @transform_5(%arg0: i32) -> (i32, i32, i32) {
    %c0_i32 = arith.constant 0 : i32
    %c0_i32_0 = arith.constant 0 : i32
    %c0_i32_1 = arith.constant 0 : i32
    %c0_i32_2 = arith.constant 0 : i32
    return %c0_i32, %c0_i32_0, %c0_i32_1 : i32, i32, i32
  }
  func.func @transform_6(%arg0: i32) -> (i32, i32, i32) {
    %c0_i32 = arith.constant 0 : i32
    %c0_i32_0 = arith.constant 0 : i32
    %c0_i32_1 = arith.constant 0 : i32
    %c0_i32_2 = arith.constant 0 : i32
    return %c0_i32, %c0_i32_0, %c0_i32_1 : i32, i32, i32
  }
  func.func @transform_7(%arg0: i32) -> (i32, i32, i32) {
    %c0_i32 = arith.constant 0 : i32
    %c0_i32_0 = arith.constant 0 : i32
    %c0_i32_1 = arith.constant 0 : i32
    %c0_i32_2 = arith.constant 0 : i32
    return %c0_i32, %c0_i32_0, %c0_i32_1 : i32, i32, i32
  }
  func.func @transform_8(%arg0: i32) -> (i32, i32, i32) {
    %c0_i32 = arith.constant 0 : i32
    %c0_i32_0 = arith.constant 0 : i32
    %c0_i32_1 = arith.constant 0 : i32
    %c0_i32_2 = arith.constant 0 : i32
    return %c0_i32, %c0_i32_0, %c0_i32_1 : i32, i32, i32
  }
  func.func @transform_9(%arg0: i32) -> (i32, i32, i32) {
    %c0_i32 = arith.constant 0 : i32
    %c0_i32_0 = arith.constant 0 : i32
    %c0_i32_1 = arith.constant 0 : i32
    %c0_i32_2 = arith.constant 0 : i32
    return %c0_i32, %c0_i32_0, %c0_i32_1 : i32, i32, i32
  }
  func.func @transform_10(%arg0: i32) -> (i32, i32, i32) {
    %c0_i32 = arith.constant 0 : i32
    %c0_i32_0 = arith.constant 0 : i32
    %c0_i32_1 = arith.constant 0 : i32
    %c0_i32_2 = arith.constant 0 : i32
    return %c0_i32, %c0_i32_0, %c0_i32_1 : i32, i32, i32
  }
  func.func @transform_11(%arg0: i32) -> (i32, i32, i32) {
    %c0_i32 = arith.constant 0 : i32
    %c0_i32_0 = arith.constant 0 : i32
    %c0_i32_1 = arith.constant 0 : i32
    %c0_i32_2 = arith.constant 0 : i32
    return %c0_i32, %c0_i32_0, %c0_i32_1 : i32, i32, i32
  }
  func.func @transform_12(%arg0: i32) -> (i32, i32) {
    %c0_i32 = arith.constant 0 : i32
    %c0_i32_0 = arith.constant 0 : i32
    %c0_i32_1 = arith.constant 0 : i32
    return %c0_i32, %c0_i32_0 : i32, i32
  }
  func.func @transform_13(%arg0: i32) -> (i32, i32) {
    %c0_i32 = arith.constant 0 : i32
    %c0_i32_0 = arith.constant 0 : i32
    %c0_i32_1 = arith.constant 0 : i32
    return %c0_i32, %c0_i32_0 : i32, i32
  }
  func.func @transform_14(%arg0: i32) -> (i32, i32) {
    %c0_i32 = arith.constant 0 : i32
    %c0_i32_0 = arith.constant 0 : i32
    %c0_i32_1 = arith.constant 0 : i32
    return %c0_i32, %c0_i32_0 : i32, i32
  }
  func.func @transform_15(%arg0: i32) -> (i32, i32) {
    %c0_i32 = arith.constant 0 : i32
    %c0_i32_0 = arith.constant 0 : i32
    return %arg0, %c0_i32 : i32, i32
  }
}

</mosaic_0001>

<bundles_post_ra>
// kernel: satellite_risk_forward.1
= control target key start
LH: loop header
LB: loop body
LE: loop exit
PB: predicated region body
PF: predicated region fallthrough
CT: control target
= control target key end

     0   :  { %v7442_v1 = vmov 0.0   ;;  %vm90_vm0 = vcmask 523264   ;;  %s9385_s0 = inlined_call_operand.vmem [shape: f32[2,16,192], index: 0, kind: input, shape index: {}]   ;;  %s9386_s1 = inlined_call_operand.vmem [shape: f32[192,32], index: 1, kind: input, shape index: {}]   ;;  %s9387_s2 = inlined_call_operand.vmem [shape: f32[1,32], index: 2, kind: input, shape index: {}]   ;;  %s9388_s3 = inlined_call_operand.vmem [shape: f32[1,32], index: 3, kind: input, shape index: {}]   ;;  %s9389_s4 = inlined_call_operand.vmem [shape: f32[24,32], index: 4, kind: input, shape index: {}]   ;;  %s9390_s5 = inlined_call_operand.vmem [shape: f32[2,32,96], index: 5, kind: input, shape index: {}]   ;;  %s9391_s6 = inlined_call_operand.vmem [shape: f32[2,1,96], index: 6, kind: input, shape index: {}]   ;;  %s9392_s7 = inlined_call_operand.vmem [shape: f32[2,32,32], index: 7, kind: input, shape index: {}]   ;;  %s9393_s8 = inlined_call_operand.vmem [shape: f32[2,6,32], index: 8, kind: input, shape index: {}]   ;;  %s9394_s9 = inlined_call_operand.vmem [shape: f32[2,32,128], index: 9, kind: input, shape index: {}]   ;;  %s9395_s10 = inlined_call_operand.vmem [shape: f32[2,1,128], index: 10, kind: input, shape index: {}]   ;;  %s9396_s11 = inlined_call_operand.vmem [shape: f32[2,128,32], index: 11, kind: input, shape index: {}]   ;;  %s9397_s12 = inlined_call_operand.vmem [shape: f32[2,32], index: 12, kind: input, shape index: {}]   ;;  %s9398_s13 = inlined_call_operand.vmem [shape: f32[32,128], index: 13, kind: input, shape index: {}]   ;;  %s9399_s14 = inlined_call_operand.vmem [shape: f32[1,128], index: 14, kind: input, shape index: {}]   ;;  %s9400_s15 = inlined_call_operand.hbm [shape: f32[2,128], index: 15, kind: output, shape index: {}]  }
   0x1   :  { %v74_v0 = vld [vmem:[%s9386_s1 + $0x78] sm:$0xff]  ;;  %103 = vmatprep.subr.mxu0 %v7442_v1  ;;  %v73_v2 = vld [vmem:[%s9386_s1 + $0x70] sm:$0xff]  ;;  %v72_v3 = vld [vmem:[%s9386_s1 + $0x68] sm:$0xff] }
   0x2   :  { %104 = vmatpush1.msra.mxu0 %v74_v0  ;;  %v71_v4 = vld [vmem:[%s9386_s1 + $0x60] sm:$0xff]  ;;  %v70_v5 = vld [vmem:[%s9386_s1 + $0x58] sm:$0xff]  ;;  %v52_v6 = vld [vmem:[%s9385_s0 + $0x8] sm:$0xff] }
   0x3   :  { %105 = vmatprep.subr.mxu0 %v7442_v1  ;;  %v69_v7 = vld [vmem:[%s9386_s1 + $0x50] sm:$0xff]  ;;  %5935 = vmatprep.mubr.msk.f32.mxu0 %vm90_vm0, %v52_v6  ;;  %v68_v8 = vld [vmem:[%s9386_s1 + $0x48] sm:$0xff] }
   0x4   :  { %106 = vmatpush1.msra.mxu0 %v73_v2 }
   0x5   :  { %107 = vmatprep.subr.mxu0 %v7442_v1 }
   0x6   :  { %108 = vmatpush1.msra.mxu0 %v72_v3 }
   0x7   :  { %109 = vmatprep.subr.mxu0 %v7442_v1 }
   0x8   :  { %110 = vmatpush1.msra.mxu0 %v71_v4 }
   0x9   :  { %111 = vmatprep.subr.mxu0 %v7442_v1 }
   0xa   :  { %112 = vmatpush1.msra.mxu0 %v70_v5 }
   0xb   :  { %113 = vmatprep.subr.mxu0 %v7442_v1 }
   0xc   :  { %20 = vsyncpa [#allocation4], 0  ;;  %114 = vmatpush1.msra.mxu0 %v69_v7  ;;  %v67_v9 = vld [vmem:[%s9386_s1 + $0x40] sm:$0xff]  ;;  %v66_v10 = vld [vmem:[%s9386_s1 + $0x38] sm:$0xff]  ;;  %vm189_vm1 = vcmask 253952   ;;  %vm197_vm2 = vcmask 260096  }
   0xd   :  { %115 = vmatprep.subr.mxu0 %v7442_v1  ;;  %v65_v11 = vld [vmem:[%s9386_s1 + $0x30] sm:$0xff]  ;;  %v64_v12 = vld [vmem:[%s9386_s1 + $0x28] sm:$0xff]  ;;  %v63_v13 = vld [vmem:[%s9386_s1 + $0x20] sm:$0xff]  ;;  %198 = vst.msk [vmem:[#allocation2 + $0x11] sm:$0x7f] %vm197_vm2, %v7442_v1  ;;  %vm192_vm3 = vcmask 261120  }
   0xe   :  { %116 = vmatpush1.msra.mxu0 %v68_v8  ;;  %v62_v14 = vld [vmem:[%s9386_s1 + $0x18] sm:$0xff]  ;;  %v61_v15 = vld [vmem:[%s9386_s1 + $0x10] sm:$0xff]  ;;  %v60_v16 = vld [vmem:[%s9386_s1 + $0x8] sm:$0xff]  ;;  %199 = vst.msk [vmem:[#allocation2 + $0x29] sm:$0x7f] %vm197_vm2, %v7442_v1  ;;  %s7443_s23 = smov 96  }
   0xf   :  { %117 = vmatprep.subr.mxu0 %v7442_v1  ;;  %v59_v17 = vld [vmem:[%s9386_s1] sm:$0xff]  ;;  %v82_v18 = vld [vmem:[%s9386_s1 + $0xb8] sm:$0xff]  ;;  %v81_v19 = vld [vmem:[%s9386_s1 + $0xb0] sm:$0xff]  ;;  %vm7444_vm4 = vmmov 0   ;;  %vm452_vm5 = vcmask 64512   ;;  %vm658_vm7 = vcmask 195584  }
  0x10   :  { %118 = vmatpush1.msra.mxu0 %v67_v9  ;;  %v80_v20 = vld [vmem:[%s9386_s1 + $0xa8] sm:$0xff]  ;;  %v79_v21 = vld [vmem:[%s9386_s1 + $0xa0] sm:$0xff]  ;;  %v78_v22 = vld [vmem:[%s9386_s1 + $0x98] sm:$0xff]  ;;  %s7446_s24 = smov 64   ;;  %s7450_s25 = smov 80   ;;  %vm2445_vm8 = vcmask 130048  }
  0x11   :  { %119 = vmatprep.subr.mxu0 %v7442_v1  ;;  %v77_v23 = vld [vmem:[%s9386_s1 + $0x90] sm:$0xff]  ;;  %v76_v24 = vld [vmem:[%s9386_s1 + $0x88] sm:$0xff]  ;;  %v75_v25 = vld [vmem:[%s9386_s1 + $0x80] sm:$0xff]  ;;  %s7451_s26 = smov 112   ;;  %s7452_s27 = smov 48   ;;  %vm5787_vm10 = vcmask 1041409  }
  0x12   :  { %120 = vmatpush1.msra.mxu0 %v66_v10  ;;  %v51_v26 = vld [vmem:[%s9385_s0] sm:$0xff]  ;;  %v54_v27 = vld [vmem:[%s9385_s0 + $0x18] sm:$0xff]  ;;  %v53_v28 = vld [vmem:[%s9385_s0 + $0x10] sm:$0xff]  ;;  %s7454_s28 = smov 104   ;;  %s9401_s1 = smov 40   ;;  %vm5790_vm11 = vcmask 254976  }
  0x13   :  { %121 = vmatprep.subr.mxu0 %v7442_v1  ;;  %v56_v29 = vld [vmem:[%s9385_s0 + $0x28] sm:$0xff]  ;;  %v55_v30 = vld [vmem:[%s9385_s0 + $0x20] sm:$0xff]  ;;  %v58_v31 = vld [vmem:[%s9385_s0 + $0x38] sm:$0xff]  ;;  %s7456_s29 = smov 8   ;;  %s7457_s30 = smov 16  }
  0x14   :  { %122 = vmatpush1.msra.mxu0 %v65_v11  ;;  %v57_v32 = vld [vmem:[%s9385_s0 + $0x30] sm:$0xff]  ;;  %v188_v33 = vld [vmem:[%s9388_s3] sm:$0x1]  ;;  %v207_v49 = vld [vmem:[%s9389_s4 + $0x8] sm:$0xff]  ;;  %s7447_s0 = smov 88   ;;  %s7448_s3 = smov 120  }
  0x15   :  { %123 = vmatprep.subr.mxu0 %v7442_v1  ;;  %190 = vst.msk [vmem:[#allocation2] sm:$0x1] %vm189_vm1, %v188_v33  ;;  %191 = vst.msk [vmem:[#allocation2 + $0x18] sm:$0x1] %vm189_vm1, %v188_v33  ;;  %v5934_v34 = vld [vmem:[%s9387_s2] ss:$0 sm:$0xff] }
  0x16   :  { %124 = vmatpush1.msra.mxu0 %v64_v12  ;;  %v206_v42 = vld [vmem:[%s9389_s4] sm:$0xff]  ;;  %v208_v48 = vld [vmem:[%s9389_s4 + $0x10] sm:$0xff]  ;;  %s7449_s2 = smov 56   ;;  %s7453_s4 = smov 72  }
  0x17   :  { %125 = vmatprep.subr.mxu0 %v7442_v1  ;;  %s9403_s16 = smov 24  }
  0x18   :  { %126 = vmatpush1.msra.mxu0 %v63_v13 }
  0x19   :  { %127 = vmatprep.subr.mxu0 %v7442_v1 }
  0x1a   :  { %128 = vmatpush1.msra.mxu0 %v62_v14 }
  0x1b   :  { %129 = vmatprep.subr.mxu0 %v7442_v1 }
  0x1c   :  { %130 = vmatpush1.msra.mxu0 %v61_v15 }
  0x1d   :  { %131 = vmatprep.subr.mxu0 %v7442_v1 }
  0x1e   :  { %132 = vmatpush1.msra.mxu0 %v60_v16 }
  0x1f   :  { %133 = vmatprep.subr.mxu0 %v7442_v1 }
  0x20   :  { %134 = vmatpush1.msra.mxu0 %v59_v17 }
  0x21   :  { %151 = vmatprep.subr.mxu0 %v7442_v1 }
  0x22   :  { %152 = vmatpush2.msra.mxu0 %v82_v18 }
  0x23   :  { %153 = vmatprep.subr.mxu0 %v7442_v1 }
  0x24   :  { %154 = vmatpush2.msra.mxu0 %v81_v19 }
  0x25   :  { %155 = vmatprep.subr.mxu0 %v7442_v1 }
  0x26   :  { %156 = vmatpush2.msra.mxu0 %v80_v20 }
  0x27   :  { %157 = vmatprep.subr.mxu0 %v7442_v1 }
  0x28   :  { %158 = vmatpush2.msra.mxu0 %v79_v21 }
  0x29   :  { %159 = vmatprep.subr.mxu0 %v7442_v1 }
  0x2a   :  { %160 = vmatpush2.msra.mxu0 %v78_v22 }
  0x2b   :  { %161 = vmatprep.subr.mxu0 %v7442_v1 }
  0x2c   :  { %162 = vmatpush2.msra.mxu0 %v77_v23 }
  0x2d   :  { %163 = vmatprep.subr.mxu0 %v7442_v1 }
  0x2e   :  { %164 = vmatpush2.msra.mxu0 %v76_v24 }
  0x2f   :  { %165 = vmatprep.subr.mxu0 %v7442_v1 }
  0x30   :  { %166 = vmatpush2.msra.mxu0 %v75_v25 }
  0x31   :  { %168 = vmatmul.mubr.f32.vlgmr.msra.gmra.mxu0 %v51_v26  ;;  %6566 = vmatprep.subr.mxu0 %v7442_v1 }
  0x32   :  { %5936 = vmatprep.mubr.msk.f32.mxu0 %vm90_vm0, %v54_v27 }
  0x35   :  { %173 = vmatmul.mubr.f32.gmra.mxu0 %v53_v28 }
  0x36   :  { %5937 = vmatprep.mubr.msk.f32.mxu0 %vm90_vm0, %v56_v29 }
  0x39   :  { %178 = vmatmul.mubr.f32.gmra.mxu0 %v55_v30 }
  0x3a   :  { %5938 = vmatprep.mubr.msk.f32.mxu0 %vm90_vm0, %v58_v31 }
  0x3d   :  { %183 = vmatmul.mubr.f32.gmra.mxu0 %v57_v32 }
  0x3e   :  { %6572 = vmatprep.mubr.msk.f32.mxu0 %vm7444_vm4, %v7442_v1 }
  0xf1   :  { %v169_v35 = vpop.f32.mrf.mxu0 }
  0xf2   :  { %v170_v36 = vadd.f32 %v5934_v34, %v169_v35  ;;  %v322_v35 = vld [vmem:[%s9390_s5 + $0x18] sm:$0xff] }
  0xf3   :  { %v171_v37 = vpop.f32.mrf.mxu0  ;;  %6459 = vmatprep.subr.mxu1 %v322_v35 }
  0xf4   :  { %193 = vst.msk [vmem:[#allocation2 + $0x1] sm:$0xff] %vm192_vm3, %v170_v36  ;;  %v321_v36 = vld [vmem:[%s9390_s5 + $0x10] sm:$0xff]  ;;  %6460 = vmatpush3.msra.mxu1 %v322_v35  ;;  %v320_v37 = vld [vmem:[%s9390_s5 + $0x8] sm:$0xff] }
  0xf5   :  { %v174_v38 = vpop.f32.mrf.mxu0  ;;  %6461 = vmatprep.subr.mxu1 %v321_v36 }
  0xf6   :  { %v175_v39 = vadd.f32 %v5934_v34, %v174_v38  ;;  %6462 = vmatpush3.msra.mxu1 %v321_v36  ;;  %v319_v38 = vld [vmem:[%s9390_s5] sm:$0xff] }
  0xf7   :  { %v176_v40 = vpop.f32.mrf.mxu0  ;;  %6463 = vmatprep.subr.mxu1 %v320_v37 }
  0xf8   :  { %194 = vst.msk [vmem:[#allocation2 + $0x9] sm:$0xff] %vm192_vm3, %v175_v39  ;;  %6464 = vmatpush3.msra.mxu1 %v320_v37 }
  0xf9   :  { %v179_v41 = vpop.f32.mrf.mxu0  ;;  %6465 = vmatprep.subr.mxu1 %v319_v38 }
  0xfa   :  { %v180_v43 = vadd.f32 %v5934_v34, %v179_v41  ;;  %6466 = vmatpush3.msra.mxu1 %v319_v38 }
  0xfb   :  { %v181_v44 = vpop.f32.mrf.mxu0  ;;  %v200_v45 = vld [vmem:[#allocation2] sm:$0xff]  ;;  %6476 = vmatprep.subr.mxu1 %v7442_v1 }
  0xfc   :  { %195 = vst.msk [vmem:[#allocation2 + $0x19] sm:$0xff] %vm192_vm3, %v180_v43  ;;  %v7679_v46 = vadd.f32 %v206_v42, %v200_v45 }
  0xfd   :  { %v184_v47 = vpop.f32.mrf.mxu0 }
  0xfe   :  { %v185_v50 = vadd.f32 %v5934_v34, %v184_v47  ;;  %v220_v51 = vsel %vm192_vm3, %v7679_v46, 0.0  ;;  %v215_v47 = vlaneseq }
  0xff   :  { %221 = vadd.xlane.f32.xlu0 %v220_v51  ;;  %v202_v52 = vld [vmem:[#allocation2 + $0x10] sm:$0xff]  ;;  %v201_v53 = vld [vmem:[#allocation2 + $0x8] sm:$0xff]  ;;  %v186_v54 = vpop.f32.mrf.mxu0 }
 0x100   :  { %196 = vst.msk [vmem:[#allocation2 + $0x21] sm:$0xff] %vm192_vm3, %v185_v50  ;;  %v7690_v55 = vadd.f32 %v208_v48, %v202_v52  ;;  %v7692_v56 = vadd.f32 %v207_v49, %v201_v53  ;;  %v7760_v52 = vshrl.u32 %v215_v47, 7 }
 0x102   :  { %v226_v57 = vsel %vm192_vm3, %v7690_v55, 0.0  ;;  %v223_v58 = vsel %vm192_vm3, %v7692_v56, 0.0  ;;  %vm5752_vm9 = vcmp.eq.s32.totalorder %v7760_v52, 0 }
 0x103   :  { %227 = vadd.xlane.f32.xlu1 %v226_v57  ;;  %224 = vadd.xlane.f32.xlu0 %v223_v58  ;;  %v203_v59 = vld [vmem:[#allocation2 + $0x18] sm:$0xff] }
 0x104   :  { %v7698_v60 = vadd.f32 %v206_v42, %v203_v59 }
 0x106   :  { %v229_v61 = vsel %vm192_vm3, %v7698_v60, 0.0 }
 0x107   :  { %230 = vadd.xlane.f32.xlu1 %v229_v61  ;;  %v205_v62 = vld [vmem:[#allocation2 + $0x28] sm:$0xff]  ;;  %v204_v63 = vld [vmem:[#allocation2 + $0x20] sm:$0xff]  ;;  %v301_v61 = vsub.s32 0, %v7760_v52 }
 0x108   :  { %v7702_v0 = vadd.f32 %v208_v48, %v205_v62  ;;  %v7704_v2 = vadd.f32 %v207_v49, %v204_v63  ;;  %v219_v62 = vld [vmem:[%s9393_s8] sm:$0x3f] }
 0x10a   :  { %v235_v3 = vsel %vm192_vm3, %v7702_v0, 0.0  ;;  %v232_v4 = vsel %vm192_vm3, %v7704_v2, 0.0 }
 0x10b   :  { %236 = vadd.xlane.f32.xlu1 %v235_v3  ;;  %233 = vadd.xlane.f32.xlu0 %v232_v4  ;;  %v311_v4 = vsub.s32 1, %v7760_v52 }
 0x188   :  { %v222_v5 = vpop.xlane.xlu0 %221 }
 0x189   :  { %v239_v6 = vmul.f32 0.03125, %v222_v5  ;;  %v302_v5 = vrot.slane %v219_v62, %v301_v61 }
 0x18b   :  { %v7711_v7 = vsub.f32 %v7679_v46, %v239_v6 }
 0x18c   :  { %v228_v8 = vpop.xlane.xlu1 %227  ;;  %v225_v9 = vpop.xlane.xlu0 %224 }
 0x18d   :  { %v241_v10 = vmul.f32 0.03125, %v228_v8  ;;  %v240_v11 = vmul.f32 0.03125, %v225_v9  ;;  %v251_v12 = vmul.f32 %v7711_v7, %v7711_v7  ;;  %v312_v9 = vrot.slane %v219_v62, %v311_v4 }
 0x18f   :  { %v7716_v13 = vsub.f32 %v7690_v55, %v241_v10  ;;  %v7719_v14 = vsub.f32 %v7692_v56, %v240_v11  ;;  %v257_v15 = vsel %vm192_vm3, %v251_v12, 0.0 }
 0x190   :  { %v231_v16 = vpop.xlane.xlu1 %230  ;;  %258 = vadd.xlane.f32.xlu0 %v257_v15 }
 0x191   :  { %v242_v17 = vmul.f32 0.03125, %v231_v16  ;;  %v253_v18 = vmul.f32 %v7716_v13, %v7716_v13  ;;  %v252_v19 = vmul.f32 %v7719_v14, %v7719_v14 }
 0x193   :  { %v7727_v20 = vsub.f32 %v7698_v60, %v242_v17  ;;  %v263_v21 = vsel %vm192_vm3, %v253_v18, 0.0  ;;  %v260_v22 = vsel %vm192_vm3, %v252_v19, 0.0 }
 0x194   :  { %v237_v23 = vpop.xlane.xlu1 %236  ;;  %264 = vadd.xlane.f32.xlu0 %v263_v21  ;;  %261 = vadd.xlane.f32.xlu1 %v260_v22  ;;  %v234_v24 = vpop.xlane.xlu0 %233 }
 0x195   :  { %v244_v25 = vmul.f32 0.03125, %v237_v23  ;;  %v243_v26 = vmul.f32 0.03125, %v234_v24  ;;  %v254_v27 = vmul.f32 %v7727_v20, %v7727_v20 }
 0x197   :  { %v7734_v28 = vsub.f32 %v7702_v0, %v244_v25  ;;  %v7737_v29 = vsub.f32 %v7704_v2, %v243_v26  ;;  %v266_v30 = vsel %vm192_vm3, %v254_v27, 0.0 }
 0x198   :  { %267 = vadd.xlane.f32.xlu1 %v266_v30 }
 0x199   :  { %v256_v31 = vmul.f32 %v7734_v28, %v7734_v28  ;;  %v255_v32 = vmul.f32 %v7737_v29, %v7737_v29 }
 0x19b   :  { %v272_v33 = vsel %vm192_vm3, %v256_v31, 0.0  ;;  %v269_v34 = vsel %vm192_vm3, %v255_v32, 0.0 }
 0x19c   :  { %273 = vadd.xlane.f32.xlu1 %v272_v33  ;;  %270 = vadd.xlane.f32.xlu0 %v269_v34 }
 0x219   :  { %v259_v39 = vpop.xlane.xlu0 %258 }
 0x21a   :  { %v275_v40 = vmul.f32 0.03125, %v259_v39 }
 0x21c   :  { %v281_v41 = vadd.f32 1e-12, %v275_v40 }
 0x21d   :  { %v262_v42 = vpop.xlane.xlu1 %261  ;;  %v265_v43 = vpop.xlane.xlu0 %264 }
 0x21e   :  { %7152 = vrsqrt.f32 %v281_v41  ;;  %v276_v44 = vmul.f32 0.03125, %v262_v42  ;;  %v277_v45 = vmul.f32 0.03125, %v265_v43 }
 0x220   :  { %v282_v48 = vadd.f32 1e-12, %v276_v44  ;;  %v283_v49 = vadd.f32 1e-12, %v277_v45 }
 0x221   :  { %v268_v50 = vpop.xlane.xlu1 %267 }
 0x222   :  { %7154 = vrsqrt.f32 %v282_v48  ;;  %v278_v51 = vmul.f32 0.03125, %v268_v50 }
 0x223   :  { %7156 = vrsqrt.f32 %v283_v49 }
 0x224   :  { %v284_v53 = vadd.f32 1e-12, %v278_v51 }
 0x225   :  { %v274_v54 = vpop.xlane.xlu1 %273  ;;  %v271_v57 = vpop.xlane.xlu0 %270 }
 0x226   :  { %7158 = vrsqrt.f32 %v284_v53  ;;  %v280_v58 = vmul.f32 0.03125, %v274_v54  ;;  %v279_v59 = vmul.f32 0.03125, %v271_v57  ;;  %v216_v53 = vand.u32 127, %v215_v47 }
 0x227   :  { %v7445_v54 = vmov -1e+30  }
 0x228   :  { %v286_v63 = vadd.f32 1e-12, %v280_v58  ;;  %v285_v3 = vadd.f32 1e-12, %v279_v59  ;;  %vm217_vm6 = vcmp.lt.s32.totalorder %v216_v53, 17 }
 0x229   :  { %v7851_v57 = vsel %vm217_vm6, 0.0, %v7445_v54 }
 0x22a   :  { %7160 = vrsqrt.f32 %v286_v63 }
 0x22b   :  { %v7153_v6 = vpop.eup %7152  ;;  %7162 = vrsqrt.f32 %v285_v3 }
 0x22c   :  { %v293_v8 = vmul.f32 %v7153_v6, %v7711_v7 }
 0x22e   :  { %v303_v10 = vmul.f32 %v302_v5, %v293_v8 }
 0x22f   :  { %v7155_v11 = vpop.eup %7154 }
 0x230   :  { %v7157_v12 = vpop.eup %7156  ;;  %v313_v15 = vadd.f32 %v312_v9, %v303_v10  ;;  %v294_v16 = vmul.f32 %v7155_v11, %v7719_v14 }
 0x231   :  { %v295_v17 = vmul.f32 %v7157_v12, %v7716_v13 }
 0x232   :  { %6467 = vmatprep.mubr.msk.f32.mxu1 %vm192_vm3, %v313_v15  ;;  %v304_v18 = vmul.f32 %v302_v5, %v294_v16 }
 0x233   :  { %v7159_v19 = vpop.eup %7158  ;;  %v305_v21 = vmul.f32 %v302_v5, %v295_v17 }
 0x234   :  { %v314_v22 = vadd.f32 %v312_v9, %v304_v18  ;;  %v296_v23 = vmul.f32 %v7159_v19, %v7727_v20  ;;  %v5939_v20 = vld [vmem:[%s9391_s6] ss:$0 sm:$0xff] }
 0x235   :  { %v315_v7 = vadd.f32 %v312_v9, %v305_v21 }
 0x236   :  { %6468 = vmatmul.mubr.msk.f32.vlgmr.msra.gmra.mxu1 %vm192_vm3, %v314_v22  ;;  %v306_v24 = vmul.f32 %v302_v5, %v296_v23 }
 0x237   :  { %v7161_v25 = vpop.eup %7160  ;;  %6470 = vmatprep.mubr.msk.f32.mxu1 %vm192_vm3, %v315_v7 }
 0x238   :  { %v7163_v26 = vpop.eup %7162  ;;  %v316_v27 = vadd.f32 %v312_v9, %v306_v24  ;;  %v298_v14 = vmul.f32 %v7161_v25, %v7734_v28 }
 0x239   :  { %v297_v13 = vmul.f32 %v7163_v26, %v7737_v29 }
 0x23a   :  { %6471 = vmatmul.mubr.msk.f32.gmra.mxu1 %vm192_vm3, %v316_v27  ;;  %v308_v30 = vmul.f32 %v302_v5, %v298_v14 }
 0x23b   :  { %v307_v31 = vmul.f32 %v302_v5, %v297_v13 }
 0x23c   :  { %v318_v32 = vadd.f32 %v312_v9, %v308_v30 }
 0x23d   :  { %v317_v33 = vadd.f32 %v312_v9, %v307_v31 }
 0x23f   :  { %6473 = vmatprep.mubr.msk.f32.mxu1 %vm192_vm3, %v317_v33 }
 0x240   :  { %6474 = vmatmul.mubr.msk.f32.gmra.mxu1 %vm192_vm3, %v318_v32 }
 0x241   :  { %6482 = vmatprep.mubr.msk.f32.mxu1 %vm7444_vm4, %v7442_v1 }
 0x2f6   :  { %v6469_v34 = vpop.f32.mrf.mxu1 }
 0x2f7   :  { %v7786_v35 = vadd.f32 %v6469_v34, %v5939_v20 }
 0x2f8   :  { %v414_v28 = vpop.f32.mrf.mxu1 }
 0x2f9   :  { %448 = vrot.lane.b32.xlu1 %v7786_v35, %s7443_s23  ;;  %v7790_v36 = vadd.f32 %v5939_v20, %v414_v28 }
 0x2fa   :  { %v6472_v29 = vpop.f32.mrf.mxu1 }
 0x2fb   :  { %v7808_v43 = vadd.f32 %v6472_v29, %v5939_v20 }
 0x2fc   :  { %v424_v37 = vpop.f32.mrf.mxu1 }
 0x2fd   :  { %v7796_v38 = vadd.f32 %v5939_v20, %v424_v37  ;;  %446 = vrot.lane.b32.xlu1 %v7790_v36, %s7443_s23 }
 0x2ff   :  { %450 = vrot.lane.b32.xlu0 %v7796_v38, %s7443_s23 }
 0x300   :  { %v6475_v39 = vpop.f32.mrf.mxu1 }
 0x301   :  { %v7802_v40 = vadd.f32 %v6475_v39, %v5939_v20 }
 0x302   :  { %v434_v41 = vpop.f32.mrf.mxu1 }
 0x303   :  { %v7804_v42 = vadd.f32 %v5939_v20, %v434_v41  ;;  %552 = vrot.lane.b32.xlu1 %v7802_v40, %s7443_s23 }
 0x305   :  { %550 = vrot.lane.b32.xlu0 %v7804_v42, %s7443_s23 }
 0x307   :  { %548 = vrot.lane.b32.xlu1 %v7808_v43, %s7443_s23 }
 0x36b   :  { %v449_v44 = vpop.permute.xlu1 %448 }
 0x36f   :  { %v447_v48 = vpop.permute.xlu1 %446 }
 0x371   :  { %v451_v45 = vpop.permute.xlu0 %450 }
 0x372   :  { %6477 = vmatpush3.xpose.msk.msra.mxu1 %vm452_vm5, %v451_v45 }
 0x373   :  { %6478 = vmatprep.subr.mxu1 %v7442_v1 }
 0x375   :  { %v553_v49 = vpop.permute.xlu1 %552 }
 0x376   :  { %6479 = vmatpush3.xpose.msk.msra.mxu1 %vm452_vm5, %v449_v44 }
 0x377   :  { %6480 = vmatprep.subr.mxu1 %v7442_v1  ;;  %v551_v50 = vpop.permute.xlu0 %550 }
 0x379   :  { %v549_v51 = vpop.permute.xlu1 %548 }
 0x37a   :  { %6481 = vmatpush3.xpose.msk.msra.mxu1 %vm452_vm5, %v447_v48 }
 0x37b   :  { %6491 = vmatprep.subr.mxu1 %v7442_v1 }
 0x37d   :  { %6483 = vmatmul.mubr.msk.f32.vlgmr.msra.gmra.mxu1 %vm452_vm5, %v7790_v36 }
 0x37e   :  { %6492 = vmatpush3.xpose.msk.msra.mxu1 %vm452_vm5, %v553_v49  ;;  %6485 = vmatprep.mubr.msk.f32.mxu1 %vm7444_vm4, %v7442_v1 }
 0x37f   :  { %6493 = vmatprep.subr.mxu1 %v7442_v1 }
 0x381   :  { %6486 = vmatmul.mubr.msk.f32.gmra.mxu1 %vm452_vm5, %v7786_v35 }
 0x382   :  { %6494 = vmatpush3.xpose.msk.msra.mxu1 %vm452_vm5, %v551_v50  ;;  %6488 = vmatprep.mubr.msk.f32.mxu1 %vm7444_vm4, %v7442_v1 }
 0x383   :  { %6495 = vmatprep.subr.mxu1 %v7442_v1 }
 0x385   :  { %6489 = vmatmul.mubr.msk.f32.gmra.mxu1 %vm452_vm5, %v7796_v38 }
 0x386   :  { %6496 = vmatpush3.xpose.msk.msra.mxu1 %vm452_vm5, %v549_v51  ;;  %6497 = vmatprep.mubr.msk.f32.mxu1 %vm7444_vm4, %v7442_v1 }
 0x387   :  { %6506 = vmatprep.subr.mxu1 %v7442_v1 }
 0x389   :  { %6498 = vmatmul.mubr.msk.f32.vlgmr.msra.gmra.mxu1 %vm452_vm5, %v7808_v43 }
 0x38a   :  { %6500 = vmatprep.mubr.msk.f32.mxu1 %vm7444_vm4, %v7442_v1 }
 0x38d   :  { %6501 = vmatmul.mubr.msk.f32.gmra.mxu1 %vm452_vm5, %v7804_v42 }
 0x38e   :  { %6503 = vmatprep.mubr.msk.f32.mxu1 %vm7444_vm4, %v7442_v1 }
 0x391   :  { %6504 = vmatmul.mubr.msk.f32.gmra.mxu1 %vm452_vm5, %v7802_v40 }
 0x392   :  { %6512 = vmatprep.mubr.msk.f32.mxu1 %vm7444_vm4, %v7442_v1 }
 0x43d   :  { %v531_v58 = vpop.f32.mrf.mxu1 }
 0x43e   :  { %v646_v59 = vmul.f32 0.35355338, %v531_v58 }
 0x43f   :  { %v6484_v62 = vpop.f32.mrf.mxu1 }
 0x440   :  { %v652_v63 = vadd.f32 %v646_v59, %v7851_v57 }
 0x441   :  { %v536_v3 = vpop.f32.mrf.mxu1 }
 0x442   :  { %v647_v5 = vmul.f32 0.35355338, %v536_v3  ;;  %v659_v6 = vsel %vm658_vm7, %v652_v63, -inf }
 0x443   :  { %660 = vmax.xlane.f32.xlu0 %v659_v6  ;;  %v6487_v8 = vpop.f32.mrf.mxu1 }
 0x444   :  { %v653_v9 = vadd.f32 %v647_v5, %v7851_v57 }
 0x445   :  { %v541_v10 = vpop.f32.mrf.mxu1 }
 0x446   :  { %v648_v47 = vmul.f32 0.35355338, %v541_v10  ;;  %v662_v11 = vsel %vm658_vm7, %v653_v9, -inf }
 0x447   :  { %663 = vmax.xlane.f32.xlu1 %v662_v11  ;;  %v6490_v12 = vpop.f32.mrf.mxu1 }
 0x448   :  { %v7858_v15 = vadd.f32 %v648_v47, %v7851_v57 }
 0x449   :  { %v632_v16 = vpop.f32.mrf.mxu1 }
 0x44a   :  { %v649_v17 = vmul.f32 0.35355338, %v632_v16  ;;  %v665_v18 = vsel %vm658_vm7, %v7858_v15, -inf }
 0x44b   :  { %666 = vmax.xlane.f32.xlu0 %v665_v18  ;;  %v6499_v19 = vpop.f32.mrf.mxu1 }
 0x44c   :  { %v655_v21 = vadd.f32 %v649_v17, %v7851_v57 }
 0x44d   :  { %v637_v22 = vpop.f32.mrf.mxu1 }
 0x44e   :  { %v650_v23 = vmul.f32 0.35355338, %v637_v22  ;;  %v668_v7 = vsel %vm658_vm7, %v655_v21, -inf }
 0x44f   :  { %669 = vmax.xlane.f32.xlu0 %v668_v7  ;;  %v6502_v24 = vpop.f32.mrf.mxu1 }
 0x450   :  { %v656_v25 = vadd.f32 %v650_v23, %v7851_v57 }
 0x451   :  { %v642_v26 = vpop.f32.mrf.mxu1 }
 0x452   :  { %v671_v27 = vsel %vm658_vm7, %v656_v25, -inf  ;;  %v651_v13 = vmul.f32 0.35355338, %v642_v26 }
 0x453   :  { %672 = vmax.xlane.f32.xlu0 %v671_v27  ;;  %v6505_v14 = vpop.f32.mrf.mxu1 }
 0x454   :  { %v657_v30 = vadd.f32 %v651_v13, %v7851_v57 }
 0x456   :  { %v674_v31 = vsel %vm658_vm7, %v657_v30, -inf }
 0x458   :  { %727 = vrot.lane.b32.xlu1 %v7786_v35, %s7446_s24 }
 0x45c   :  { %725 = vrot.lane.b32.xlu1 %v7790_v36, %s7446_s24 }
 0x460   :  { %827 = vrot.lane.b32.xlu1 %v7802_v40, %s7446_s24 }
 0x469   :  { %729 = vrot.lane.b32.xlu0 %v7796_v38, %s7446_s24 }
 0x484   :  { %675 = vmax.xlane.f32.xlu1 %v674_v31 }
 0x495   :  { %823 = vrot.lane.b32.xlu1 %v7808_v43, %s7446_s24 }
 0x4cc   :  { %v661_v32 = vpop.xlane.xlu0 %660 }
 0x4cd   :  { %v677_v33 = vsub.f32 %v652_v63, %v661_v32 }
 0x4cf   :  { %v683_v20 = vmul.f32 1.442695, %v677_v33 }
 0x4d0   :  { %v664_v34 = vpop.xlane.xlu1 %663 }
 0x4d1   :  { %7164 = vpow2.f32 %v683_v20  ;;  %v678_v28 = vsub.f32 %v653_v9, %v664_v34 }
 0x4d3   :  { %v685_v29 = vmul.f32 1.442695, %v678_v28 }
 0x4d4   :  { %v667_v37 = vpop.xlane.xlu0 %666  ;;  %v728_v49 = vpop.permute.xlu1 %727 }
 0x4d5   :  { %7166 = vpow2.f32 %v685_v29  ;;  %v679_v63 = vsub.f32 %v7858_v15, %v667_v37 }
 0x4d7   :  { %v687_v3 = vmul.f32 1.442695, %v679_v63 }
 0x4d8   :  { %v670_v39 = vpop.xlane.xlu0 %669  ;;  %v726_v58 = vpop.permute.xlu1 %725 }
 0x4d9   :  { %v680_v41 = vsub.f32 %v655_v21, %v670_v39 }
 0x4db   :  { %v689_v44 = vmul.f32 1.442695, %v680_v41 }
 0x4dc   :  { %v673_v45 = vpop.xlane.xlu0 %672  ;;  %v828_v8 = vpop.permute.xlu1 %827 }
 0x4dd   :  { %7168 = vpow2.f32 %v689_v44  ;;  %v681_v5 = vsub.f32 %v656_v25, %v673_v45 }
 0x4de   :  { %v7878_v48 = vpop.eup %7164  ;;  %7170 = vpow2.f32 %v687_v3 }
 0x4df   :  { %v695_v50 = vsel %vm658_vm7, %v7878_v48, 0.0  ;;  %v691_v6 = vmul.f32 1.442695, %v681_v5 }
 0x4e0   :  { %696 = vadd.xlane.f32.xlu0 %v695_v50  ;;  %v730_v51 = vpop.permute.xlu0 %729 }
 0x4e1   :  { %6507 = vmatpush3.msra.mxu1 %v730_v51  ;;  %7172 = vpow2.f32 %v691_v6 }
 0x4e2   :  { %v7882_v53 = vpop.eup %7166  ;;  %6508 = vmatprep.subr.mxu1 %v7442_v1 }
 0x4e3   :  { %6509 = vmatpush3.msra.mxu1 %v728_v49  ;;  %v698_v54 = vsel %vm658_vm7, %v7882_v53, 0.0 }
 0x4e4   :  { %699 = vadd.xlane.f32.xlu1 %v698_v54  ;;  %6510 = vmatprep.subr.mxu1 %v7442_v1 }
 0x4e5   :  { %6511 = vmatpush3.msra.mxu1 %v726_v58 }
 0x4e6   :  { %6521 = vmatprep.subr.mxu1 %v7442_v1 }
 0x4ea   :  { %v7889_v59 = vpop.eup %7168 }
 0x4eb   :  { %v704_v62 = vsel %vm658_vm7, %v7889_v59, 0.0  ;;  %v7171_v11 = vpop.eup %7170 }
 0x4ec   :  { %705 = vadd.xlane.f32.xlu1 %v704_v62  ;;  %v701_v12 = vsel %vm658_vm7, %v7171_v11, 0.0 }
 0x4ee   :  { %v7901_v15 = vpop.eup %7172 }
 0x4ef   :  { %v707_v16 = vsel %vm658_vm7, %v7901_v15, 0.0 }
 0x4f6   :  { %825 = vrot.lane.b32.xlu0 %v7804_v42, %s7446_s24 }
 0x4fd   :  { %929 = vrot.lane.b32.xlu1 %v7786_v35, %s7447_s0 }
 0x501   :  { %921 = vrot.lane.b32.xlu1 %v7790_v36, %s7448_s3 }
 0x50d   :  { %v676_v9 = vpop.xlane.xlu1 %675 }
 0x50e   :  { %v682_v10 = vsub.f32 %v657_v30, %v676_v9 }
 0x510   :  { %v693_v47 = vmul.f32 1.442695, %v682_v10 }
 0x511   :  { %v824_v19 = vpop.permute.xlu1 %823 }
 0x512   :  { %7174 = vpow2.f32 %v693_v47 }
 0x515   :  { %702 = vadd.xlane.f32.xlu0 %v701_v12 }
 0x519   :  { %708 = vadd.xlane.f32.xlu0 %v707_v16 }
 0x51f   :  { %v7905_v17 = vpop.eup %7174 }
 0x520   :  { %v710_v18 = vsel %vm658_vm7, %v7905_v17, 0.0 }
 0x525   :  { %711 = vadd.xlane.f32.xlu1 %v710_v18 }
 0x52f   :  { %931 = vrot.lane.b32.xlu0 %v7796_v38, %s7447_s0 }
 0x533   :  { %927 = vrot.lane.b32.xlu0 %v7790_v36, %s7447_s0 }
 0x536   :  { %923 = vrot.lane.b32.xlu1 %v7786_v35, %s7448_s3 }
 0x537   :  { %1035 = vrot.lane.b32.xlu0 %v7802_v40, %s7447_s0 }
 0x53a   :  { %925 = vrot.lane.b32.xlu1 %v7796_v38, %s7448_s3 }
 0x53b   :  { %1033 = vrot.lane.b32.xlu0 %v7804_v42, %s7447_s0 }
 0x53e   :  { %1025 = vrot.lane.b32.xlu1 %v7808_v43, %s7448_s3 }
 0x53f   :  { %1031 = vrot.lane.b32.xlu0 %v7808_v43, %s7447_s0 }
 0x542   :  { %1029 = vrot.lane.b32.xlu1 %v7802_v40, %s7448_s3 }
 0x543   :  { %1027 = vrot.lane.b32.xlu0 %v7804_v42, %s7448_s3 }
 0x546   :  { %1209 = vrot.lane.b32.xlu1 %v7786_v35, %s7449_s2 }
 0x547   :  { %1211 = vrot.lane.b32.xlu0 %v7796_v38, %s7449_s2 }
 0x54a   :  { %1207 = vrot.lane.b32.xlu1 %v7790_v36, %s7449_s2 }
 0x54b   :  { %1309 = vrot.lane.b32.xlu0 %v7802_v40, %s7449_s2 }
 0x54e   :  { %1413 = vrot.lane.b32.xlu1 %v7796_v38, %s7450_s25 }
 0x54f   :  { %1307 = vrot.lane.b32.xlu0 %v7804_v42, %s7449_s2 }
 0x552   :  { %1411 = vrot.lane.b32.xlu1 %v7786_v35, %s7450_s25 }
 0x556   :  { %1305 = vrot.lane.b32.xlu1 %v7808_v43, %s7449_s2 }
 0x569   :  { %v697_v21 = vpop.xlane.xlu0 %696 }
 0x56a   :  { %7176 = vrcp.f32 %v697_v21 }
 0x56d   :  { %v700_v22 = vpop.xlane.xlu1 %699  ;;  %v826_v25 = vpop.permute.xlu0 %825 }
 0x56e   :  { %7178 = vrcp.f32 %v700_v22 }
 0x575   :  { %v706_v27 = vpop.xlane.xlu1 %705 }
 0x577   :  { %v7177_v23 = vpop.eup %7176 }
 0x578   :  { %v719_v7 = vmul.f32 %v7177_v23, %v7878_v48 }
 0x579   :  { %v930_v30 = vpop.permute.xlu1 %929 }
 0x57a   :  { %6513 = vmatmul.mubr.msk.f32.vlgmr.msra.gmra.mxu1 %vm658_vm7, %v719_v7 }
 0x57b   :  { %v7179_v24 = vpop.eup %7178  ;;  %6522 = vmatpush3.msra.mxu1 %v828_v8  ;;  %6515 = vmatprep.mubr.msk.f32.mxu1 %vm7444_vm4, %v7442_v1 }
 0x57c   :  { %6523 = vmatprep.subr.mxu1 %v7442_v1  ;;  %v720_v26 = vmul.f32 %v7179_v24, %v7882_v53 }
 0x57d   :  { %6524 = vmatpush3.msra.mxu1 %v826_v25  ;;  %v922_v32 = vpop.permute.xlu1 %921 }
 0x57e   :  { %6525 = vmatprep.subr.mxu1 %v7442_v1  ;;  %6516 = vmatmul.mubr.msk.f32.gmra.mxu1 %vm658_vm7, %v720_v26 }
 0x57f   :  { %6526 = vmatpush3.msra.mxu1 %v824_v19  ;;  %6518 = vmatprep.mubr.msk.f32.mxu1 %vm7444_vm4, %v7442_v1 }
 0x580   :  { %6536 = vmatprep.subr.mxu1 %v7442_v1 }
 0x59e   :  { %v703_v14 = vpop.xlane.xlu0 %702 }
 0x59f   :  { %7180 = vrcp.f32 %v703_v14 }
 0x5a0   :  { %7182 = vrcp.f32 %v706_v27 }
 0x5a2   :  { %v709_v13 = vpop.xlane.xlu0 %708 }
 0x5a3   :  { %7184 = vrcp.f32 %v709_v13 }
 0x5a6   :  { %v932_v31 = vpop.permute.xlu0 %931 }
 0x5aa   :  { %v928_v33 = vpop.permute.xlu0 %927 }
 0x5ac   :  { %v7181_v20 = vpop.eup %7180 }
 0x5ad   :  { %v721_v34 = vmul.f32 %v7181_v20, %v7171_v11  ;;  %v7183_v28 = vpop.eup %7182 }
 0x5ae   :  { %v712_v29 = vpop.xlane.xlu1 %711  ;;  %v1036_v37 = vpop.permute.xlu0 %1035  ;;  %v722_v39 = vmul.f32 %v7183_v28, %v7889_v59 }
 0x5af   :  { %7186 = vrcp.f32 %v712_v29  ;;  %6519 = vmatmul.mubr.msk.f32.gmra.mxu1 %vm658_vm7, %v721_v34 }
 0x5b0   :  { %6527 = vmatprep.mubr.msk.f32.mxu1 %vm7444_vm4, %v7442_v1  ;;  %v7185_v41 = vpop.eup %7184 }
 0x5b1   :  { %v723_v48 = vmul.f32 %v7185_v41, %v7901_v15 }
 0x5b2   :  { %v924_v44 = vpop.permute.xlu1 %923  ;;  %v1034_v45 = vpop.permute.xlu0 %1033 }
 0x5b3   :  { %6528 = vmatmul.mubr.msk.f32.vlgmr.msra.gmra.mxu1 %vm658_vm7, %v722_v39 }
 0x5b4   :  { %6537 = vmatpush3.xpose.msk.msra.mxu1 %vm452_vm5, %v932_v31  ;;  %6530 = vmatprep.mubr.msk.f32.mxu1 %vm7444_vm4, %v7442_v1 }
 0x5b5   :  { %6538 = vmatprep.subr.mxu1 %v7442_v1 }
 0x5b6   :  { %v926_v49 = vpop.permute.xlu1 %925  ;;  %v1032_v50 = vpop.permute.xlu0 %1031 }
 0x5b7   :  { %6531 = vmatmul.mubr.msk.f32.gmra.mxu1 %vm658_vm7, %v723_v48 }
 0x5b8   :  { %6539 = vmatpush3.xpose.msk.msra.mxu1 %vm452_vm5, %v930_v30  ;;  %6533 = vmatprep.mubr.msk.f32.mxu1 %vm7444_vm4, %v7442_v1 }
 0x5b9   :  { %6540 = vmatprep.subr.mxu1 %v7442_v1 }
 0x5ba   :  { %v1026_v51 = vpop.permute.xlu1 %1025  ;;  %v1028_v53 = vpop.permute.xlu0 %1027 }
 0x5bc   :  { %v7187_v54 = vpop.eup %7186  ;;  %6541 = vmatpush3.xpose.msk.msra.mxu1 %vm452_vm5, %v928_v33 }
 0x5bd   :  { %v724_v58 = vmul.f32 %v7187_v54, %v7905_v17  ;;  %6551 = vmatprep.subr.mxu1 %v7442_v1 }
 0x5be   :  { %v1030_v59 = vpop.permute.xlu1 %1029  ;;  %v1212_v62 = vpop.permute.xlu0 %1211 }
 0x5bf   :  { %6534 = vmatmul.mubr.msk.f32.gmra.mxu1 %vm658_vm7, %v724_v58  ;;  %6567 = vmatpush3.msra.mxu0 %v1212_v62 }
 0x5c0   :  { %6542 = vmatprep.mubr.msk.f32.mxu1 %vm7444_vm4, %v7442_v1  ;;  %6568 = vmatprep.subr.mxu0 %v7442_v1 }
 0x5c2   :  { %v1210_v63 = vpop.permute.xlu1 %1209  ;;  %v1310_v6 = vpop.permute.xlu0 %1309 }
 0x5c3   :  { %6543 = vmatmul.mubr.msk.f32.vlgmr.msra.gmra.mxu1 %vm452_vm5, %v922_v32  ;;  %6569 = vmatpush3.msra.mxu0 %v1210_v63 }
 0x5c4   :  { %6552 = vmatpush3.xpose.msk.msra.mxu1 %vm452_vm5, %v1036_v37  ;;  %6545 = vmatprep.mubr.msk.f32.mxu1 %vm7444_vm4, %v7442_v1 }
 0x5c5   :  { %6553 = vmatprep.subr.mxu1 %v7442_v1  ;;  %6570 = vmatprep.subr.mxu0 %v7442_v1 }
 0x5c6   :  { %v1208_v3 = vpop.permute.xlu1 %1207  ;;  %v1308_v9 = vpop.permute.xlu0 %1307 }
 0x5c7   :  { %6546 = vmatmul.mubr.msk.f32.gmra.mxu1 %vm452_vm5, %v924_v44  ;;  %6571 = vmatpush3.msra.mxu0 %v1208_v3 }
 0x5c8   :  { %6554 = vmatpush3.xpose.msk.msra.mxu1 %vm452_vm5, %v1034_v45  ;;  %6548 = vmatprep.mubr.msk.f32.mxu1 %vm7444_vm4, %v7442_v1 }
 0x5c9   :  { %6555 = vmatprep.subr.mxu1 %v7442_v1  ;;  %6596 = vmatprep.subr.mxu0 %v7442_v1 }
 0x5ca   :  { %v7990_v5 = vpop.permute.xlu1 %1413 }
 0x5cb   :  { %6549 = vmatmul.mubr.msk.f32.gmra.mxu1 %vm452_vm5, %v926_v49 }
 0x5cc   :  { %6556 = vmatpush3.xpose.msk.msra.mxu1 %vm452_vm5, %v1032_v50  ;;  %6557 = vmatprep.mubr.msk.f32.mxu1 %vm7444_vm4, %v7442_v1 }
 0x5cd   :  { %6581 = vmatprep.subr.mxu1 %v7442_v1 }
 0x5ce   :  { %v7997_v8 = vpop.permute.xlu1 %1411 }
 0x5cf   :  { %6558 = vmatmul.mubr.msk.f32.vlgmr.msra.gmra.mxu1 %vm452_vm5, %v1026_v51 }
 0x5d0   :  { %6582 = vmatpush3.msra.mxu1 %v1310_v6  ;;  %6560 = vmatprep.mubr.msk.f32.mxu1 %vm7444_vm4, %v7442_v1 }
 0x5d1   :  { %6583 = vmatprep.subr.mxu1 %v7442_v1 }
 0x5d2   :  { %6584 = vmatpush3.msra.mxu1 %v1308_v9  ;;  %v1306_v10 = vpop.permute.xlu1 %1305 }
 0x5d3   :  { %6585 = vmatprep.subr.mxu1 %v7442_v1  ;;  %6561 = vmatmul.mubr.msk.f32.gmra.mxu1 %vm452_vm5, %v1028_v53 }
 0x5d4   :  { %6586 = vmatpush3.msra.mxu1 %v1306_v10  ;;  %6563 = vmatprep.mubr.msk.f32.mxu1 %vm7444_vm4, %v7442_v1 }
 0x5d5   :  { %6611 = vmatprep.subr.mxu1 %v7442_v1 }
 0x5d7   :  { %6564 = vmatmul.mubr.msk.f32.gmra.mxu1 %vm452_vm5, %v1030_v59 }
 0x5d8   :  { %6587 = vmatprep.mubr.msk.f32.mxu1 %vm7444_vm4, %v7442_v1 }
 0x63a   :  { %v8011_v47 = vpop.f32.mrf.mxu1 }
 0x63c   :  { %v6514_v11 = vpop.f32.mrf.mxu1 }
 0x63e   :  { %v8013_v12 = vpop.f32.mrf.mxu1 }
 0x640   :  { %v6517_v15 = vpop.f32.mrf.mxu1 }
 0x66f   :  { %v8015_v16 = vpop.f32.mrf.mxu1 }
 0x671   :  { %v6520_v17 = vpop.f32.mrf.mxu1 }
 0x673   :  { %v8017_v18 = vpop.f32.mrf.mxu1 }
 0x675   :  { %v6529_v19 = vpop.f32.mrf.mxu1 }
 0x677   :  { %v8019_v21 = vpop.f32.mrf.mxu1 }
 0x679   :  { %v6532_v22 = vpop.f32.mrf.mxu1 }
 0x67f   :  { %v8021_v23 = vpop.f32.mrf.mxu1 }
 0x681   :  { %v6535_v7 = vpop.f32.mrf.mxu1 }
 0x683   :  { %v1011_v24 = vpop.f32.mrf.mxu1 }
 0x684   :  { %v1129_v25 = vmul.f32 0.35355338, %v1011_v24 }
 0x685   :  { %v6544_v26 = vpop.f32.mrf.mxu1 }
 0x686   :  { %v1135_v27 = vadd.f32 %v1129_v25, %v7851_v57 }
 0x687   :  { %v1016_v14 = vpop.f32.mrf.mxu1 }
 0x688   :  { %v1130_v13 = vmul.f32 0.35355338, %v1016_v14  ;;  %v1141_v30 = vsel %vm658_vm7, %v1135_v27, -inf }
 0x689   :  { %1142 = vmax.xlane.f32.xlu0 %v1141_v30  ;;  %v6547_v31 = vpop.f32.mrf.mxu1 }
 0x68a   :  { %v1136_v32 = vadd.f32 %v1130_v13, %v7851_v57 }
 0x68b   :  { %v1021_v33 = vpop.f32.mrf.mxu1 }
 0x68c   :  { %v1131_v20 = vmul.f32 0.35355338, %v1021_v33  ;;  %v1144_v34 = vsel %vm658_vm7, %v1136_v32, -inf }
 0x68d   :  { %1145 = vmax.xlane.f32.xlu1 %v1144_v34  ;;  %v6550_v28 = vpop.f32.mrf.mxu1 }
 0x68e   :  { %v1137_v29 = vadd.f32 %v1131_v20, %v7851_v57 }
 0x68f   :  { %v1115_v37 = vpop.f32.mrf.mxu1 }
 0x690   :  { %v1132_v39 = vmul.f32 0.35355338, %v1115_v37  ;;  %v1147_v41 = vsel %vm658_vm7, %v1137_v29, -inf }
 0x691   :  { %1148 = vmax.xlane.f32.xlu0 %v1147_v41  ;;  %v6559_v44 = vpop.f32.mrf.mxu1 }
 0x692   :  { %v1138_v45 = vadd.f32 %v1132_v39, %v7851_v57 }
 0x693   :  { %v1120_v48 = vpop.f32.mrf.mxu1 }
 0x694   :  { %v1133_v49 = vmul.f32 0.35355338, %v1120_v48  ;;  %v1150_v50 = vsel %vm658_vm7, %v1138_v45, -inf }
 0x695   :  { %1151 = vmax.xlane.f32.xlu0 %v1150_v50  ;;  %v6562_v51 = vpop.f32.mrf.mxu1 }
 0x696   :  { %v1139_v53 = vadd.f32 %v1133_v49, %v7851_v57 }
 0x697   :  { %v1125_v54 = vpop.f32.mrf.mxu1 }
 0x698   :  { %v1153_v58 = vsel %vm658_vm7, %v1139_v53, -inf  ;;  %v1134_v62 = vmul.f32 0.35355338, %v1125_v54 }
 0x699   :  { %1154 = vmax.xlane.f32.xlu0 %v1153_v58  ;;  %v6565_v59 = vpop.f32.mrf.mxu1 }
 0x69a   :  { %v1140_v63 = vadd.f32 %v1134_v62, %v7851_v57 }
 0x69c   :  { %v1156_v3 = vsel %vm658_vm7, %v1140_v63, -inf }
 0x69e   :  { %1517 = vrot.lane.b32.xlu1 %v7802_v40, %s7450_s25 }
 0x6af   :  { %1409 = vrot.lane.b32.xlu0 %v7790_v36, %s7450_s25 }
 0x6c2   :  { %1157 = vmax.xlane.f32.xlu1 %v1156_v3 }
 0x712   :  { %v1143_v6 = vpop.xlane.xlu0 %1142 }
 0x713   :  { %v1159_v9 = vsub.f32 %v1135_v27, %v1143_v6 }
 0x715   :  { %v1165_v10 = vmul.f32 1.442695, %v1159_v9 }
 0x716   :  { %v1146_v11 = vpop.xlane.xlu1 %1145 }
 0x717   :  { %7188 = vpow2.f32 %v1165_v10  ;;  %v1160_v15 = vsub.f32 %v1136_v32, %v1146_v11 }
 0x719   :  { %v1167_v17 = vmul.f32 1.442695, %v1160_v15 }
 0x71a   :  { %v1149_v19 = vpop.xlane.xlu0 %1148  ;;  %v8059_v41 = vpop.permute.xlu1 %1517 }
 0x71b   :  { %7190 = vpow2.f32 %v1167_v17  ;;  %v1161_v22 = vsub.f32 %v1137_v29, %v1149_v19 }
 0x71d   :  { %v1169_v7 = vmul.f32 1.442695, %v1161_v22 }
 0x71e   :  { %v1152_v30 = vpop.xlane.xlu0 %1151 }
 0x71f   :  { %7192 = vpow2.f32 %v1169_v7  ;;  %v1162_v31 = vsub.f32 %v1138_v45, %v1152_v30 }
 0x721   :  { %v1171_v33 = vmul.f32 1.442695, %v1162_v31 }
 0x722   :  { %v1155_v32 = vpop.xlane.xlu0 %1154 }
 0x723   :  { %v1163_v20 = vsub.f32 %v1139_v53, %v1155_v32  ;;  %7194 = vpow2.f32 %v1171_v33 }
 0x724   :  { %v7189_v24 = vpop.eup %7188 }
 0x725   :  { %v1177_v25 = vsel %vm658_vm7, %v7189_v24, 0.0  ;;  %v1173_v34 = vmul.f32 1.442695, %v1163_v20 }
 0x726   :  { %1178 = vadd.xlane.f32.xlu0 %v1177_v25  ;;  %v1410_v51 = vpop.permute.xlu0 %1409 }
 0x727   :  { %7196 = vpow2.f32 %v1173_v34 }
 0x728   :  { %v7191_v26 = vpop.eup %7190 }
 0x729   :  { %v1180_v14 = vsel %vm658_vm7, %v7191_v26, 0.0 }
 0x72a   :  { %1181 = vadd.xlane.f32.xlu1 %v1180_v14 }
 0x72c   :  { %v8041_v13 = vpop.eup %7192 }
 0x72d   :  { %v1183_v27 = vsel %vm658_vm7, %v8041_v13, 0.0 }
 0x72e   :  { %1184 = vadd.xlane.f32.xlu0 %v1183_v27 }
 0x730   :  { %v8049_v28 = vpop.eup %7194 }
 0x731   :  { %v1186_v29 = vsel %vm658_vm7, %v8049_v28, 0.0 }
 0x734   :  { %v8053_v37 = vpop.eup %7196 }
 0x735   :  { %v1189_v39 = vsel %vm658_vm7, %v8053_v37, 0.0 }
 0x73b   :  { %1515 = vrot.lane.b32.xlu1 %v7804_v42, %s7450_s25 }
 0x744   :  { %1403 = vrot.lane.b32.xlu0 %v7790_v36, %s7451_s26 }
 0x74b   :  { %v1158_v44 = vpop.xlane.xlu1 %1157 }
 0x74c   :  { %v1164_v45 = vsub.f32 %v1140_v63, %v1158_v44 }
 0x74e   :  { %v1175_v48 = vmul.f32 1.442695, %v1164_v45 }
 0x750   :  { %7198 = vpow2.f32 %v1175_v48 }
 0x75d   :  { %v8073_v49 = vpop.eup %7198 }
 0x75e   :  { %v1192_v50 = vsel %vm658_vm7, %v8073_v49, 0.0 }
 0x75f   :  { %1187 = vadd.xlane.f32.xlu1 %v1186_v29 }
 0x763   :  { %1190 = vadd.xlane.f32.xlu0 %v1189_v39 }
 0x770   :  { %1513 = vrot.lane.b32.xlu1 %v7808_v43, %s7450_s25 }
 0x779   :  { %1405 = vrot.lane.b32.xlu0 %v7786_v35, %s7451_s26 }
 0x77d   :  { %1407 = vrot.lane.b32.xlu0 %v7796_v38, %s7451_s26 }
 0x781   :  { %1509 = vrot.lane.b32.xlu0 %v7804_v42, %s7451_s26 }
 0x785   :  { %1693 = vrot.lane.b32.xlu0 %v7796_v38, %s7452_s27 }
 0x789   :  { %1791 = vrot.lane.b32.xlu0 %v7802_v40, %s7452_s27 }
 0x78d   :  { %1789 = vrot.lane.b32.xlu0 %v7804_v42, %s7452_s27 }
 0x794   :  { %1193 = vadd.xlane.f32.xlu1 %v1192_v50 }
 0x7a5   :  { %1507 = vrot.lane.b32.xlu1 %v7808_v43, %s7451_s26 }
 0x7a9   :  { %1511 = vrot.lane.b32.xlu1 %v7802_v40, %s7451_s26 }
 0x7ad   :  { %1691 = vrot.lane.b32.xlu1 %v7786_v35, %s7452_s27 }
 0x7af   :  { %v1179_v53 = vpop.xlane.xlu0 %1178 }
 0x7b0   :  { %7200 = vrcp.f32 %v1179_v53 }
 0x7b1   :  { %1689 = vrot.lane.b32.xlu1 %v7790_v36, %s7452_s27 }
 0x7b3   :  { %v1182_v54 = vpop.xlane.xlu1 %1181 }
 0x7b4   :  { %7202 = vrcp.f32 %v1182_v54 }
 0x7b5   :  { %1895 = vrot.lane.b32.xlu1 %v7796_v38, %s7453_s4 }
 0x7b7   :  { %v1185_v58 = vpop.xlane.xlu0 %1184 }
 0x7b8   :  { %7204 = vrcp.f32 %v1185_v58 }
 0x7b9   :  { %1893 = vrot.lane.b32.xlu1 %v7786_v35, %s7453_s4 }
 0x7bd   :  { %v7201_v59 = vpop.eup %7200  ;;  %1787 = vrot.lane.b32.xlu1 %v7808_v43, %s7452_s27 }
 0x7be   :  { %v1201_v62 = vmul.f32 %v7201_v59, %v7189_v24 }
 0x7c0   :  { %6573 = vmatmul.mubr.msk.f32.vlgmr.msra.gmra.mxu0 %vm658_vm7, %v1201_v62 }
 0x7c1   :  { %v7203_v63 = vpop.eup %7202  ;;  %6597 = vmatpush3.xpose.msk.msra.mxu0 %vm452_vm5, %v7990_v5  ;;  %6575 = vmatprep.mubr.msk.f32.mxu0 %vm7444_vm4, %v7442_v1  ;;  %v1404_v5 = vpop.permute.xlu0 %1403 }
 0x7c2   :  { %6598 = vmatprep.subr.mxu0 %v7442_v1  ;;  %v1202_v3 = vmul.f32 %v7203_v63, %v7191_v26 }
 0x7c4   :  { %6576 = vmatmul.mubr.msk.f32.gmra.mxu0 %vm658_vm7, %v1202_v3 }
 0x7c5   :  { %v7205_v6 = vpop.eup %7204  ;;  %6599 = vmatpush3.xpose.msk.msra.mxu0 %vm452_vm5, %v7997_v8  ;;  %6578 = vmatprep.mubr.msk.f32.mxu0 %vm7444_vm4, %v7442_v1  ;;  %v1516_v8 = vpop.permute.xlu1 %1515 }
 0x7c6   :  { %6600 = vmatprep.subr.mxu0 %v7442_v1  ;;  %v1203_v9 = vmul.f32 %v7205_v6, %v8041_v13 }
 0x7c8   :  { %6579 = vmatmul.mubr.msk.f32.gmra.mxu0 %vm658_vm7, %v1203_v9 }
 0x7c9   :  { %6601 = vmatpush3.xpose.msk.msra.mxu0 %vm452_vm5, %v1410_v51  ;;  %6602 = vmatprep.mubr.msk.f32.mxu0 %vm7444_vm4, %v7442_v1 }
 0x7ca   :  { %6626 = vmatprep.subr.mxu0 %v7442_v1 }
 0x7cc   :  { %6603 = vmatmul.mubr.msk.f32.vlgmr.msra.gmra.mxu0 %vm452_vm5, %v1404_v5 }
 0x7cd   :  { %6605 = vmatprep.mubr.msk.f32.mxu0 %vm7444_vm4, %v7442_v1 }
 0x7e8   :  { %v1188_v10 = vpop.xlane.xlu1 %1187 }
 0x7e9   :  { %7206 = vrcp.f32 %v1188_v10 }
 0x7ec   :  { %v1191_v11 = vpop.xlane.xlu0 %1190  ;;  %v1514_v14 = vpop.permute.xlu1 %1513 }
 0x7ed   :  { %7208 = vrcp.f32 %v1191_v11 }
 0x7f0   :  { %v1406_v15 = vpop.permute.xlu0 %1405 }
 0x7f1   :  { %6606 = vmatmul.mubr.msk.f32.gmra.mxu0 %vm452_vm5, %v1406_v15 }
 0x7f2   :  { %6608 = vmatprep.mubr.msk.f32.mxu0 %vm7444_vm4, %v7442_v1 }
 0x7f4   :  { %v1408_v17 = vpop.permute.xlu0 %1407 }
 0x7f5   :  { %6609 = vmatmul.mubr.msk.f32.gmra.mxu0 %vm452_vm5, %v1408_v17 }
 0x7f6   :  { %v7207_v19 = vpop.eup %7206  ;;  %6632 = vmatprep.mubr.msk.f32.mxu0 %vm7444_vm4, %v7442_v1 }
 0x7f7   :  { %v1204_v22 = vmul.f32 %v7207_v19, %v8049_v28 }
 0x7f8   :  { %v1510_v7 = vpop.permute.xlu0 %1509 }
 0x7f9   :  { %6588 = vmatmul.mubr.msk.f32.vlgmr.msra.gmra.mxu1 %vm658_vm7, %v1204_v22 }
 0x7fa   :  { %v7209_v24 = vpop.eup %7208  ;;  %6612 = vmatpush3.xpose.msk.msra.mxu1 %vm452_vm5, %v8059_v41  ;;  %6590 = vmatprep.mubr.msk.f32.mxu1 %vm7444_vm4, %v7442_v1 }
 0x7fb   :  { %6613 = vmatprep.subr.mxu1 %v7442_v1  ;;  %v1205_v25 = vmul.f32 %v7209_v24, %v8053_v37 }
 0x7fc   :  { %v1694_v26 = vpop.permute.xlu0 %1693 }
 0x7fd   :  { %6591 = vmatmul.mubr.msk.f32.gmra.mxu1 %vm658_vm7, %v1205_v25  ;;  %6627 = vmatpush3.msra.mxu0 %v1694_v26 }
 0x7fe   :  { %6614 = vmatpush3.xpose.msk.msra.mxu1 %vm452_vm5, %v1516_v8  ;;  %6628 = vmatprep.subr.mxu0 %v7442_v1 }
 0x7ff   :  { %6615 = vmatprep.subr.mxu1 %v7442_v1  ;;  %6593 = vmatprep.mubr.msk.f32.mxu1 %vm7444_vm4, %v7442_v1 }
 0x800   :  { %v1792_v34 = vpop.permute.xlu0 %1791 }
 0x802   :  { %6616 = vmatpush3.xpose.msk.msra.mxu1 %vm452_vm5, %v1514_v14 }
 0x803   :  { %6641 = vmatprep.subr.mxu1 %v7442_v1 }
 0x804   :  { %v1790_v29 = vpop.permute.xlu0 %1789 }
 0x81d   :  { %v1194_v13 = vpop.xlane.xlu1 %1193 }
 0x81e   :  { %7210 = vrcp.f32 %v1194_v13 }
 0x821   :  { %v1508_v27 = vpop.permute.xlu1 %1507 }
 0x825   :  { %v1512_v30 = vpop.permute.xlu1 %1511 }
 0x829   :  { %v1692_v31 = vpop.permute.xlu1 %1691 }
 0x82a   :  { %6629 = vmatpush3.msra.mxu0 %v1692_v31 }
 0x82b   :  { %v7211_v32 = vpop.eup %7210  ;;  %6630 = vmatprep.subr.mxu0 %v7442_v1 }
 0x82c   :  { %v1206_v33 = vmul.f32 %v7211_v32, %v8073_v49 }
 0x82d   :  { %v1690_v20 = vpop.permute.xlu1 %1689 }
 0x82e   :  { %6594 = vmatmul.mubr.msk.f32.gmra.mxu1 %vm658_vm7, %v1206_v33  ;;  %6631 = vmatpush3.msra.mxu0 %v1690_v20 }
 0x82f   :  { %6617 = vmatprep.mubr.msk.f32.mxu1 %vm7444_vm4, %v7442_v1  ;;  %6656 = vmatprep.subr.mxu0 %v7442_v1 }
 0x831   :  { %v8140_v28 = vpop.permute.xlu1 %1895 }
 0x832   :  { %6618 = vmatmul.mubr.msk.f32.vlgmr.msra.gmra.mxu1 %vm452_vm5, %v1508_v27 }
 0x833   :  { %6642 = vmatpush3.msra.mxu1 %v1792_v34  ;;  %6620 = vmatprep.mubr.msk.f32.mxu1 %vm7444_vm4, %v7442_v1 }
 0x834   :  { %6643 = vmatprep.subr.mxu1 %v7442_v1 }
 0x835   :  { %6644 = vmatpush3.msra.mxu1 %v1790_v29  ;;  %v8146_v37 = vpop.permute.xlu1 %1893 }
 0x836   :  { %6621 = vmatmul.mubr.msk.f32.gmra.mxu1 %vm452_vm5, %v1510_v7  ;;  %6645 = vmatprep.subr.mxu1 %v7442_v1 }
 0x837   :  { %6623 = vmatprep.mubr.msk.f32.mxu1 %vm7444_vm4, %v7442_v1 }
 0x839   :  { %v1788_v39 = vpop.permute.xlu1 %1787 }
 0x83a   :  { %6624 = vmatmul.mubr.msk.f32.gmra.mxu1 %vm452_vm5, %v1512_v30 }
 0x83b   :  { %6646 = vmatpush3.msra.mxu1 %v1788_v39  ;;  %6647 = vmatprep.mubr.msk.f32.mxu1 %vm7444_vm4, %v7442_v1 }
 0x83c   :  { %6671 = vmatprep.subr.mxu1 %v7442_v1 }
 0x880   :  { %v8156_v41 = vpop.f32.mrf.mxu0 }
 0x882   :  { %v6574_v44 = vpop.f32.mrf.mxu0 }
 0x884   :  { %v8158_v45 = vpop.f32.mrf.mxu0 }
 0x886   :  { %v6577_v48 = vpop.f32.mrf.mxu0 }
 0x888   :  { %v8160_v49 = vpop.f32.mrf.mxu0 }
 0x88a   :  { %v6580_v50 = vpop.f32.mrf.mxu0 }
 0x88c   :  { %v1493_v51 = vpop.f32.mrf.mxu0 }
 0x88d   :  { %v1611_v53 = vmul.f32 0.35355338, %v1493_v51 }
 0x88e   :  { %v6604_v54 = vpop.f32.mrf.mxu0 }
 0x88f   :  { %v1617_v58 = vadd.f32 %v1611_v53, %v7851_v57 }
 0x891   :  { %v1623_v59 = vsel %vm658_vm7, %v1617_v58, -inf }
 0x892   :  { %1624 = vmax.xlane.f32.xlu0 %v1623_v59 }
 0x8b1   :  { %v1498_v62 = vpop.f32.mrf.mxu0 }
 0x8b2   :  { %v1612_v63 = vmul.f32 0.35355338, %v1498_v62 }
 0x8b3   :  { %v6607_v3 = vpop.f32.mrf.mxu0 }
 0x8b4   :  { %v1618_v6 = vadd.f32 %v1612_v63, %v7851_v57 }
 0x8b5   :  { %v1503_v9 = vpop.f32.mrf.mxu0 }
 0x8b6   :  { %v1613_v5 = vmul.f32 0.35355338, %v1503_v9  ;;  %v1626_v8 = vsel %vm658_vm7, %v1618_v6, -inf }
 0x8b7   :  { %1627 = vmax.xlane.f32.xlu1 %v1626_v8  ;;  %v6610_v10 = vpop.f32.mrf.mxu0 }
 0x8b8   :  { %v1619_v11 = vadd.f32 %v1613_v5, %v7851_v57 }
 0x8b9   :  { %v8167_v15 = vpop.f32.mrf.mxu1 }
 0x8ba   :  { %v1629_v17 = vsel %vm658_vm7, %v1619_v11, -inf }
 0x8bb   :  { %v6589_v19 = vpop.f32.mrf.mxu1  ;;  %1630 = vmax.xlane.f32.xlu0 %v1629_v17 }
 0x8bd   :  { %v8170_v22 = vpop.f32.mrf.mxu1 }
 0x8bf   :  { %v6592_v7 = vpop.f32.mrf.mxu1 }
 0x8c8   :  { %1999 = vrot.lane.b32.xlu1 %v7802_v40, %s7453_s4 }
 0x8ee   :  { %v8174_v24 = vpop.f32.mrf.mxu1 }
 0x8f0   :  { %v6595_v25 = vpop.f32.mrf.mxu1 }
 0x8f2   :  { %v1597_v26 = vpop.f32.mrf.mxu1 }
 0x8f3   :  { %v1614_v14 = vmul.f32 0.35355338, %v1597_v26 }
 0x8f4   :  { %v6619_v13 = vpop.f32.mrf.mxu1 }
 0x8f5   :  { %v1620_v27 = vadd.f32 %v1614_v14, %v7851_v57 }
 0x8f6   :  { %v1602_v30 = vpop.f32.mrf.mxu1 }
 0x8f7   :  { %v1615_v31 = vmul.f32 0.35355338, %v1602_v30  ;;  %v1632_v32 = vsel %vm658_vm7, %v1620_v27, -inf }
 0x8f8   :  { %1633 = vmax.xlane.f32.xlu0 %v1632_v32  ;;  %v6622_v33 = vpop.f32.mrf.mxu1 }
 0x8f9   :  { %v1621_v20 = vadd.f32 %v1615_v31, %v7851_v57 }
 0x8fa   :  { %v1607_v34 = vpop.f32.mrf.mxu1 }
 0x8fb   :  { %v1616_v29 = vmul.f32 0.35355338, %v1607_v34  ;;  %v1635_v39 = vsel %vm658_vm7, %v1621_v20, -inf }
 0x8fc   :  { %1636 = vmax.xlane.f32.xlu0 %v1635_v39  ;;  %v6625_v44 = vpop.f32.mrf.mxu1 }
 0x8fd   :  { %v1622_v48 = vadd.f32 %v1616_v29, %v7851_v57 }
 0x8ff   :  { %v1638_v50 = vsel %vm658_vm7, %v1622_v48, -inf }
 0x900   :  { %1639 = vmax.xlane.f32.xlu1 %v1638_v50 }
 0x912   :  { %1891 = vrot.lane.b32.xlu0 %v7790_v36, %s7453_s4 }
 0x91b   :  { %v1625_v51 = vpop.xlane.xlu0 %1624 }
 0x91c   :  { %v1641_v53 = vsub.f32 %v1617_v58, %v1625_v51 }
 0x91e   :  { %v1647_v54 = vmul.f32 1.442695, %v1641_v53 }
 0x920   :  { %7212 = vpow2.f32 %v1647_v54 }
 0x92d   :  { %v7213_v59 = vpop.eup %7212 }
 0x92e   :  { %v1659_v62 = vsel %vm658_vm7, %v7213_v59, 0.0 }
 0x931   :  { %1660 = vadd.xlane.f32.xlu0 %v1659_v62 }
 0x940   :  { %v1628_v63 = vpop.xlane.xlu1 %1627 }
 0x941   :  { %v1642_v3 = vsub.f32 %v1618_v6, %v1628_v63 }
 0x943   :  { %v1649_v9 = vmul.f32 1.442695, %v1642_v3 }
 0x944   :  { %v1631_v5 = vpop.xlane.xlu0 %1630 }
 0x945   :  { %7214 = vpow2.f32 %v1649_v9  ;;  %v1643_v8 = vsub.f32 %v1619_v11, %v1631_v5 }
 0x947   :  { %v1651_v10 = vmul.f32 1.442695, %v1643_v8 }
 0x949   :  { %7216 = vpow2.f32 %v1651_v10 }
 0x952   :  { %v7215_v17 = vpop.eup %7214 }
 0x953   :  { %v1662_v19 = vsel %vm658_vm7, %v7215_v17, 0.0 }
 0x954   :  { %1663 = vadd.xlane.f32.xlu1 %v1662_v19 }
 0x956   :  { %v7217_v7 = vpop.eup %7216 }
 0x957   :  { %v1665_v58 = vsel %vm658_vm7, %v7217_v7, 0.0 }
 0x958   :  { %1666 = vadd.xlane.f32.xlu0 %v1665_v58 }
 0x965   :  { %1997 = vrot.lane.b32.xlu1 %v7804_v42, %s7453_s4 }
 0x96e   :  { %1885 = vrot.lane.b32.xlu0 %v7790_v36, %s7454_s28 }
 0x981   :  { %v1634_v6 = vpop.xlane.xlu0 %1633 }
 0x982   :  { %v1644_v25 = vsub.f32 %v1620_v27, %v1634_v6  ;;  %v2000_v27 = vpop.permute.xlu1 %1999 }
 0x984   :  { %v1653_v11 = vmul.f32 1.442695, %v1644_v25 }
 0x985   :  { %v1637_v26 = vpop.xlane.xlu0 %1636 }
 0x986   :  { %7218 = vpow2.f32 %v1653_v11  ;;  %v1645_v14 = vsub.f32 %v1621_v20, %v1637_v26 }
 0x988   :  { %v1655_v13 = vmul.f32 1.442695, %v1645_v14 }
 0x989   :  { %v1640_v34 = vpop.xlane.xlu1 %1639  ;;  %v1892_v39 = vpop.permute.xlu0 %1891 }
 0x98a   :  { %7220 = vpow2.f32 %v1655_v13  ;;  %v1646_v20 = vsub.f32 %v1622_v48, %v1640_v34 }
 0x98c   :  { %v1657_v29 = vmul.f32 1.442695, %v1646_v20 }
 0x98e   :  { %7222 = vpow2.f32 %v1657_v29 }
 0x993   :  { %v7219_v30 = vpop.eup %7218 }
 0x994   :  { %v1668_v31 = vsel %vm658_vm7, %v7219_v30, 0.0 }
 0x995   :  { %1669 = vadd.xlane.f32.xlu1 %v1668_v31 }
 0x997   :  { %v8192_v32 = vpop.eup %7220 }
 0x998   :  { %v1671_v33 = vsel %vm658_vm7, %v8192_v32, 0.0 }
 0x999   :  { %1672 = vadd.xlane.f32.xlu0 %v1671_v33 }
 0x99b   :  { %v7223_v50 = vpop.eup %7222 }
 0x99c   :  { %v1674_v54 = vsel %vm658_vm7, %v7223_v50, 0.0 }
 0x9a6   :  { %1995 = vrot.lane.b32.xlu1 %v7808_v43, %s7453_s4 }
 0x9af   :  { %1887 = vrot.lane.b32.xlu0 %v7786_v35, %s7454_s28 }
 0x9b3   :  { %1889 = vrot.lane.b32.xlu0 %v7796_v38, %s7454_s28 }
 0x9b7   :  { %1991 = vrot.lane.b32.xlu0 %v7804_v42, %s7454_s28 }
 0x9ba   :  { %v1661_v44 = vpop.xlane.xlu0 %1660 }
 0x9bb   :  { %7224 = vrcp.f32 %v1661_v44 }
 0x9c8   :  { %v7225_v51 = vpop.eup %7224 }
 0x9c9   :  { %v1683_v53 = vmul.f32 %v7225_v51, %v7213_v59 }
 0x9ca   :  { %1675 = vadd.xlane.f32.xlu1 %v1674_v54 }
 0x9cb   :  { %6633 = vmatmul.mubr.msk.f32.vlgmr.msra.gmra.mxu0 %vm658_vm7, %v1683_v53 }
 0x9cc   :  { %6657 = vmatpush3.xpose.msk.msra.mxu0 %vm452_vm5, %v8140_v28  ;;  %6635 = vmatprep.mubr.msk.f32.mxu0 %vm7444_vm4, %v7442_v1 }
 0x9cd   :  { %6658 = vmatprep.subr.mxu0 %v7442_v1 }
 0x9d0   :  { %6659 = vmatpush3.xpose.msk.msra.mxu0 %vm452_vm5, %v8146_v37 }
 0x9d1   :  { %6660 = vmatprep.subr.mxu0 %v7442_v1 }
 0x9d4   :  { %6661 = vmatpush3.xpose.msk.msra.mxu0 %vm452_vm5, %v1892_v39 }
 0x9d5   :  { %6686 = vmatprep.subr.mxu0 %v7442_v1 }
 0x9db   :  { %1989 = vrot.lane.b32.xlu1 %v7808_v43, %s7454_s28 }
 0x9dd   :  { %v1664_v48 = vpop.xlane.xlu1 %1663 }
 0x9de   :  { %7226 = vrcp.f32 %v1664_v48 }
 0x9df   :  { %1993 = vrot.lane.b32.xlu1 %v7802_v40, %s7454_s28 }
 0x9e1   :  { %v1667_v28 = vpop.xlane.xlu0 %1666  ;;  %v1998_v9 = vpop.permute.xlu1 %1997 }
 0x9e2   :  { %7228 = vrcp.f32 %v1667_v28 }
 0x9e5   :  { %v1886_v3 = vpop.permute.xlu0 %1885 }
 0x9eb   :  { %v7227_v59 = vpop.eup %7226 }
 0x9ec   :  { %v1684_v62 = vmul.f32 %v7227_v59, %v7215_v17 }
 0x9ee   :  { %6636 = vmatmul.mubr.msk.f32.gmra.mxu0 %vm658_vm7, %v1684_v62 }
 0x9ef   :  { %v7229_v37 = vpop.eup %7228  ;;  %6638 = vmatprep.mubr.msk.f32.mxu0 %vm7444_vm4, %v7442_v1 }
 0x9f0   :  { %v1685_v63 = vmul.f32 %v7229_v37, %v7217_v7 }
 0x9f2   :  { %6639 = vmatmul.mubr.msk.f32.gmra.mxu0 %vm658_vm7, %v1685_v63 }
 0x9f3   :  { %6662 = vmatprep.mubr.msk.f32.mxu0 %vm7444_vm4, %v7442_v1 }
 0x9f6   :  { %6663 = vmatmul.mubr.msk.f32.vlgmr.msra.gmra.mxu0 %vm452_vm5, %v1886_v3 }
 0x9f7   :  { %6665 = vmatprep.mubr.msk.f32.mxu0 %vm7444_vm4, %v7442_v1 }
 0xa1e   :  { %v1670_v5 = vpop.xlane.xlu1 %1669 }
 0xa1f   :  { %7230 = vrcp.f32 %v1670_v5 }
 0xa22   :  { %v1673_v8 = vpop.xlane.xlu0 %1672  ;;  %v1996_v25 = vpop.permute.xlu1 %1995 }
 0xa23   :  { %7232 = vrcp.f32 %v1673_v8 }
 0xa26   :  { %v1888_v10 = vpop.permute.xlu0 %1887 }
 0xa27   :  { %6666 = vmatmul.mubr.msk.f32.gmra.mxu0 %vm452_vm5, %v1888_v10 }
 0xa28   :  { %6668 = vmatprep.mubr.msk.f32.mxu0 %vm7444_vm4, %v7442_v1 }
 0xa2a   :  { %v1890_v17 = vpop.permute.xlu0 %1889 }
 0xa2b   :  { %6669 = vmatmul.mubr.msk.f32.gmra.mxu0 %vm452_vm5, %v1890_v17 }
 0xa2c   :  { %v7231_v19 = vpop.eup %7230  ;;  %6692 = vmatprep.mubr.msk.f32.mxu0 %vm7444_vm4, %v7442_v1 }
 0xa2d   :  { %v1686_v7 = vmul.f32 %v7231_v19, %v7219_v30 }
 0xa2e   :  { %v1992_v30 = vpop.permute.xlu0 %1991 }
 0xa2f   :  { %6648 = vmatmul.mubr.msk.f32.vlgmr.msra.gmra.mxu1 %vm658_vm7, %v1686_v7 }
 0xa30   :  { %v7233_v58 = vpop.eup %7232  ;;  %6672 = vmatpush3.xpose.msk.msra.mxu1 %vm452_vm5, %v2000_v27  ;;  %6650 = vmatprep.mubr.msk.f32.mxu1 %vm7444_vm4, %v7442_v1 }
 0xa31   :  { %6673 = vmatprep.subr.mxu1 %v7442_v1  ;;  %v1687_v6 = vmul.f32 %v7233_v58, %v8192_v32 }
 0xa33   :  { %6651 = vmatmul.mubr.msk.f32.gmra.mxu1 %vm658_vm7, %v1687_v6 }
 0xa34   :  { %6674 = vmatpush3.xpose.msk.msra.mxu1 %vm452_vm5, %v1998_v9  ;;  %6653 = vmatprep.mubr.msk.f32.mxu1 %vm7444_vm4, %v7442_v1 }
 0xa35   :  { %6675 = vmatprep.subr.mxu1 %v7442_v1 }
 0xa38   :  { %6676 = vmatpush3.xpose.msk.msra.mxu1 %vm452_vm5, %v1996_v25 }
 0xa39   :  { %6701 = vmatprep.subr.mxu1 %v7442_v1 }
 0xa53   :  { %v1676_v11 = vpop.xlane.xlu1 %1675 }
 0xa54   :  { %7234 = vrcp.f32 %v1676_v11 }
 0xa57   :  { %v1990_v13 = vpop.permute.xlu1 %1989 }
 0xa5b   :  { %v1994_v31 = vpop.permute.xlu1 %1993 }
 0xa61   :  { %v7235_v26 = vpop.eup %7234 }
 0xa62   :  { %v1688_v14 = vmul.f32 %v7235_v26, %v7223_v50 }
 0xa64   :  { %6654 = vmatmul.mubr.msk.f32.gmra.mxu1 %vm658_vm7, %v1688_v14 }
 0xa65   :  { %6677 = vmatprep.mubr.msk.f32.mxu1 %vm7444_vm4, %v7442_v1 }
 0xa68   :  { %6678 = vmatmul.mubr.msk.f32.vlgmr.msra.gmra.mxu1 %vm452_vm5, %v1990_v13 }
 0xa69   :  { %6680 = vmatprep.mubr.msk.f32.mxu1 %vm7444_vm4, %v7442_v1 }
 0xa6c   :  { %6681 = vmatmul.mubr.msk.f32.gmra.mxu1 %vm452_vm5, %v1992_v30 }
 0xa6d   :  { %6683 = vmatprep.mubr.msk.f32.mxu1 %vm7444_vm4, %v7442_v1 }
 0xa70   :  { %6684 = vmatmul.mubr.msk.f32.gmra.mxu1 %vm452_vm5, %v1994_v31 }
 0xa71   :  { %6707 = vmatprep.mubr.msk.f32.mxu1 %vm7444_vm4, %v7442_v1 }
 0xa8b   :  { %v8260_v32 = vpop.f32.mrf.mxu0 }
 0xa8d   :  { %v6634_v33 = vpop.f32.mrf.mxu0 }
 0xaae   :  { %v8262_v27 = vpop.f32.mrf.mxu0 }
 0xab0   :  { %v6637_v34 = vpop.f32.mrf.mxu0 }
 0xab2   :  { %v8264_v20 = vpop.f32.mrf.mxu0 }
 0xab4   :  { %v6640_v29 = vpop.f32.mrf.mxu0 }
 0xab6   :  { %v1975_v39 = vpop.f32.mrf.mxu0 }
 0xab7   :  { %v2093_v44 = vmul.f32 0.35355338, %v1975_v39 }
 0xab8   :  { %v6664_v50 = vpop.f32.mrf.mxu0 }
 0xab9   :  { %v2099_v51 = vadd.f32 %v2093_v44, %v7851_v57 }
 0xabb   :  { %v2105_v53 = vsel %vm658_vm7, %v2099_v51, -inf }
 0xabc   :  { %2106 = vmax.xlane.f32.xlu0 %v2105_v53 }
 0xae7   :  { %v1980_v54 = vpop.f32.mrf.mxu0 }
 0xae8   :  { %v2094_v48 = vmul.f32 0.35355338, %v1980_v54 }
 0xae9   :  { %v6667_v28 = vpop.f32.mrf.mxu0 }
 0xaea   :  { %v2100_v59 = vadd.f32 %v2094_v48, %v7851_v57 }
 0xaeb   :  { %v1985_v62 = vpop.f32.mrf.mxu0 }
 0xaec   :  { %v2095_v37 = vmul.f32 0.35355338, %v1985_v62  ;;  %v2108_v63 = vsel %vm658_vm7, %v2100_v59, -inf }
 0xaed   :  { %2109 = vmax.xlane.f32.xlu1 %v2108_v63  ;;  %v6670_v3 = vpop.f32.mrf.mxu0 }
 0xaee   :  { %v2101_v9 = vadd.f32 %v2095_v37, %v7851_v57 }
 0xaef   :  { %v8271_v5 = vpop.f32.mrf.mxu1 }
 0xaf0   :  { %v2111_v8 = vsel %vm658_vm7, %v2101_v9, -inf }
 0xaf1   :  { %v6649_v10 = vpop.f32.mrf.mxu1  ;;  %2112 = vmax.xlane.f32.xlu0 %v2111_v8 }
 0xaf3   :  { %v8274_v17 = vpop.f32.mrf.mxu1 }
 0xaf5   :  { %v6652_v19 = vpop.f32.mrf.mxu1 }
 0xb24   :  { %v8276_v7 = vpop.f32.mrf.mxu1 }
 0xb26   :  { %v6655_v58 = vpop.f32.mrf.mxu1 }
 0xb28   :  { %v2079_v6 = vpop.f32.mrf.mxu1 }
 0xb29   :  { %v2096_v25 = vmul.f32 0.35355338, %v2079_v6 }
 0xb2a   :  { %v6679_v11 = vpop.f32.mrf.mxu1 }
 0xb2b   :  { %v2102_v26 = vadd.f32 %v2096_v25, %v7851_v57 }
 0xb2c   :  { %v2084_v14 = vpop.f32.mrf.mxu1 }
 0xb2d   :  { %v2097_v13 = vmul.f32 0.35355338, %v2084_v14  ;;  %v2114_v30 = vsel %vm658_vm7, %v2102_v26, -inf }
 0xb2e   :  { %2115 = vmax.xlane.f32.xlu0 %v2114_v30  ;;  %v6682_v31 = vpop.f32.mrf.mxu1 }
 0xb2f   :  { %v2103_v33 = vadd.f32 %v2097_v13, %v7851_v57 }
 0xb30   :  { %v2089_v34 = vpop.f32.mrf.mxu1 }
 0xb31   :  { %v2098_v29 = vmul.f32 0.35355338, %v2089_v34  ;;  %v2117_v39 = vsel %vm658_vm7, %v2103_v33, -inf }
 0xb32   :  { %2118 = vmax.xlane.f32.xlu0 %v2117_v39  ;;  %v6685_v44 = vpop.f32.mrf.mxu1 }
 0xb33   :  { %v2104_v50 = vadd.f32 %v2098_v29, %v7851_v57 }
 0xb35   :  { %v2120_v53 = vsel %vm658_vm7, %v2104_v50, -inf }
 0xb36   :  { %2121 = vmax.xlane.f32.xlu1 %v2120_v53 }
 0xb45   :  { %v2107_v54 = vpop.xlane.xlu0 %2106 }
 0xb46   :  { %v2123_v48 = vsub.f32 %v2099_v51, %v2107_v54 }
 0xb47   :  { %2173 = vrot.lane.b32.xlu1 %v7786_v35, %s9401_s1 }
 0xb48   :  { %2175 = vrot.lane.b32.xlu0 %v7796_v38, %s9401_s1  ;;  %v2129_v28 = vmul.f32 1.442695, %v2123_v48 }
 0xb4a   :  { %7236 = vpow2.f32 %v2129_v28 }
 0xb4b   :  { %2171 = vrot.lane.b32.xlu1 %v7790_v36, %s9401_s1 }
 0xb4f   :  { %2273 = vrot.lane.b32.xlu1 %v7802_v40, %s9401_s1 }
 0xb57   :  { %v8292_v62 = vpop.eup %7236 }
 0xb58   :  { %v2141_v37 = vsel %vm658_vm7, %v8292_v62, 0.0 }
 0xb67   :  { %2142 = vadd.xlane.f32.xlu0 %v2141_v37 }
 0xb76   :  { %v2110_v35 = vpop.xlane.xlu1 %2109 }
 0xb77   :  { %v2124_v63 = vsub.f32 %v2100_v59, %v2110_v35 }
 0xb79   :  { %v2131_v3 = vmul.f32 1.442695, %v2124_v63 }
 0xb7a   :  { %v2113_v38 = vpop.xlane.xlu0 %2112 }
 0xb7b   :  { %7238 = vpow2.f32 %v2131_v3  ;;  %v2125_v8 = vsub.f32 %v2101_v9, %v2113_v38 }
 0xb7d   :  { %v2133_v10 = vmul.f32 1.442695, %v2125_v8 }
 0xb7f   :  { %7240 = vpow2.f32 %v2133_v10 }
 0xb88   :  { %v7239_v36 = vpop.eup %7238 }
 0xb89   :  { %v2144_v51 = vsel %vm658_vm7, %v7239_v36, 0.0 }
 0xb8a   :  { %2145 = vadd.xlane.f32.xlu1 %v2144_v51  ;;  %v2460_v51 = vld [vmem:[%s9392_s7 + $0x10] sm:$0xff] }
 0xb8c   :  { %v7241_v40 = vpop.eup %7240 }
 0xb8d   :  { %v2147_v19 = vsel %vm658_vm7, %v7241_v40, 0.0 }
 0xb8e   :  { %2148 = vadd.xlane.f32.xlu0 %v2147_v19  ;;  %v2458_v19 = vld [vmem:[%s9392_s7] sm:$0xff] }
 0xbb7   :  { %v2116_v58 = vpop.xlane.xlu0 %2115 }
 0xbb8   :  { %v2126_v6 = vsub.f32 %v2102_v26, %v2116_v58 }
 0xbba   :  { %v2135_v25 = vmul.f32 1.442695, %v2126_v6 }
 0xbbb   :  { %v2119_v11 = vpop.xlane.xlu0 %2118 }
 0xbbc   :  { %7242 = vpow2.f32 %v2135_v25  ;;  %v2127_v59 = vsub.f32 %v2103_v33, %v2119_v11 }
 0xbbe   :  { %v2137_v14 = vmul.f32 1.442695, %v2127_v59 }
 0xbbf   :  { %v2122_v13 = vpop.xlane.xlu1 %2121  ;;  %v2176_v30 = vpop.permute.xlu0 %2175 }
 0xbc0   :  { %7244 = vpow2.f32 %v2137_v14  ;;  %v2128_v9 = vsub.f32 %v2104_v50, %v2122_v13  ;;  %6687 = vmatpush3.msra.mxu0 %v2176_v30 }
 0xbc1   :  { %6688 = vmatprep.subr.mxu0 %v7442_v1 }
 0xbc2   :  { %v2139_v31 = vmul.f32 1.442695, %v2128_v9 }
 0xbc3   :  { %v2174_v34 = vpop.permute.xlu1 %2173 }
 0xbc4   :  { %7246 = vpow2.f32 %v2139_v31  ;;  %6689 = vmatpush3.msra.mxu0 %v2174_v34 }
 0xbc5   :  { %6690 = vmatprep.subr.mxu0 %v7442_v1 }
 0xbc7   :  { %v2172_v29 = vpop.permute.xlu1 %2171 }
 0xbc8   :  { %6691 = vmatpush3.msra.mxu0 %v2172_v29 }
 0xbc9   :  { %v7243_v26 = vpop.eup %7242 }
 0xbca   :  { %v2150_v39 = vsel %vm658_vm7, %v7243_v26, 0.0 }
 0xbcb   :  { %v2274_v33 = vpop.permute.xlu1 %2273  ;;  %2151 = vadd.xlane.f32.xlu1 %v2150_v39 }
 0xbcc   :  { %6702 = vmatpush3.msra.mxu1 %v2274_v33 }
 0xbcd   :  { %v7245_v44 = vpop.eup %7244  ;;  %6703 = vmatprep.subr.mxu1 %v7442_v1 }
 0xbce   :  { %v2153_v50 = vsel %vm658_vm7, %v7245_v44, 0.0 }
 0xbcf   :  { %2154 = vadd.xlane.f32.xlu0 %v2153_v50 }
 0xbd1   :  { %v7247_v53 = vpop.eup %7246 }
 0xbd2   :  { %v2156_v54 = vsel %vm658_vm7, %v7247_v53, 0.0 }
 0xbd3   :  { %2157 = vadd.xlane.f32.xlu1 %v2156_v54 }
 0xbe4   :  { %2269 = vrot.lane.b32.xlu1 %v7808_v43, %s9401_s1 }
 0xbe5   :  { %2271 = vrot.lane.b32.xlu0 %v7804_v42, %s9401_s1  ;;  %s7459_s1 = smov [#allocation3]  }
 0xbe6   :  { %s5926_s17 = sshll.u32 %s7459_s1, 4  ;;  %s5927_s17 = int_to_ptr.vmem [resolvable:$true] %s5926_s17 }
 0xbe7   :  { %p7425_p1 = scmp.lt.s32.totalorder %s5927_s17, %s5927_s17 }
 0xbe8   :  { %2375 = vrot.lane.b32.xlu1 %v8158_v45, %s7456_s29 }
 0xbe9   :  { %2373 = vrot.lane.b32.xlu0 %v8156_v41, %s7456_s29 }
 0xbec   :  { %2399 = vrot.lane.b32.xlu1 %v8262_v27, %s7457_s30 }
 0xbed   :  { %2397 = vrot.lane.b32.xlu0 %v8260_v32, %s7457_s30 }
 0xbf0   :  { %2379 = vrot.lane.b32.xlu1 %v8167_v15, %s7456_s29  ;;  %v2143_v43 = vpop.xlane.xlu0 %2142 }
 0xbf1   :  { %7248 = vrcp.f32 %v2143_v43  ;;  %2377 = vrot.lane.b32.xlu0 %v8160_v49, %s7456_s29 }
 0xbf4   :  { %2403 = vrot.lane.b32.xlu1 %v8271_v5, %s7457_s30 }
 0xbf5   :  { %2401 = vrot.lane.b32.xlu0 %v8264_v20, %s7457_s30 }
 0xbfe   :  { %v7249_v42 = vpop.eup %7248 }
 0xbff   :  { %v2165_v41 = vmul.f32 %v7249_v42, %v8292_v62 }
 0xc01   :  { %6693 = vmatmul.mubr.msk.f32.vlgmr.msra.gmra.mxu0 %vm658_vm7, %v2165_v41 }
 0xc02   :  { %6695 = vmatprep.mubr.msk.f32.mxu0 %vm7444_vm4, %v7442_v1 }
 0xc13   :  { %v2146_v45 = vpop.xlane.xlu1 %2145 }
 0xc14   :  { %7250 = vrcp.f32 %v2146_v45 }
 0xc17   :  { %v2149_v15 = vpop.xlane.xlu0 %2148 }
 0xc18   :  { %7252 = vrcp.f32 %v2149_v15 }
 0xc21   :  { %v7251_v32 = vpop.eup %7250 }
 0xc22   :  { %v2166_v49 = vmul.f32 %v7251_v32, %v7239_v36  ;;  %v2461_v36 = vld [vmem:[%s9392_s7 + $0x18] sm:$0xff] }
 0xc23   :  { %6716 = vmatprep.subr.mxu0 %v2461_v36 }
 0xc24   :  { %6696 = vmatmul.mubr.msk.f32.gmra.mxu0 %vm658_vm7, %v2166_v49 }
 0xc25   :  { %v7253_v27 = vpop.eup %7252  ;;  %6698 = vmatprep.mubr.msk.f32.mxu0 %vm7444_vm4, %v7442_v1  ;;  %6717 = vmatpush3.msra.mxu0 %v2461_v36 }
 0xc26   :  { %v2167_v20 = vmul.f32 %v7253_v27, %v7241_v40  ;;  %v2459_v40 = vld [vmem:[%s9392_s7 + $0x8] sm:$0xff]  ;;  %6718 = vmatprep.subr.mxu0 %v2460_v51 }
 0xc27   :  { %6719 = vmatpush3.msra.mxu0 %v2460_v51  ;;  %v8400_v51 = vld [vmem:[%s9393_s8] sm:$0x3f] }
 0xc28   :  { %6699 = vmatmul.mubr.msk.f32.gmra.mxu0 %vm658_vm7, %v2167_v20  ;;  %6720 = vmatprep.subr.mxu0 %v2459_v40 }
 0xc29   :  { %6721 = vmatpush3.msra.mxu0 %v2459_v40 }
 0xc2a   :  { %6722 = vmatprep.subr.mxu0 %v2458_v19 }
 0xc2b   :  { %6723 = vmatpush3.msra.mxu0 %v2458_v19 }
 0xc54   :  { %v2152_v5 = vpop.xlane.xlu1 %2151 }
 0xc55   :  { %7254 = vrcp.f32 %v2152_v5 }
 0xc58   :  { %v2155_v48 = vpop.xlane.xlu0 %2154 }
 0xc59   :  { %7256 = vrcp.f32 %v2155_v48 }
 0xc5c   :  { %v2158_v28 = vpop.xlane.xlu1 %2157  ;;  %v2272_v62 = vpop.permute.xlu0 %2271 }
 0xc5d   :  { %7258 = vrcp.f32 %v2158_v28  ;;  %6704 = vmatpush3.msra.mxu1 %v2272_v62 }
 0xc5e   :  { %6705 = vmatprep.subr.mxu1 %v7442_v1 }
 0xc60   :  { %v2270_v37 = vpop.permute.xlu1 %2269  ;;  %v2374_v13 = vpop.permute.xlu0 %2373 }
 0xc61   :  { %6706 = vmatpush3.msra.mxu1 %v2270_v37  ;;  %v2439_v33 = vsel %vm452_vm5, %v8011_v47, %v2374_v13 }
 0xc62   :  { %v7255_v35 = vpop.eup %7254 }
 0xc63   :  { %v2168_v63 = vmul.f32 %v7255_v35, %v7243_v26 }
 0xc64   :  { %v2398_v30 = vpop.permute.xlu0 %2397 }
 0xc65   :  { %6708 = vmatmul.mubr.msk.f32.vlgmr.msra.gmra.mxu1 %vm658_vm7, %v2168_v63 }
 0xc66   :  { %v7257_v3 = vpop.eup %7256  ;;  %6710 = vmatprep.mubr.msk.f32.mxu1 %vm7444_vm4, %v7442_v1 }
 0xc67   :  { %v2169_v38 = vmul.f32 %v7257_v3, %v7245_v44  ;;  %v2446_v44 = vsel %vm2445_vm8, %v2439_v33, %v2398_v30 }
 0xc68   :  { %v2378_v29 = vpop.permute.xlu0 %2377 }
 0xc69   :  { %6711 = vmatmul.mubr.msk.f32.gmra.mxu1 %vm658_vm7, %v2169_v38  ;;  %v2441_v47 = vsel %vm452_vm5, %v8015_v16, %v2378_v29 }
 0xc6a   :  { %v7259_v8 = vpop.eup %7258  ;;  %6713 = vmatprep.mubr.msk.f32.mxu1 %vm7444_vm4, %v7442_v1 }
 0xc6b   :  { %v2170_v10 = vmul.f32 %v7259_v8, %v7247_v53  ;;  %v2376_v53 = vpop.permute.xlu1 %2375 }
 0xc6d   :  { %6714 = vmatmul.mubr.msk.f32.gmra.mxu1 %vm658_vm7, %v2170_v10 }
 0xc6f   :  { %v2400_v54 = vpop.permute.xlu1 %2399 }
 0xc73   :  { %v2380_v43 = vpop.permute.xlu1 %2379 }
 0xc77   :  { %v2404_v42 = vpop.permute.xlu1 %2403 }
 0xcc1   :  { %v2255_v58 = vpop.f32.mrf.mxu0 }
 0xcc2   :  { %2421 = vrot.lane.b32.xlu0 %v2255_v58, %s9403_s16 }
 0xcc3   :  { %v6694_v6 = vpop.f32.mrf.mxu0 }
 0xce4   :  { %v2260_v25 = vpop.f32.mrf.mxu0 }
 0xce5   :  { %2423 = vrot.lane.b32.xlu1 %v2260_v25, %s9403_s16 }
 0xce6   :  { %v6697_v11 = vpop.f32.mrf.mxu0 }
 0xce8   :  { %v2265_v59 = vpop.f32.mrf.mxu0 }
 0xce9   :  { %2425 = vrot.lane.b32.xlu0 %v2265_v59, %s9403_s16 }
 0xcea   :  { %v6700_v14 = vpop.f32.mrf.mxu0 }
 0xced   :  { %2381 = vrot.lane.b32.xlu0 %v8170_v22, %s7456_s29 }
 0xcf1   :  { %2405 = vrot.lane.b32.xlu0 %v8274_v17, %s7457_s30  ;;  %v2402_v17 = vpop.permute.xlu0 %2401 }
 0xcf2   :  { %v2448_v32 = vsel %vm2445_vm8, %v2441_v47, %v2402_v17  ;;  %v2684_v47 = vld [vmem:[%s9394_s9 + $0x8] sm:$0xff] }
 0xd25   :  { %v2353_v9 = vpop.f32.mrf.mxu1 }
 0xd26   :  { %2427 = vrot.lane.b32.xlu1 %v2353_v9, %s9403_s16 }
 0xd27   :  { %v6709_v31 = vpop.f32.mrf.mxu1 }
 0xd29   :  { %v2358_v34 = vpop.f32.mrf.mxu1 }
 0xd2a   :  { %2383 = vrot.lane.b32.xlu1 %v8174_v24, %s7456_s29  ;;  %2429 = vrot.lane.b32.xlu0 %v2358_v34, %s9403_s16 }
 0xd2b   :  { %v6712_v26 = vpop.f32.mrf.mxu1 }
 0xd2d   :  { %v2363_v39 = vpop.f32.mrf.mxu1 }
 0xd2e   :  { %2407 = vrot.lane.b32.xlu1 %v8276_v7, %s7457_s30  ;;  %v2440_v7 = vsel %vm452_vm5, %v8013_v12, %v2376_v53  ;;  %v2442_v12 = vsel %vm452_vm5, %v8017_v18, %v2380_v43 }
 0xd2f   :  { %v6715_v22 = vpop.f32.mrf.mxu1  ;;  %v2447_v41 = vsel %vm2445_vm8, %v2440_v7, %v2400_v54  ;;  %v2449_v5 = vsel %vm2445_vm8, %v2442_v12, %v2404_v42 }
 0xd32   :  { %2431 = vrot.lane.b32.xlu1 %v2363_v39, %s9403_s16  ;;  %s7420_s16 = scalar_lea.vmem %s5927_s17, 32 }
 0xd33   :  { %p7421_p0 = scmp.ne.s32.totalorder %s5927_s17, %s7420_s16  ;;  %p7426_p2 = scmp.lt.s32.totalorder %s7420_s16, %s7420_s16 }
 0xd34   :  { %v2422_v50 = vpop.permute.xlu0 %2421 }
 0xd35   :  { %v2452_v24 = vsel %vm658_vm7, %v2446_v44, %v2422_v50  ;;  %p7427_p3 = por %p7426_p2, %p7425_p1 }
 0xd36   :  { %6724 = vmatprep.mubr.msk.f32.mxu0 %vm192_vm3, %v2452_v24 }
 0xd37   :  { %p7428_p4 = pnand %p7427_p3, %p7421_p0 }
 0xd57   :  { %v2424_v45 = vpop.permute.xlu1 %2423 }
 0xd58   :  { %v2453_v15 = vsel %vm658_vm7, %v2447_v41, %v2424_v45  ;;  %v2686_v45 = vld [vmem:[%s9394_s9 + $0x18] sm:$0xff] }
 0xd59   :  { %6725 = vmatmul.mubr.msk.f32.vlgmr.msra.gmra.mxu0 %vm192_vm3, %v2453_v15  ;;  %6733 = vmatprep.subr.mxu1 %v2686_v45  ;;  %v2685_v15 = vld [vmem:[%s9394_s9 + $0x10] sm:$0xff] }
 0xd5a   :  { %6734 = vmatpush3.msra.mxu1 %v2686_v45 }
 0xd5b   :  { %v2426_v49 = vpop.permute.xlu0 %2425  ;;  %6735 = vmatprep.subr.mxu1 %v2685_v15 }
 0xd5c   :  { %v2454_v27 = vsel %vm658_vm7, %v2448_v32, %v2426_v49  ;;  %6736 = vmatpush3.msra.mxu1 %v2685_v15  ;;  %v2683_v32 = vld [vmem:[%s9394_s9] sm:$0xff] }
 0xd5d   :  { %6727 = vmatprep.mubr.msk.f32.mxu0 %vm192_vm3, %v2454_v27  ;;  %6737 = vmatprep.subr.mxu1 %v2684_v47 }
 0xd5e   :  { %6738 = vmatpush3.msra.mxu1 %v2684_v47 }
 0xd5f   :  { %v2382_v20 = vpop.permute.xlu0 %2381  ;;  %6739 = vmatprep.subr.mxu1 %v2683_v32 }
 0xd60   :  { %v2443_v16 = vsel %vm452_vm5, %v8019_v21, %v2382_v20  ;;  %v2464_v21 = vsub.s32 2, %v7760_v52  ;;  %6740 = vmatpush3.msra.mxu1 %v2683_v32 }
 0xd62   :  { %v2465_v40 = vrot.slane %v8400_v51, %v2464_v21 }
 0xd63   :  { %v2406_v48 = vpop.permute.xlu0 %2405 }
 0xd64   :  { %v2450_v37 = vsel %vm2445_vm8, %v2443_v16, %v2406_v48 }
 0xd98   :  { %v2428_v28 = vpop.permute.xlu1 %2427 }
 0xd99   :  { %v2455_v62 = vsel %vm658_vm7, %v2449_v5, %v2428_v28 }
 0xd9a   :  { %6728 = vmatmul.mubr.msk.f32.gmra.mxu0 %vm192_vm3, %v2455_v62 }
 0xd9c   :  { %v2384_v35 = vpop.permute.xlu1 %2383  ;;  %v2430_v63 = vpop.permute.xlu0 %2429 }
 0xd9d   :  { %v2456_v3 = vsel %vm658_vm7, %v2450_v37, %v2430_v63  ;;  %v2444_v38 = vsel %vm452_vm5, %v8021_v23, %v2384_v35 }
 0xd9e   :  { %6730 = vmatprep.mubr.msk.f32.mxu0 %vm192_vm3, %v2456_v3 }
 0xda0   :  { %v2408_v18 = vpop.permute.xlu1 %2407 }
 0xda1   :  { %v2451_v8 = vsel %vm2445_vm8, %v2444_v38, %v2408_v18 }
 0xda4   :  { %v2432_v10 = vpop.permute.xlu1 %2431 }
 0xda5   :  { %v2457_v36 = vsel %vm658_vm7, %v2451_v8, %v2432_v10 }
 0xda6   :  { %6731 = vmatmul.mubr.msk.f32.gmra.mxu0 %vm192_vm3, %v2457_v36 }
 0xe19   :  { %v6726_v19 = vpop.f32.mrf.mxu0 }
 0xe1a   :  { %v2556_v23 = vadd.f32 %v6726_v19, %v2465_v40 }
 0xe1b   :  { %v2550_v58 = vpop.f32.mrf.mxu0 }
 0xe1c   :  { %v8406_v6 = vadd.f32 %v2556_v23, %v7692_v56  ;;  %v2551_v25 = vadd.f32 %v2550_v58, %v2465_v40 }
 0xe1e   :  { %v8409_v11 = vadd.f32 %v2551_v25, %v7679_v46  ;;  %v2588_v59 = vsel %vm192_vm3, %v8406_v6, 0.0 }
 0xe1f   :  { %2589 = vadd.xlane.f32.xlu1 %v2588_v59 }
 0xe20   :  { %v2585_v14 = vsel %vm192_vm3, %v8409_v11, 0.0 }
 0xe21   :  { %2586 = vadd.xlane.f32.xlu0 %v2585_v14 }
 0xe5a   :  { %v6729_v13 = vpop.f32.mrf.mxu0 }
 0xe5b   :  { %v2566_v9 = vadd.f32 %v6729_v13, %v2465_v40 }
 0xe5c   :  { %v2560_v30 = vpop.f32.mrf.mxu0 }
 0xe5d   :  { %v2561_v31 = vadd.f32 %v2560_v30, %v2465_v40  ;;  %v8419_v56 = vadd.f32 %v2566_v9, %v7698_v60  ;;  %v2665_v30 = vsub.s32 3, %v7760_v52 }
 0xe5f   :  { %v8416_v34 = vadd.f32 %v2561_v31, %v7690_v55  ;;  %v2594_v29 = vsel %vm192_vm3, %v8419_v56, 0.0  ;;  %v2666_v31 = vrot.slane %v8400_v51, %v2665_v30 }
 0xe61   :  { %v2591_v46 = vsel %vm192_vm3, %v8416_v34, 0.0 }
 0xe62   :  { %2592 = vadd.xlane.f32.xlu0 %v2591_v46  ;;  %v2675_v46 = vsub.s32 4, %v7760_v52 }
 0xe66   :  { %2595 = vadd.xlane.f32.xlu0 %v2594_v29  ;;  %v6732_v26 = vpop.f32.mrf.mxu0 }
 0xe67   :  { %v2576_v39 = vadd.f32 %v6732_v26, %v2465_v40 }
 0xe68   :  { %v2570_v22 = vpop.f32.mrf.mxu0 }
 0xe69   :  { %v8426_v17 = vadd.f32 %v2576_v39, %v7702_v0  ;;  %v2571_v33 = vadd.f32 %v2570_v22, %v2465_v40 }
 0xe6b   :  { %v8429_v55 = vadd.f32 %v2571_v33, %v7704_v2  ;;  %v2600_v60 = vsel %vm192_vm3, %v8426_v17, 0.0  ;;  %v2676_v33 = vrot.slane %v8400_v51, %v2675_v46 }
 0xe6c   :  { %2601 = vadd.xlane.f32.xlu1 %v2600_v60 }
 0xe6d   :  { %v2597_v44 = vsel %vm192_vm3, %v8429_v55, 0.0 }
 0xe6e   :  { %2598 = vadd.xlane.f32.xlu0 %v2597_v44 }
 0xea8   :  { %v2590_v50 = vpop.xlane.xlu1 %2589 }
 0xea9   :  { %v2604_v24 = vmul.f32 0.03125, %v2590_v50 }
 0xeaa   :  { %v2587_v53 = vpop.xlane.xlu0 %2586 }
 0xeab   :  { %v2610_v54 = vsub.f32 %v8406_v6, %v2604_v24  ;;  %v2603_v43 = vmul.f32 0.03125, %v2587_v53 }
 0xead   :  { %v2609_v0 = vsub.f32 %v8409_v11, %v2603_v43  ;;  %v2616_v42 = vmul.f32 %v2610_v54, %v2610_v54 }
 0xeaf   :  { %v2624_v2 = vsel %vm192_vm3, %v2616_v42, 0.0  ;;  %v2615_v7 = vmul.f32 %v2609_v0, %v2609_v0 }
 0xeb0   :  { %2625 = vadd.xlane.f32.xlu1 %v2624_v2 }
 0xeb1   :  { %v2621_v41 = vsel %vm192_vm3, %v2615_v7, 0.0 }
 0xeb2   :  { %2622 = vadd.xlane.f32.xlu0 %v2621_v41 }
 0xeeb   :  { %v2593_v49 = vpop.xlane.xlu0 %2592 }
 0xeec   :  { %v2605_v27 = vmul.f32 0.03125, %v2593_v49 }
 0xeee   :  { %v2611_v20 = vsub.f32 %v8416_v34, %v2605_v27 }
 0xeef   :  { %v2596_v12 = vpop.xlane.xlu0 %2595 }
 0xef0   :  { %v2606_v5 = vmul.f32 0.03125, %v2596_v12  ;;  %v2617_v48 = vmul.f32 %v2611_v20, %v2611_v20 }
 0xef2   :  { %v2612_v28 = vsub.f32 %v8419_v56, %v2606_v5  ;;  %v2627_v62 = vsel %vm192_vm3, %v2617_v48, 0.0 }
 0xef3   :  { %2628 = vadd.xlane.f32.xlu0 %v2627_v62 }
 0xef4   :  { %v2618_v16 = vmul.f32 %v2612_v28, %v2612_v28 }
 0xef5   :  { %v2602_v37 = vpop.xlane.xlu1 %2601 }
 0xef6   :  { %v2608_v35 = vmul.f32 0.03125, %v2602_v37  ;;  %v2630_v63 = vsel %vm192_vm3, %v2618_v16, 0.0  ;;  %v2876_v37 = vld [vmem:[%s9396_s11 + $0x78] sm:$0xff] }
 0xef7   :  { %2631 = vadd.xlane.f32.xlu1 %v2630_v63  ;;  %v2599_v3 = vpop.xlane.xlu0 %2598  ;;  %6750 = vmatprep.subr.mxu0 %v2876_v37 }
 0xef8   :  { %v2614_v18 = vsub.f32 %v8426_v17, %v2608_v35  ;;  %v2607_v38 = vmul.f32 0.03125, %v2599_v3  ;;  %6751 = vmatpush3.msra.mxu0 %v2876_v37 }
 0xefa   :  { %v8457_v8 = vsub.f32 %v8429_v55, %v2607_v38  ;;  %v2620_v10 = vmul.f32 %v2614_v18, %v2614_v18  ;;  %v2874_v38 = vld [vmem:[%s9396_s11 + $0x68] sm:$0xff] }
 0xefc   :  { %v2636_v36 = vsel %vm192_vm3, %v2620_v10, 0.0  ;;  %v2619_v40 = vmul.f32 %v8457_v8, %v8457_v8 }
 0xefd   :  { %2637 = vadd.xlane.f32.xlu1 %v2636_v36 }
 0xefe   :  { %v2633_v19 = vsel %vm192_vm3, %v2619_v40, 0.0 }
 0xeff   :  { %2634 = vadd.xlane.f32.xlu0 %v2633_v19 }
 0xf39   :  { %v2626_v23 = vpop.xlane.xlu1 %2625 }
 0xf3a   :  { %v2640_v58 = vmul.f32 0.03125, %v2626_v23  ;;  %v2871_v23 = vld [vmem:[%s9396_s11 + $0x50] sm:$0xff] }
 0xf3b   :  { %v2623_v25 = vpop.xlane.xlu0 %2622 }
 0xf3c   :  { %v2646_v59 = vadd.f32 1e-12, %v2640_v58  ;;  %v2639_v14 = vmul.f32 0.03125, %v2623_v25  ;;  %v2870_v58 = vld [vmem:[%s9396_s11 + $0x48] sm:$0xff]  ;;  %v2869_v25 = vld [vmem:[%s9396_s11 + $0x40] sm:$0xff] }
 0xf3e   :  { %7260 = vrsqrt.f32 %v2646_v59  ;;  %v2645_v13 = vadd.f32 1e-12, %v2639_v14  ;;  %v2868_v59 = vld [vmem:[%s9396_s11 + $0x38] sm:$0xff]  ;;  %v2867_v14 = vld [vmem:[%s9396_s11 + $0x30] sm:$0xff] }
 0xf40   :  { %7262 = vrsqrt.f32 %v2645_v13  ;;  %v2866_v13 = vld [vmem:[%s9396_s11 + $0x28] sm:$0xff] }
 0xf4b   :  { %v7261_v9 = vpop.eup %7260 }
 0xf4c   :  { %v2658_v29 = vmul.f32 %v7261_v9, %v2610_v54  ;;  %v2865_v9 = vld [vmem:[%s9396_s11 + $0x20] sm:$0xff] }
 0xf4d   :  { %v7263_v26 = vpop.eup %7262 }
 0xf4e   :  { %v2657_v39 = vmul.f32 %v7263_v26, %v2609_v0  ;;  %v2668_v22 = vmul.f32 %v2666_v31, %v2658_v29  ;;  %v2863_v29 = vld [vmem:[%s9396_s11 + $0x10] sm:$0xff]  ;;  %v2862_v26 = vld [vmem:[%s9396_s11 + $0x8] sm:$0xff] }
 0xf50   :  { %v2667_v60 = vmul.f32 %v2666_v31, %v2657_v39  ;;  %v2678_v50 = vadd.f32 %v2676_v33, %v2668_v22  ;;  %v2861_v39 = vld [vmem:[%s9396_s11] sm:$0xff] }
 0xf51   :  { %v6024_v22 = vld [vmem:[%s9395_s10] ss:$0 sm:$0xff] }
 0xf52   :  { %v2677_v44 = vadd.f32 %v2676_v33, %v2667_v60 }
 0xf54   :  { %6741 = vmatprep.mubr.msk.f32.mxu1 %vm192_vm3, %v2677_v44 }
 0xf55   :  { %6742 = vmatmul.mubr.msk.f32.vlgmr.msra.gmra.mxu1 %vm192_vm3, %v2678_v50 }
 0xf7c   :  { %v2629_v24 = vpop.xlane.xlu0 %2628 }
 0xf7d   :  { %v2641_v53 = vmul.f32 0.03125, %v2629_v24 }
 0xf7f   :  { %v2647_v43 = vadd.f32 1e-12, %v2641_v53 }
 0xf80   :  { %v2632_v42 = vpop.xlane.xlu1 %2631 }
 0xf81   :  { %7264 = vrsqrt.f32 %v2647_v43  ;;  %v2642_v54 = vmul.f32 0.03125, %v2632_v42 }
 0xf83   :  { %v2648_v2 = vadd.f32 1e-12, %v2642_v54 }
 0xf85   :  { %7266 = vrsqrt.f32 %v2648_v2 }
 0xf86   :  { %v2638_v0 = vpop.xlane.xlu1 %2637 }
 0xf87   :  { %v2644_v7 = vmul.f32 0.03125, %v2638_v0 }
 0xf88   :  { %v2635_v41 = vpop.xlane.xlu0 %2634 }
 0xf89   :  { %v2650_v45 = vadd.f32 1e-12, %v2644_v7  ;;  %v2643_v15 = vmul.f32 0.03125, %v2635_v41 }
 0xf8b   :  { %7268 = vrsqrt.f32 %v2650_v45  ;;  %v2649_v47 = vadd.f32 1e-12, %v2643_v15 }
 0xf8d   :  { %7270 = vrsqrt.f32 %v2649_v47 }
 0xf8e   :  { %v7265_v32 = vpop.eup %7264 }
 0xf8f   :  { %v2659_v49 = vmul.f32 %v7265_v32, %v2611_v20  ;;  %v2875_v20 = vld [vmem:[%s9396_s11 + $0x70] sm:$0xff] }
 0xf90   :  { %6752 = vmatprep.subr.mxu0 %v2875_v20 }
 0xf91   :  { %v2669_v27 = vmul.f32 %v2666_v31, %v2659_v49  ;;  %6753 = vmatpush3.msra.mxu0 %v2875_v20 }
 0xf92   :  { %v7267_v12 = vpop.eup %7266  ;;  %6754 = vmatprep.subr.mxu0 %v2874_v38 }
 0xf93   :  { %v2679_v5 = vadd.f32 %v2676_v33, %v2669_v27  ;;  %v2660_v48 = vmul.f32 %v7267_v12, %v2612_v28  ;;  %6755 = vmatpush3.msra.mxu0 %v2874_v38 }
 0xf95   :  { %6744 = vmatprep.mubr.msk.f32.mxu1 %vm192_vm3, %v2679_v5  ;;  %v2670_v62 = vmul.f32 %v2666_v31, %v2660_v48 }
 0xf97   :  { %v2680_v16 = vadd.f32 %v2676_v33, %v2670_v62 }
 0xf98   :  { %v7269_v35 = vpop.eup %7268 }
 0xf99   :  { %6745 = vmatmul.mubr.msk.f32.gmra.mxu1 %vm192_vm3, %v2680_v16  ;;  %v2662_v63 = vmul.f32 %v7269_v35, %v2614_v18  ;;  %v2873_v18 = vld [vmem:[%s9396_s11 + $0x60] sm:$0xff] }
 0xf9a   :  { %v7271_v3 = vpop.eup %7270  ;;  %6756 = vmatprep.subr.mxu0 %v2873_v18 }
 0xf9b   :  { %v2661_v28 = vmul.f32 %v7271_v3, %v8457_v8  ;;  %v2672_v10 = vmul.f32 %v2666_v31, %v2662_v63  ;;  %6757 = vmatpush3.msra.mxu0 %v2873_v18  ;;  %v2872_v8 = vld [vmem:[%s9396_s11 + $0x58] sm:$0xff] }
 0xf9c   :  { %6758 = vmatprep.subr.mxu0 %v2872_v8 }
 0xf9d   :  { %v2671_v36 = vmul.f32 %v2666_v31, %v2661_v28  ;;  %v2682_v19 = vadd.f32 %v2676_v33, %v2672_v10  ;;  %6759 = vmatpush3.msra.mxu0 %v2872_v8  ;;  %v2864_v31 = vld [vmem:[%s9396_s11 + $0x18] sm:$0xff] }
 0xf9e   :  { %6760 = vmatprep.subr.mxu0 %v2871_v23 }
 0xf9f   :  { %v2681_v40 = vadd.f32 %v2676_v33, %v2671_v36  ;;  %6761 = vmatpush3.msra.mxu0 %v2871_v23 }
 0xfa0   :  { %6762 = vmatprep.subr.mxu0 %v2870_v58 }
 0xfa1   :  { %6747 = vmatprep.mubr.msk.f32.mxu1 %vm192_vm3, %v2681_v40  ;;  %6763 = vmatpush3.msra.mxu0 %v2870_v58 }
 0xfa2   :  { %6748 = vmatmul.mubr.msk.f32.gmra.mxu1 %vm192_vm3, %v2682_v19  ;;  %6764 = vmatprep.subr.mxu0 %v2869_v25 }
 0xfa3   :  { %6765 = vmatpush3.msra.mxu0 %v2869_v25 }
 0xfa4   :  { %6766 = vmatprep.subr.mxu0 %v2868_v59 }
 0xfa5   :  { %6767 = vmatpush3.msra.mxu0 %v2868_v59 }
 0xfa6   :  { %6768 = vmatprep.subr.mxu0 %v2867_v14 }
 0xfa7   :  { %6769 = vmatpush3.msra.mxu0 %v2867_v14 }
 0xfa8   :  { %6770 = vmatprep.subr.mxu0 %v2866_v13 }
 0xfa9   :  { %6771 = vmatpush3.msra.mxu0 %v2866_v13 }
 0xfaa   :  { %6772 = vmatprep.subr.mxu0 %v2865_v9 }
 0xfab   :  { %6773 = vmatpush3.msra.mxu0 %v2865_v9 }
 0xfac   :  { %6774 = vmatprep.subr.mxu0 %v2864_v31 }
 0xfad   :  { %6775 = vmatpush3.msra.mxu0 %v2864_v31 }
 0xfae   :  { %6776 = vmatprep.subr.mxu0 %v2863_v29 }
 0xfaf   :  { %6777 = vmatpush3.msra.mxu0 %v2863_v29 }
 0xfb0   :  { %6778 = vmatprep.subr.mxu0 %v2862_v26 }
 0xfb1   :  { %6779 = vmatpush3.msra.mxu0 %v2862_v26 }
 0xfb2   :  { %6780 = vmatprep.subr.mxu0 %v2861_v39 }
 0xfb3   :  { %6781 = vmatpush3.msra.mxu0 %v2861_v39 }
 0xfb4   :  { %6838 = vmatprep.subr.mxu0 %v7442_v1 }
0x1015   :  { %v6743_v33 = vpop.f32.mrf.mxu1 }
0x1016   :  { %v2784_v60 = vadd.f32 %v6743_v33, %v6024_v22 }
0x1017   :  { %v2778_v44 = vpop.f32.mrf.mxu1 }
0x1018   :  { %v2814_v50 = vmul.f32 0.044715, %v2784_v60  ;;  %v2779_v24 = vadd.f32 %v6024_v22, %v2778_v44  ;;  %v2808_v12 = vmul.f32 0.5, %v2784_v60 }
0x101a   :  { %v2820_v53 = vmul.f32 %v2814_v50, %v2784_v60  ;;  %v2813_v43 = vmul.f32 0.044715, %v2779_v24  ;;  %v2807_v49 = vmul.f32 0.5, %v2779_v24 }
0x101c   :  { %v2826_v42 = vmul.f32 %v2820_v53, %v2784_v60  ;;  %v2819_v54 = vmul.f32 %v2813_v43, %v2779_v24 }
0x101e   :  { %v2832_v2 = vadd.f32 %v2826_v42, %v2784_v60  ;;  %v2825_v0 = vmul.f32 %v2819_v54, %v2779_v24 }
0x1020   :  { %v2838_v7 = vmul.f32 0.7978846, %v2832_v2  ;;  %v2831_v41 = vadd.f32 %v2825_v0, %v2779_v24 }
0x1022   :  { %7272 = vtanh.f32 %v2838_v7  ;;  %v2837_v45 = vmul.f32 0.7978846, %v2831_v41 }
0x1024   :  { %7274 = vtanh.f32 %v2837_v45 }
0x102f   :  { %v7273_v15 = vpop.eup %7272 }
0x1030   :  { %v2850_v32 = vadd.f32 1.0, %v7273_v15 }
0x1031   :  { %v7275_v47 = vpop.eup %7274 }
0x1032   :  { %v2849_v27 = vadd.f32 1.0, %v7275_v47  ;;  %v2856_v48 = vmul.f32 %v2850_v32, %v2808_v12 }
0x1034   :  { %v2855_v5 = vmul.f32 %v2849_v27, %v2807_v49  ;;  %v2879_v49 = vsub.s32 5, %v7760_v52 }
0x1036   :  { %6782 = vmatprep.mubr.f32.mxu0 %v2855_v5  ;;  %v2880_v27 = vrot.slane %v8400_v51, %v2879_v49 }
0x1037   :  { %6783 = vmatmul.mubr.f32.vlgmr.msra.gmra.mxu0 %v2856_v48 }
0x1059   :  { %v6746_v62 = vpop.f32.mrf.mxu1 }
0x105a   :  { %v2794_v16 = vadd.f32 %v6746_v62, %v6024_v22 }
0x105b   :  { %v2788_v37 = vpop.f32.mrf.mxu1 }
0x105c   :  { %v2816_v35 = vmul.f32 0.044715, %v2794_v16  ;;  %v2789_v63 = vadd.f32 %v6024_v22, %v2788_v37 }
0x105e   :  { %v2822_v20 = vmul.f32 %v2816_v35, %v2794_v16  ;;  %v2815_v3 = vmul.f32 0.044715, %v2789_v63  ;;  %v2809_v53 = vmul.f32 0.5, %v2789_v63 }
0x1060   :  { %v2821_v28 = vmul.f32 %v2815_v3, %v2789_v63  ;;  %v2828_v38 = vmul.f32 %v2822_v20, %v2794_v16 }
0x1062   :  { %v6749_v10 = vpop.f32.mrf.mxu1  ;;  %v2827_v36 = vmul.f32 %v2821_v28, %v2789_v63  ;;  %v2834_v18 = vadd.f32 %v2828_v38, %v2794_v16 }
0x1063   :  { %v2804_v40 = vadd.f32 %v6749_v10, %v6024_v22 }
0x1064   :  { %v2798_v8 = vpop.f32.mrf.mxu1  ;;  %v2833_v19 = vadd.f32 %v2827_v36, %v2789_v63  ;;  %v2840_v23 = vmul.f32 0.7978846, %v2834_v18 }
0x1065   :  { %v2818_v58 = vmul.f32 0.044715, %v2804_v40  ;;  %v2799_v25 = vadd.f32 %v6024_v22, %v2798_v8  ;;  %v2810_v22 = vmul.f32 0.5, %v2794_v16  ;;  %v2812_v15 = vmul.f32 0.5, %v2804_v40 }
0x1066   :  { %v2839_v59 = vmul.f32 0.7978846, %v2833_v19  ;;  %7276 = vtanh.f32 %v2840_v23 }
0x1067   :  { %v2824_v14 = vmul.f32 %v2818_v58, %v2804_v40  ;;  %v2817_v13 = vmul.f32 0.044715, %v2799_v25  ;;  %v2811_v41 = vmul.f32 0.5, %v2799_v25 }
0x1068   :  { %7278 = vtanh.f32 %v2839_v59 }
0x1069   :  { %v2823_v9 = vmul.f32 %v2817_v13, %v2799_v25  ;;  %v2830_v31 = vmul.f32 %v2824_v14, %v2804_v40 }
0x106b   :  { %v2829_v29 = vmul.f32 %v2823_v9, %v2799_v25  ;;  %v2836_v26 = vadd.f32 %v2830_v31, %v2804_v40 }
0x106d   :  { %v2835_v39 = vadd.f32 %v2829_v29, %v2799_v25  ;;  %v2842_v33 = vmul.f32 0.7978846, %v2836_v26  ;;  %v6035_v26 = vld [vmem:[%s9390_s5 + $0x38] sm:$0xff] }
0x106e   :  { %6791 = vmatprep.subr.mxu1 %v6035_v26 }
0x106f   :  { %v2841_v60 = vmul.f32 0.7978846, %v2835_v39  ;;  %7280 = vtanh.f32 %v2842_v33  ;;  %v6034_v39 = vld [vmem:[%s9390_s5 + $0x30] sm:$0xff]  ;;  %6792 = vmatpush3.msra.mxu1 %v6035_v26  ;;  %v6033_v33 = vld [vmem:[%s9390_s5 + $0x28] sm:$0xff] }
0x1070   :  { %6793 = vmatprep.subr.mxu1 %v6034_v39 }
0x1071   :  { %7282 = vtanh.f32 %v2841_v60  ;;  %6794 = vmatpush3.msra.mxu1 %v6034_v39  ;;  %v6032_v60 = vld [vmem:[%s9390_s5 + $0x20] sm:$0xff] }
0x1072   :  { %6795 = vmatprep.subr.mxu1 %v6033_v33 }
0x1073   :  { %v7277_v44 = vpop.eup %7276  ;;  %6796 = vmatpush3.msra.mxu1 %v6033_v33 }
0x1074   :  { %v2852_v24 = vadd.f32 1.0, %v7277_v44  ;;  %6797 = vmatprep.subr.mxu1 %v6032_v60 }
0x1075   :  { %v7279_v50 = vpop.eup %7278  ;;  %6798 = vmatpush3.msra.mxu1 %v6032_v60 }
0x1076   :  { %v2851_v43 = vadd.f32 1.0, %v7279_v50  ;;  %v2858_v54 = vmul.f32 %v2852_v24, %v2810_v22  ;;  %6808 = vmatprep.subr.mxu1 %v7442_v1 }
0x1078   :  { %v2857_v42 = vmul.f32 %v2851_v43, %v2809_v53 }
0x107a   :  { %6785 = vmatprep.mubr.f32.mxu0 %v2857_v42 }
0x107b   :  { %6786 = vmatmul.mubr.f32.gmra.mxu0 %v2858_v54 }
0x107c   :  { %v7281_v2 = vpop.eup %7280 }
0x107d   :  { %v2854_v7 = vadd.f32 1.0, %v7281_v2 }
0x107e   :  { %v7283_v0 = vpop.eup %7282 }
0x107f   :  { %v2853_v45 = vadd.f32 1.0, %v7283_v0  ;;  %v2860_v32 = vmul.f32 %v2854_v7, %v2812_v15 }
0x1081   :  { %v2859_v47 = vmul.f32 %v2853_v45, %v2811_v41 }
0x1083   :  { %6788 = vmatprep.mubr.f32.mxu0 %v2859_v47 }
0x1084   :  { %6789 = vmatmul.mubr.f32.gmra.mxu0 %v2860_v32 }
0x1085   :  { %6844 = vmatprep.mubr.msk.f32.mxu0 %vm7444_vm4, %v7442_v1 }
0x10f7   :  { %v6784_v12 = vpop.f32.mrf.mxu0 }
0x10f8   :  { %v2953_v5 = vadd.f32 %v6784_v12, %v2880_v27 }
0x10f9   :  { %v2947_v48 = vpop.f32.mrf.mxu0 }
0x10fa   :  { %v8537_v62 = vadd.f32 %v2953_v5, %v8406_v6  ;;  %v2948_v16 = vadd.f32 %v2947_v48, %v2880_v27 }
0x10fc   :  { %v8540_v37 = vadd.f32 %v2948_v16, %v8409_v11  ;;  %v2987_v35 = vsel %vm192_vm3, %v8537_v62, 0.0 }
0x10fd   :  { %2988 = vadd.xlane.f32.xlu1 %v2987_v35 }
0x10fe   :  { %v2984_v63 = vsel %vm192_vm3, %v8540_v37, 0.0 }
0x10ff   :  { %2985 = vadd.xlane.f32.xlu0 %v2984_v63 }
0x113b   :  { %v6787_v20 = vpop.f32.mrf.mxu0 }
0x113c   :  { %v2963_v51 = vadd.f32 %v6787_v20, %v2880_v27 }
0x113d   :  { %v2957_v3 = vpop.f32.mrf.mxu0 }
0x113e   :  { %v8547_v28 = vadd.f32 %v2963_v51, %v8419_v56  ;;  %v2958_v6 = vadd.f32 %v2957_v3, %v2880_v27 }
0x1140   :  { %v8550_v38 = vadd.f32 %v2958_v6, %v8416_v34  ;;  %v2993_v11 = vsel %vm192_vm3, %v8547_v28, 0.0  ;;  %v6031_v6 = vld [vmem:[%s9393_s8 + $0x8] sm:$0x3f] }
0x1141   :  { %2994 = vadd.xlane.f32.xlu1 %v2993_v11 }
0x1142   :  { %v2990_v10 = vsel %vm192_vm3, %v8550_v38, 0.0 }
0x1143   :  { %2991 = vadd.xlane.f32.xlu0 %v2990_v10  ;;  %v3065_v10 = vrot.slane %v6031_v6, %v301_v61 }
0x1144   :  { %v6790_v36 = vpop.f32.mrf.mxu0 }
0x1145   :  { %v2973_v18 = vadd.f32 %v6790_v36, %v2880_v27 }
0x1146   :  { %v2967_v40 = vpop.f32.mrf.mxu0 }
0x1147   :  { %v8557_v8 = vadd.f32 %v2973_v18, %v8426_v17  ;;  %v2968_v56 = vadd.f32 %v2967_v40, %v2880_v27 }
0x1149   :  { %v8560_v19 = vadd.f32 %v2968_v56, %v8429_v55  ;;  %v2999_v34 = vsel %vm192_vm3, %v8557_v8, 0.0  ;;  %v3075_v56 = vrot.slane %v6031_v6, %v311_v4 }
0x114a   :  { %3000 = vadd.xlane.f32.xlu1 %v2999_v34 }
0x114b   :  { %v2996_v23 = vsel %vm192_vm3, %v8560_v19, 0.0 }
0x114c   :  { %2997 = vadd.xlane.f32.xlu0 %v2996_v23 }
0x1186   :  { %v2989_v58 = vpop.xlane.xlu1 %2988 }
0x1187   :  { %v3003_v25 = vmul.f32 0.03125, %v2989_v58 }
0x1188   :  { %v2986_v59 = vpop.xlane.xlu0 %2985 }
0x1189   :  { %v3009_v14 = vsub.f32 %v8537_v62, %v3003_v25  ;;  %v3002_v13 = vmul.f32 0.03125, %v2986_v59 }
0x118b   :  { %v3008_v17 = vsub.f32 %v8540_v37, %v3002_v13  ;;  %v3015_v9 = vmul.f32 %v3009_v14, %v3009_v14 }
0x118d   :  { %v3023_v55 = vsel %vm192_vm3, %v3015_v9, 0.0  ;;  %v3014_v31 = vmul.f32 %v3008_v17, %v3008_v17 }
0x118e   :  { %3024 = vadd.xlane.f32.xlu1 %v3023_v55 }
0x118f   :  { %v3020_v29 = vsel %vm192_vm3, %v3014_v31, 0.0 }
0x1190   :  { %3021 = vadd.xlane.f32.xlu0 %v3020_v29 }
0x11ca   :  { %v2995_v44 = vpop.xlane.xlu1 %2994 }
0x11cb   :  { %v3005_v50 = vmul.f32 0.03125, %v2995_v44 }
0x11cc   :  { %v2992_v24 = vpop.xlane.xlu0 %2991 }
0x11cd   :  { %v3011_v53 = vsub.f32 %v8547_v28, %v3005_v50  ;;  %v3004_v43 = vmul.f32 0.03125, %v2992_v24 }
0x11cf   :  { %v3010_v22 = vsub.f32 %v8550_v38, %v3004_v43  ;;  %v3017_v42 = vmul.f32 %v3011_v53, %v3011_v53 }
0x11d1   :  { %v3029_v54 = vsel %vm192_vm3, %v3017_v42, 0.0  ;;  %v3016_v2 = vmul.f32 %v3010_v22, %v3010_v22 }
0x11d2   :  { %3030 = vadd.xlane.f32.xlu1 %v3029_v54 }
0x11d3   :  { %v3001_v0 = vpop.xlane.xlu1 %3000  ;;  %v3026_v7 = vsel %vm192_vm3, %v3016_v2, 0.0 }
0x11d4   :  { %v3007_v41 = vmul.f32 0.03125, %v3001_v0  ;;  %3027 = vadd.xlane.f32.xlu0 %v3026_v7 }
0x11d5   :  { %v2998_v45 = vpop.xlane.xlu0 %2997 }
0x11d6   :  { %v3013_v15 = vsub.f32 %v8557_v8, %v3007_v41  ;;  %v3006_v47 = vmul.f32 0.03125, %v2998_v45 }
0x11d8   :  { %v3012_v32 = vsub.f32 %v8560_v19, %v3006_v47  ;;  %v3019_v27 = vmul.f32 %v3013_v15, %v3013_v15 }
0x11da   :  { %v3035_v12 = vsel %vm192_vm3, %v3019_v27, 0.0  ;;  %v3018_v5 = vmul.f32 %v3012_v32, %v3012_v32 }
0x11db   :  { %3036 = vadd.xlane.f32.xlu1 %v3035_v12 }
0x11dc   :  { %v3032_v48 = vsel %vm192_vm3, %v3018_v5, 0.0 }
0x11dd   :  { %3033 = vadd.xlane.f32.xlu0 %v3032_v48 }
0x1217   :  { %v3025_v16 = vpop.xlane.xlu1 %3024 }
0x1218   :  { %v3039_v35 = vmul.f32 0.03125, %v3025_v16 }
0x1219   :  { %v3022_v63 = vpop.xlane.xlu0 %3021 }
0x121a   :  { %v3045_v20 = vadd.f32 1e-12, %v3039_v35  ;;  %v3038_v51 = vmul.f32 0.03125, %v3022_v63 }
0x121c   :  { %7284 = vrsqrt.f32 %v3045_v20  ;;  %v3044_v3 = vadd.f32 1e-12, %v3038_v51 }
0x121e   :  { %7286 = vrsqrt.f32 %v3044_v3 }
0x1229   :  { %v7285_v11 = vpop.eup %7284 }
0x122a   :  { %v3057_v36 = vmul.f32 %v7285_v11, %v3009_v14 }
0x122b   :  { %v7287_v18 = vpop.eup %7286 }
0x122c   :  { %v3056_v40 = vmul.f32 %v7287_v18, %v3008_v17  ;;  %v3067_v34 = vmul.f32 %v3065_v10, %v3057_v36 }
0x122e   :  { %v3066_v23 = vmul.f32 %v3065_v10, %v3056_v40  ;;  %v3077_v25 = vadd.f32 %v3075_v56, %v3067_v34 }
0x1230   :  { %v3076_v58 = vadd.f32 %v3075_v56, %v3066_v23 }
0x1232   :  { %6799 = vmatprep.mubr.msk.f32.mxu1 %vm192_vm3, %v3076_v58 }
0x1233   :  { %6800 = vmatmul.mubr.msk.f32.vlgmr.msra.gmra.mxu1 %vm192_vm3, %v3077_v25 }
0x125b   :  { %v3031_v59 = vpop.xlane.xlu1 %3030 }
0x125c   :  { %v3041_v13 = vmul.f32 0.03125, %v3031_v59 }
0x125d   :  { %v3028_v9 = vpop.xlane.xlu0 %3027 }
0x125e   :  { %v3047_v55 = vadd.f32 1e-12, %v3041_v13  ;;  %v3040_v31 = vmul.f32 0.03125, %v3028_v9 }
0x1260   :  { %7288 = vrsqrt.f32 %v3047_v55  ;;  %v3046_v61 = vadd.f32 1e-12, %v3040_v31 }
0x1262   :  { %7290 = vrsqrt.f32 %v3046_v61 }
0x1264   :  { %v3037_v14 = vpop.xlane.xlu1 %3036 }
0x1265   :  { %v3043_v17 = vmul.f32 0.03125, %v3037_v14 }
0x1266   :  { %v3034_v29 = vpop.xlane.xlu0 %3033 }
0x1267   :  { %v3049_v4 = vadd.f32 1e-12, %v3043_v17  ;;  %v3042_v26 = vmul.f32 0.03125, %v3034_v29 }
0x1269   :  { %7292 = vrsqrt.f32 %v3049_v4  ;;  %v3048_v39 = vadd.f32 1e-12, %v3042_v26 }
0x126b   :  { %7294 = vrsqrt.f32 %v3048_v39 }
0x126d   :  { %v7289_v33 = vpop.eup %7288 }
0x126e   :  { %v3059_v60 = vmul.f32 %v7289_v33, %v3011_v53  ;;  %v6037_v53 = vld [vmem:[%s9391_s6 + $0x1] ss:$0 sm:$0xff]  ;;  %s9405_s6 = smov 40  }
0x126f   :  { %v7291_v44 = vpop.eup %7290 }
0x1270   :  { %v3058_v50 = vmul.f32 %v7291_v44, %v3010_v22  ;;  %v3069_v24 = vmul.f32 %v3065_v10, %v3059_v60 }
0x1272   :  { %v3068_v43 = vmul.f32 %v3065_v10, %v3058_v50  ;;  %v3079_v54 = vadd.f32 %v3075_v56, %v3069_v24 }
0x1274   :  { %v3078_v42 = vadd.f32 %v3075_v56, %v3068_v43 }
0x1276   :  { %v7293_v2 = vpop.eup %7292  ;;  %6802 = vmatprep.mubr.msk.f32.mxu1 %vm192_vm3, %v3078_v42 }
0x1277   :  { %6803 = vmatmul.mubr.msk.f32.gmra.mxu1 %vm192_vm3, %v3079_v54  ;;  %v3061_v0 = vmul.f32 %v7293_v2, %v3013_v15 }
0x1278   :  { %v7295_v7 = vpop.eup %7294 }
0x1279   :  { %v3060_v41 = vmul.f32 %v7295_v7, %v3012_v32  ;;  %v3071_v45 = vmul.f32 %v3065_v10, %v3061_v0 }
0x127b   :  { %v3070_v47 = vmul.f32 %v3065_v10, %v3060_v41  ;;  %v3081_v12 = vadd.f32 %v3075_v56, %v3071_v45 }
0x127d   :  { %v3080_v27 = vadd.f32 %v3075_v56, %v3070_v47 }
0x127f   :  { %6805 = vmatprep.mubr.msk.f32.mxu1 %vm192_vm3, %v3080_v27 }
0x1280   :  { %6806 = vmatmul.mubr.msk.f32.gmra.mxu1 %vm192_vm3, %v3081_v12 }
0x1281   :  { %6814 = vmatprep.mubr.msk.f32.mxu1 %vm7444_vm4, %v7442_v1 }
0x12f3   :  { %v6801_v22 = vpop.f32.mrf.mxu1 }
0x12f4   :  { %v8609_v5 = vadd.f32 %v6801_v22, %v6037_v53 }
0x12f5   :  { %v3179_v15 = vpop.f32.mrf.mxu1 }
0x12f6   :  { %3213 = vrot.lane.b32.xlu1 %v8609_v5, %s7443_s23  ;;  %v8613_v32 = vadd.f32 %v6037_v53, %v3179_v15 }
0x12fa   :  { %3211 = vrot.lane.b32.xlu1 %v8613_v32, %s7443_s23 }
0x1337   :  { %v6804_v48 = vpop.f32.mrf.mxu1 }
0x1338   :  { %v8627_v6 = vadd.f32 %v6804_v48, %v6037_v53 }
0x1339   :  { %v3189_v16 = vpop.f32.mrf.mxu1 }
0x133a   :  { %v8617_v35 = vadd.f32 %v6037_v53, %v3189_v16 }
0x133c   :  { %3215 = vrot.lane.b32.xlu0 %v8617_v35, %s7443_s23 }
0x1340   :  { %v6807_v63 = vpop.f32.mrf.mxu1 }
0x1341   :  { %v8621_v20 = vadd.f32 %v6807_v63, %v6037_v53 }
0x1342   :  { %v3199_v51 = vpop.f32.mrf.mxu1 }
0x1343   :  { %v8623_v3 = vadd.f32 %v6037_v53, %v3199_v51  ;;  %3316 = vrot.lane.b32.xlu1 %v8621_v20, %s7443_s23 }
0x1345   :  { %3314 = vrot.lane.b32.xlu0 %v8623_v3, %s7443_s23 }
0x1347   :  { %3312 = vrot.lane.b32.xlu1 %v8627_v6, %s7443_s23  ;;  %s9406_s23 = smov 24  }
0x1349   :  { %3492 = vrot.lane.b32.xlu0 %v8617_v35, %s7446_s24 }
0x134b   :  { %3490 = vrot.lane.b32.xlu1 %v8609_v5, %s7446_s24 }
0x134d   :  { %3590 = vrot.lane.b32.xlu0 %v8621_v20, %s7446_s24 }
0x134f   :  { %3488 = vrot.lane.b32.xlu1 %v8613_v32, %s7446_s24 }
0x1351   :  { %3588 = vrot.lane.b32.xlu0 %v8623_v3, %s7446_s24 }
0x1353   :  { %3694 = vrot.lane.b32.xlu1 %v8617_v35, %s7447_s0 }
0x1357   :  { %3692 = vrot.lane.b32.xlu1 %v8609_v5, %s7447_s0 }
0x135b   :  { %3586 = vrot.lane.b32.xlu1 %v8627_v6, %s7446_s24 }
0x1368   :  { %v3214_v11 = vpop.permute.xlu1 %3213 }
0x136c   :  { %v3212_v36 = vpop.permute.xlu1 %3211 }
0x13ae   :  { %v3216_v10 = vpop.permute.xlu0 %3215 }
0x13af   :  { %6809 = vmatpush3.xpose.msk.msra.mxu1 %vm452_vm5, %v3216_v10 }
0x13b0   :  { %6810 = vmatprep.subr.mxu1 %v7442_v1 }
0x13b3   :  { %6811 = vmatpush3.xpose.msk.msra.mxu1 %vm452_vm5, %v3214_v11 }
0x13b4   :  { %6812 = vmatprep.subr.mxu1 %v7442_v1 }
0x13b5   :  { %v3317_v18 = vpop.permute.xlu1 %3316 }
0x13b7   :  { %6813 = vmatpush3.xpose.msk.msra.mxu1 %vm452_vm5, %v3212_v36  ;;  %v3315_v40 = vpop.permute.xlu0 %3314 }
0x13b8   :  { %6823 = vmatprep.subr.mxu1 %v7442_v1 }
0x13b9   :  { %v3313_v56 = vpop.permute.xlu1 %3312 }
0x13ba   :  { %6815 = vmatmul.mubr.msk.f32.vlgmr.msra.gmra.mxu1 %vm452_vm5, %v8613_v32 }
0x13bb   :  { %6824 = vmatpush3.xpose.msk.msra.mxu1 %vm452_vm5, %v3317_v18  ;;  %v3493_v34 = vpop.permute.xlu0 %3492  ;;  %6817 = vmatprep.mubr.msk.f32.mxu1 %vm7444_vm4, %v7442_v1 }
0x13bc   :  { %6839 = vmatpush3.msra.mxu0 %v3493_v34  ;;  %6825 = vmatprep.subr.mxu1 %v7442_v1 }
0x13bd   :  { %v3491_v23 = vpop.permute.xlu1 %3490  ;;  %6840 = vmatprep.subr.mxu0 %v7442_v1 }
0x13be   :  { %6818 = vmatmul.mubr.msk.f32.gmra.mxu1 %vm452_vm5, %v8609_v5  ;;  %6841 = vmatpush3.msra.mxu0 %v3491_v23 }
0x13bf   :  { %6826 = vmatpush3.xpose.msk.msra.mxu1 %vm452_vm5, %v3315_v40  ;;  %6820 = vmatprep.mubr.msk.f32.mxu1 %vm7444_vm4, %v7442_v1  ;;  %v3591_v25 = vpop.permute.xlu0 %3590 }
0x13c0   :  { %6842 = vmatprep.subr.mxu0 %v7442_v1  ;;  %6827 = vmatprep.subr.mxu1 %v7442_v1 }
0x13c1   :  { %v3489_v58 = vpop.permute.xlu1 %3488 }
0x13c2   :  { %6821 = vmatmul.mubr.msk.f32.gmra.mxu1 %vm452_vm5, %v8617_v35  ;;  %6843 = vmatpush3.msra.mxu0 %v3489_v58 }
0x13c3   :  { %6828 = vmatpush3.xpose.msk.msra.mxu1 %vm452_vm5, %v3313_v56  ;;  %6829 = vmatprep.mubr.msk.f32.mxu1 %vm7444_vm4, %v7442_v1  ;;  %v3589_v13 = vpop.permute.xlu0 %3588 }
0x13c4   :  { %6853 = vmatprep.subr.mxu1 %v7442_v1  ;;  %6868 = vmatprep.subr.mxu0 %v7442_v1 }
0x13c5   :  { %v8676_v59 = vpop.permute.xlu1 %3694 }
0x13c6   :  { %6830 = vmatmul.mubr.msk.f32.vlgmr.msra.gmra.mxu1 %vm452_vm5, %v8627_v6 }
0x13c7   :  { %6854 = vmatpush3.msra.mxu1 %v3591_v25  ;;  %6832 = vmatprep.mubr.msk.f32.mxu1 %vm7444_vm4, %v7442_v1 }
0x13c8   :  { %6855 = vmatprep.subr.mxu1 %v7442_v1 }
0x13c9   :  { %v8683_v9 = vpop.permute.xlu1 %3692  ;;  %6856 = vmatpush3.msra.mxu1 %v3589_v13 }
0x13ca   :  { %6833 = vmatmul.mubr.msk.f32.gmra.mxu1 %vm452_vm5, %v8623_v3  ;;  %6857 = vmatprep.subr.mxu1 %v7442_v1 }
0x13cb   :  { %6835 = vmatprep.mubr.msk.f32.mxu1 %vm7444_vm4, %v7442_v1 }
0x13cd   :  { %v3587_v55 = vpop.permute.xlu1 %3586 }
0x13ce   :  { %6836 = vmatmul.mubr.msk.f32.gmra.mxu1 %vm452_vm5, %v8621_v20 }
0x13cf   :  { %6858 = vmatpush3.msra.mxu1 %v3587_v55  ;;  %6859 = vmatprep.mubr.msk.f32.mxu1 %vm7444_vm4, %v7442_v1 }
0x13d0   :  { %6883 = vmatprep.subr.mxu1 %v7442_v1 }
0x147a   :  { %v3295_v31 = vpop.f32.mrf.mxu1 }
0x147b   :  { %v3410_v61 = vmul.f32 0.35355338, %v3295_v31 }
0x147c   :  { %v6816_v14 = vpop.f32.mrf.mxu1 }
0x147d   :  { %v3416_v17 = vadd.f32 %v3410_v61, %v7851_v57 }
0x147e   :  { %v3300_v29 = vpop.f32.mrf.mxu1 }
0x147f   :  { %v3411_v4 = vmul.f32 0.35355338, %v3300_v29  ;;  %v3422_v26 = vsel %vm658_vm7, %v3416_v17, -inf }
0x1480   :  { %3423 = vmax.xlane.f32.xlu0 %v3422_v26  ;;  %v6819_v39 = vpop.f32.mrf.mxu1 }
0x1481   :  { %v3417_v33 = vadd.f32 %v3411_v4, %v7851_v57 }
0x1482   :  { %v3305_v60 = vpop.f32.mrf.mxu1 }
0x1483   :  { %v3412_v44 = vmul.f32 0.35355338, %v3305_v60  ;;  %v3425_v50 = vsel %vm658_vm7, %v3417_v33, -inf }
0x1484   :  { %3426 = vmax.xlane.f32.xlu1 %v3425_v50  ;;  %v6822_v24 = vpop.f32.mrf.mxu1 }
0x1485   :  { %v3418_v43 = vadd.f32 %v3412_v44, %v7851_v57 }
0x1486   :  { %v3396_v42 = vpop.f32.mrf.mxu1 }
0x1487   :  { %v3413_v54 = vmul.f32 0.35355338, %v3396_v42  ;;  %v3428_v2 = vsel %vm658_vm7, %v3418_v43, -inf }
0x1488   :  { %3429 = vmax.xlane.f32.xlu0 %v3428_v2  ;;  %v6831_v0 = vpop.f32.mrf.mxu1 }
0x1489   :  { %v3419_v7 = vadd.f32 %v3413_v54, %v7851_v57 }
0x148a   :  { %v3401_v41 = vpop.f32.mrf.mxu1 }
0x148b   :  { %v3414_v45 = vmul.f32 0.35355338, %v3401_v41  ;;  %v3431_v47 = vsel %vm658_vm7, %v3419_v7, -inf }
0x148c   :  { %3432 = vmax.xlane.f32.xlu0 %v3431_v47  ;;  %v6834_v27 = vpop.f32.mrf.mxu1 }
0x148d   :  { %v3420_v12 = vadd.f32 %v3414_v45, %v7851_v57 }
0x148e   :  { %v3406_v53 = vpop.f32.mrf.mxu1 }
0x148f   :  { %v3434_v22 = vsel %vm658_vm7, %v3420_v12, -inf  ;;  %v3415_v48 = vmul.f32 0.35355338, %v3406_v53 }
0x1490   :  { %3435 = vmax.xlane.f32.xlu0 %v3434_v22  ;;  %v6837_v15 = vpop.f32.mrf.mxu1 }
0x1491   :  { %v3421_v16 = vadd.f32 %v3415_v48, %v7851_v57 }
0x1493   :  { %v3437_v63 = vsel %vm658_vm7, %v3421_v16, -inf }
0x1495   :  { %3798 = vrot.lane.b32.xlu1 %v8621_v20, %s7447_s0 }
0x14a6   :  { %3690 = vrot.lane.b32.xlu0 %v8613_v32, %s7447_s0 }
0x14b9   :  { %3438 = vmax.xlane.f32.xlu1 %v3437_v63 }
0x1509   :  { %v3424_v51 = vpop.xlane.xlu0 %3423 }
0x150a   :  { %v3440_v11 = vsub.f32 %v3416_v17, %v3424_v51 }
0x150c   :  { %v3446_v10 = vmul.f32 1.442695, %v3440_v11 }
0x150d   :  { %v3427_v36 = vpop.xlane.xlu1 %3426 }
0x150e   :  { %7296 = vpow2.f32 %v3446_v10  ;;  %v3441_v18 = vsub.f32 %v3417_v33, %v3427_v36 }
0x1510   :  { %v3448_v40 = vmul.f32 1.442695, %v3441_v18 }
0x1511   :  { %v3430_v56 = vpop.xlane.xlu0 %3429  ;;  %v8728_v24 = vpop.permute.xlu1 %3798 }
0x1512   :  { %7298 = vpow2.f32 %v3448_v40  ;;  %v3442_v34 = vsub.f32 %v3418_v43, %v3430_v56 }
0x1514   :  { %v3450_v23 = vmul.f32 1.442695, %v3442_v34 }
0x1515   :  { %v3433_v14 = vpop.xlane.xlu0 %3432 }
0x1516   :  { %7300 = vpow2.f32 %v3450_v23  ;;  %v3443_v17 = vsub.f32 %v3419_v7, %v3433_v14 }
0x1518   :  { %v3452_v4 = vmul.f32 1.442695, %v3443_v17 }
0x1519   :  { %v3436_v29 = vpop.xlane.xlu0 %3435 }
0x151a   :  { %v3444_v26 = vsub.f32 %v3420_v12, %v3436_v29  ;;  %7302 = vpow2.f32 %v3452_v4 }
0x151b   :  { %v7297_v58 = vpop.eup %7296 }
0x151c   :  { %v3458_v25 = vsel %vm658_vm7, %v7297_v58, 0.0  ;;  %v3454_v39 = vmul.f32 1.442695, %v3444_v26 }
0x151d   :  { %3459 = vadd.xlane.f32.xlu0 %v3458_v25  ;;  %v3691_v7 = vpop.permute.xlu0 %3690 }
0x151e   :  { %7304 = vpow2.f32 %v3454_v39 }
0x151f   :  { %v7299_v13 = vpop.eup %7298 }
0x1520   :  { %v3461_v55 = vsel %vm658_vm7, %v7299_v13, 0.0 }
0x1521   :  { %3462 = vadd.xlane.f32.xlu1 %v3461_v55 }
0x1523   :  { %v7301_v31 = vpop.eup %7300 }
0x1524   :  { %v3464_v61 = vsel %vm658_vm7, %v7301_v31, 0.0 }
0x1525   :  { %3465 = vadd.xlane.f32.xlu0 %v3464_v61 }
0x1527   :  { %v8718_v33 = vpop.eup %7302 }
0x1528   :  { %v3467_v60 = vsel %vm658_vm7, %v8718_v33, 0.0 }
0x152b   :  { %v8722_v44 = vpop.eup %7304 }
0x152c   :  { %v3470_v50 = vsel %vm658_vm7, %v8722_v44, 0.0 }
0x1532   :  { %3796 = vrot.lane.b32.xlu1 %v8623_v3, %s7447_s0 }
0x153b   :  { %3684 = vrot.lane.b32.xlu0 %v8613_v32, %s7448_s3 }
0x1542   :  { %v3439_v43 = vpop.xlane.xlu1 %3438 }
0x1543   :  { %v3445_v42 = vsub.f32 %v3421_v16, %v3439_v43 }
0x1545   :  { %v3456_v54 = vmul.f32 1.442695, %v3445_v42 }
0x1547   :  { %7306 = vpow2.f32 %v3456_v54 }
0x1554   :  { %v8742_v2 = vpop.eup %7306 }
0x1555   :  { %v3473_v0 = vsel %vm658_vm7, %v8742_v2, 0.0 }
0x1556   :  { %3468 = vadd.xlane.f32.xlu1 %v3467_v60 }
0x155a   :  { %3471 = vadd.xlane.f32.xlu0 %v3470_v50 }
0x1567   :  { %3794 = vrot.lane.b32.xlu1 %v8627_v6, %s7447_s0 }
0x1570   :  { %3686 = vrot.lane.b32.xlu0 %v8609_v5, %s7448_s3 }
0x1574   :  { %3688 = vrot.lane.b32.xlu0 %v8617_v35, %s7448_s3 }
0x1578   :  { %3790 = vrot.lane.b32.xlu0 %v8623_v3, %s7448_s3 }
0x157c   :  { %3974 = vrot.lane.b32.xlu0 %v8617_v35, %s7449_s2 }
0x1580   :  { %4072 = vrot.lane.b32.xlu0 %v8621_v20, %s7449_s2 }
0x1584   :  { %4070 = vrot.lane.b32.xlu0 %v8623_v3, %s7449_s2 }
0x158b   :  { %3474 = vadd.xlane.f32.xlu1 %v3473_v0 }
0x159c   :  { %3788 = vrot.lane.b32.xlu1 %v8627_v6, %s7448_s3 }
0x15a0   :  { %3792 = vrot.lane.b32.xlu1 %v8621_v20, %s7448_s3 }
0x15a4   :  { %3972 = vrot.lane.b32.xlu1 %v8609_v5, %s7449_s2 }
0x15a6   :  { %v3460_v41 = vpop.xlane.xlu0 %3459 }
0x15a7   :  { %7308 = vrcp.f32 %v3460_v41 }
0x15a8   :  { %3970 = vrot.lane.b32.xlu1 %v8613_v32, %s7449_s2 }
0x15aa   :  { %v3463_v45 = vpop.xlane.xlu1 %3462 }
0x15ab   :  { %7310 = vrcp.f32 %v3463_v45 }
0x15ac   :  { %4176 = vrot.lane.b32.xlu1 %v8617_v35, %s7450_s25 }
0x15ae   :  { %v3466_v47 = vpop.xlane.xlu0 %3465 }
0x15af   :  { %7312 = vrcp.f32 %v3466_v47 }
0x15b0   :  { %4174 = vrot.lane.b32.xlu1 %v8609_v5, %s7450_s25 }
0x15b4   :  { %v7309_v27 = vpop.eup %7308  ;;  %4068 = vrot.lane.b32.xlu1 %v8627_v6, %s7449_s2 }
0x15b5   :  { %v3482_v12 = vmul.f32 %v7309_v27, %v7297_v58 }
0x15b7   :  { %6845 = vmatmul.mubr.msk.f32.vlgmr.msra.gmra.mxu0 %vm658_vm7, %v3482_v12 }
0x15b8   :  { %v7311_v53 = vpop.eup %7310  ;;  %6869 = vmatpush3.xpose.msk.msra.mxu0 %vm452_vm5, %v8676_v59  ;;  %6847 = vmatprep.mubr.msk.f32.mxu0 %vm7444_vm4, %v7442_v1  ;;  %v3685_v59 = vpop.permute.xlu0 %3684 }
0x15b9   :  { %6870 = vmatprep.subr.mxu0 %v7442_v1  ;;  %v3483_v22 = vmul.f32 %v7311_v53, %v7299_v13 }
0x15bb   :  { %6848 = vmatmul.mubr.msk.f32.gmra.mxu0 %vm658_vm7, %v3483_v22 }
0x15bc   :  { %v7313_v15 = vpop.eup %7312  ;;  %6871 = vmatpush3.xpose.msk.msra.mxu0 %vm452_vm5, %v8683_v9  ;;  %6850 = vmatprep.mubr.msk.f32.mxu0 %vm7444_vm4, %v7442_v1  ;;  %v3797_v9 = vpop.permute.xlu1 %3796 }
0x15bd   :  { %6872 = vmatprep.subr.mxu0 %v7442_v1  ;;  %v3484_v48 = vmul.f32 %v7313_v15, %v7301_v31 }
0x15bf   :  { %6851 = vmatmul.mubr.msk.f32.gmra.mxu0 %vm658_vm7, %v3484_v48 }
0x15c0   :  { %6873 = vmatpush3.xpose.msk.msra.mxu0 %vm452_vm5, %v3691_v7  ;;  %6874 = vmatprep.mubr.msk.f32.mxu0 %vm7444_vm4, %v7442_v1 }
0x15c1   :  { %6898 = vmatprep.subr.mxu0 %v7442_v1 }
0x15c3   :  { %6875 = vmatmul.mubr.msk.f32.vlgmr.msra.gmra.mxu0 %vm452_vm5, %v3685_v59 }
0x15c4   :  { %6877 = vmatprep.mubr.msk.f32.mxu0 %vm7444_vm4, %v7442_v1 }
0x15df   :  { %v3469_v16 = vpop.xlane.xlu1 %3468 }
0x15e0   :  { %7314 = vrcp.f32 %v3469_v16 }
0x15e3   :  { %v3472_v63 = vpop.xlane.xlu0 %3471  ;;  %v3795_v23 = vpop.permute.xlu1 %3794 }
0x15e4   :  { %7316 = vrcp.f32 %v3472_v63 }
0x15e7   :  { %v3687_v51 = vpop.permute.xlu0 %3686 }
0x15e8   :  { %6878 = vmatmul.mubr.msk.f32.gmra.mxu0 %vm452_vm5, %v3687_v51 }
0x15e9   :  { %6880 = vmatprep.mubr.msk.f32.mxu0 %vm7444_vm4, %v7442_v1 }
0x15eb   :  { %v3689_v11 = vpop.permute.xlu0 %3688 }
0x15ec   :  { %6881 = vmatmul.mubr.msk.f32.gmra.mxu0 %vm452_vm5, %v3689_v11 }
0x15ed   :  { %v7315_v10 = vpop.eup %7314  ;;  %6904 = vmatprep.mubr.msk.f32.mxu0 %vm7444_vm4, %v7442_v1 }
0x15ee   :  { %v3485_v36 = vmul.f32 %v7315_v10, %v8718_v33 }
0x15ef   :  { %v3791_v18 = vpop.permute.xlu0 %3790 }
0x15f0   :  { %6860 = vmatmul.mubr.msk.f32.vlgmr.msra.gmra.mxu1 %vm658_vm7, %v3485_v36 }
0x15f1   :  { %v7317_v40 = vpop.eup %7316  ;;  %6884 = vmatpush3.xpose.msk.msra.mxu1 %vm452_vm5, %v8728_v24  ;;  %6862 = vmatprep.mubr.msk.f32.mxu1 %vm7444_vm4, %v7442_v1 }
0x15f2   :  { %6885 = vmatprep.subr.mxu1 %v7442_v1  ;;  %v3486_v56 = vmul.f32 %v7317_v40, %v8722_v44 }
0x15f3   :  { %v3975_v34 = vpop.permute.xlu0 %3974 }
0x15f4   :  { %6863 = vmatmul.mubr.msk.f32.gmra.mxu1 %vm658_vm7, %v3486_v56  ;;  %6899 = vmatpush3.msra.mxu0 %v3975_v34 }
0x15f5   :  { %6886 = vmatpush3.xpose.msk.msra.mxu1 %vm452_vm5, %v3797_v9  ;;  %6900 = vmatprep.subr.mxu0 %v7442_v1 }
0x15f6   :  { %6887 = vmatprep.subr.mxu1 %v7442_v1  ;;  %6865 = vmatprep.mubr.msk.f32.mxu1 %vm7444_vm4, %v7442_v1 }
0x15f7   :  { %v4073_v17 = vpop.permute.xlu0 %4072 }
0x15f9   :  { %6888 = vmatpush3.xpose.msk.msra.mxu1 %vm452_vm5, %v3795_v23 }
0x15fa   :  { %6913 = vmatprep.subr.mxu1 %v7442_v1 }
0x15fb   :  { %v4071_v4 = vpop.permute.xlu0 %4070 }
0x1614   :  { %v3475_v58 = vpop.xlane.xlu1 %3474 }
0x1615   :  { %7318 = vrcp.f32 %v3475_v58 }
0x1618   :  { %v3789_v25 = vpop.permute.xlu1 %3788 }
0x161c   :  { %v3793_v13 = vpop.permute.xlu1 %3792 }
0x1620   :  { %v3973_v55 = vpop.permute.xlu1 %3972 }
0x1621   :  { %6901 = vmatpush3.msra.mxu0 %v3973_v55 }
0x1622   :  { %v7319_v31 = vpop.eup %7318  ;;  %6902 = vmatprep.subr.mxu0 %v7442_v1 }
0x1623   :  { %v3487_v61 = vmul.f32 %v7319_v31, %v8742_v2 }
0x1624   :  { %v3971_v14 = vpop.permute.xlu1 %3970 }
0x1625   :  { %6866 = vmatmul.mubr.msk.f32.gmra.mxu1 %vm658_vm7, %v3487_v61  ;;  %6903 = vmatpush3.msra.mxu0 %v3971_v14 }
0x1626   :  { %6889 = vmatprep.mubr.msk.f32.mxu1 %vm7444_vm4, %v7442_v1  ;;  %6928 = vmatprep.subr.mxu0 %v7442_v1 }
0x1628   :  { %v8808_v29 = vpop.permute.xlu1 %4176 }
0x1629   :  { %6890 = vmatmul.mubr.msk.f32.vlgmr.msra.gmra.mxu1 %vm452_vm5, %v3789_v25 }
0x162a   :  { %6914 = vmatpush3.msra.mxu1 %v4073_v17  ;;  %6892 = vmatprep.mubr.msk.f32.mxu1 %vm7444_vm4, %v7442_v1 }
0x162b   :  { %6915 = vmatprep.subr.mxu1 %v7442_v1 }
0x162c   :  { %6916 = vmatpush3.msra.mxu1 %v4071_v4  ;;  %v8814_v26 = vpop.permute.xlu1 %4174 }
0x162d   :  { %6893 = vmatmul.mubr.msk.f32.gmra.mxu1 %vm452_vm5, %v3791_v18  ;;  %6917 = vmatprep.subr.mxu1 %v7442_v1 }
0x162e   :  { %6895 = vmatprep.mubr.msk.f32.mxu1 %vm7444_vm4, %v7442_v1 }
0x1630   :  { %v4069_v39 = vpop.permute.xlu1 %4068 }
0x1631   :  { %6896 = vmatmul.mubr.msk.f32.gmra.mxu1 %vm452_vm5, %v3793_v13 }
0x1632   :  { %6918 = vmatpush3.msra.mxu1 %v4069_v39  ;;  %6919 = vmatprep.mubr.msk.f32.mxu1 %vm7444_vm4, %v7442_v1 }
0x1633   :  { %6943 = vmatprep.subr.mxu1 %v7442_v1 }
0x1677   :  { %v8824_v33 = vpop.f32.mrf.mxu0 }
0x1679   :  { %v6846_v60 = vpop.f32.mrf.mxu0 }
0x167b   :  { %v8826_v44 = vpop.f32.mrf.mxu0 }
0x167d   :  { %v6849_v50 = vpop.f32.mrf.mxu0 }
0x167f   :  { %v8828_v24 = vpop.f32.mrf.mxu0 }
0x1681   :  { %v6852_v43 = vpop.f32.mrf.mxu0 }
0x1683   :  { %v3774_v42 = vpop.f32.mrf.mxu0 }
0x1684   :  { %v3892_v54 = vmul.f32 0.35355338, %v3774_v42 }
0x1685   :  { %v6876_v2 = vpop.f32.mrf.mxu0 }
0x1686   :  { %v3898_v0 = vadd.f32 %v3892_v54, %v7851_v57 }
0x1688   :  { %v3904_v7 = vsel %vm658_vm7, %v3898_v0, -inf }
0x1689   :  { %3905 = vmax.xlane.f32.xlu0 %v3904_v7 }
0x16a8   :  { %v3779_v41 = vpop.f32.mrf.mxu0 }
0x16a9   :  { %v3893_v45 = vmul.f32 0.35355338, %v3779_v41 }
0x16aa   :  { %v6879_v47 = vpop.f32.mrf.mxu0 }
0x16ab   :  { %v3899_v27 = vadd.f32 %v3893_v45, %v7851_v57 }
0x16ac   :  { %v3784_v12 = vpop.f32.mrf.mxu0 }
0x16ad   :  { %v3894_v53 = vmul.f32 0.35355338, %v3784_v12  ;;  %v3907_v22 = vsel %vm658_vm7, %v3899_v27, -inf }
0x16ae   :  { %3908 = vmax.xlane.f32.xlu1 %v3907_v22  ;;  %v6882_v15 = vpop.f32.mrf.mxu0 }
0x16af   :  { %v3900_v48 = vadd.f32 %v3894_v53, %v7851_v57 }
0x16b0   :  { %v8835_v59 = vpop.f32.mrf.mxu1 }
0x16b1   :  { %v3910_v9 = vsel %vm658_vm7, %v3900_v48, -inf }
0x16b2   :  { %v6861_v16 = vpop.f32.mrf.mxu1  ;;  %3911 = vmax.xlane.f32.xlu0 %v3910_v9 }
0x16b4   :  { %v8838_v63 = vpop.f32.mrf.mxu1 }
0x16b6   :  { %v6864_v51 = vpop.f32.mrf.mxu1 }
0x16bf   :  { %4280 = vrot.lane.b32.xlu1 %v8621_v20, %s7450_s25 }
0x16e5   :  { %v8842_v11 = vpop.f32.mrf.mxu1 }
0x16e7   :  { %v6867_v10 = vpop.f32.mrf.mxu1 }
0x16e9   :  { %v3878_v36 = vpop.f32.mrf.mxu1 }
0x16ea   :  { %v3895_v18 = vmul.f32 0.35355338, %v3878_v36 }
0x16eb   :  { %v6891_v40 = vpop.f32.mrf.mxu1 }
0x16ec   :  { %v3901_v56 = vadd.f32 %v3895_v18, %v7851_v57 }
0x16ed   :  { %v3883_v34 = vpop.f32.mrf.mxu1 }
0x16ee   :  { %v3896_v23 = vmul.f32 0.35355338, %v3883_v34  ;;  %v3913_v58 = vsel %vm658_vm7, %v3901_v56, -inf }
0x16ef   :  { %3914 = vmax.xlane.f32.xlu0 %v3913_v58  ;;  %v6894_v25 = vpop.f32.mrf.mxu1 }
0x16f0   :  { %v3902_v13 = vadd.f32 %v3896_v23, %v7851_v57 }
0x16f1   :  { %v3888_v55 = vpop.f32.mrf.mxu1 }
0x16f2   :  { %v3897_v31 = vmul.f32 0.35355338, %v3888_v55  ;;  %v3916_v61 = vsel %vm658_vm7, %v3902_v13, -inf }
0x16f3   :  { %3917 = vmax.xlane.f32.xlu0 %v3916_v61  ;;  %v6897_v14 = vpop.f32.mrf.mxu1 }
0x16f4   :  { %v3903_v17 = vadd.f32 %v3897_v31, %v7851_v57 }
0x16f6   :  { %v3919_v4 = vsel %vm658_vm7, %v3903_v17, -inf }
0x16f7   :  { %3920 = vmax.xlane.f32.xlu1 %v3919_v4 }
0x1709   :  { %4172 = vrot.lane.b32.xlu0 %v8613_v32, %s7450_s25 }
0x1712   :  { %v3906_v39 = vpop.xlane.xlu0 %3905 }
0x1713   :  { %v3922_v60 = vsub.f32 %v3898_v0, %v3906_v39 }
0x1715   :  { %v3928_v50 = vmul.f32 1.442695, %v3922_v60 }
0x1717   :  { %7320 = vpow2.f32 %v3928_v50 }
0x1724   :  { %v7321_v43 = vpop.eup %7320 }
0x1725   :  { %v3940_v42 = vsel %vm658_vm7, %v7321_v43, 0.0 }
0x1728   :  { %3941 = vadd.xlane.f32.xlu0 %v3940_v42 }
0x1737   :  { %v3909_v54 = vpop.xlane.xlu1 %3908 }
0x1738   :  { %v3923_v2 = vsub.f32 %v3899_v27, %v3909_v54 }
0x173a   :  { %v3930_v7 = vmul.f32 1.442695, %v3923_v2 }
0x173b   :  { %v3912_v41 = vpop.xlane.xlu0 %3911 }
0x173c   :  { %7322 = vpow2.f32 %v3930_v7  ;;  %v3924_v45 = vsub.f32 %v3900_v48, %v3912_v41 }
0x173e   :  { %v3932_v47 = vmul.f32 1.442695, %v3924_v45 }
0x1740   :  { %7324 = vpow2.f32 %v3932_v47 }
0x1749   :  { %v7323_v12 = vpop.eup %7322 }
0x174a   :  { %v3943_v53 = vsel %vm658_vm7, %v7323_v12, 0.0 }
0x174b   :  { %3944 = vadd.xlane.f32.xlu1 %v3943_v53 }
0x174d   :  { %v7325_v22 = vpop.eup %7324 }
0x174e   :  { %v3946_v0 = vsel %vm658_vm7, %v7325_v22, 0.0 }
0x174f   :  { %3947 = vadd.xlane.f32.xlu0 %v3946_v0 }
0x175c   :  { %4278 = vrot.lane.b32.xlu1 %v8623_v3, %s7450_s25 }
0x1765   :  { %4166 = vrot.lane.b32.xlu0 %v8613_v32, %s7451_s26 }
0x1778   :  { %v3915_v27 = vpop.xlane.xlu0 %3914 }
0x1779   :  { %v3925_v15 = vsub.f32 %v3901_v56, %v3915_v27  ;;  %v8869_v56 = vpop.permute.xlu1 %4280 }
0x177b   :  { %v3934_v9 = vmul.f32 1.442695, %v3925_v15 }
0x177c   :  { %v3918_v48 = vpop.xlane.xlu0 %3917 }
0x177d   :  { %7326 = vpow2.f32 %v3934_v9  ;;  %v3926_v16 = vsub.f32 %v3902_v13, %v3918_v48 }
0x177f   :  { %v3936_v51 = vmul.f32 1.442695, %v3926_v16 }
0x1780   :  { %v3921_v34 = vpop.xlane.xlu1 %3920  ;;  %v4173_v25 = vpop.permute.xlu0 %4172 }
0x1781   :  { %7328 = vpow2.f32 %v3936_v51  ;;  %v3927_v23 = vsub.f32 %v3903_v17, %v3921_v34 }
0x1783   :  { %v3938_v58 = vmul.f32 1.442695, %v3927_v23 }
0x1785   :  { %7330 = vpow2.f32 %v3938_v58 }
0x178a   :  { %v8859_v10 = vpop.eup %7326 }
0x178b   :  { %v3949_v36 = vsel %vm658_vm7, %v8859_v10, 0.0 }
0x178c   :  { %3950 = vadd.xlane.f32.xlu1 %v3949_v36 }
0x178e   :  { %v8863_v18 = vpop.eup %7328 }
0x178f   :  { %v3952_v40 = vsel %vm658_vm7, %v8863_v18, 0.0 }
0x1790   :  { %3953 = vadd.xlane.f32.xlu0 %v3952_v40 }
0x1792   :  { %v8883_v55 = vpop.eup %7330 }
0x1793   :  { %v3955_v14 = vsel %vm658_vm7, %v8883_v55, 0.0 }
0x179d   :  { %4276 = vrot.lane.b32.xlu1 %v8627_v6, %s7450_s25 }
0x17a6   :  { %4168 = vrot.lane.b32.xlu0 %v8609_v5, %s7451_s26 }
0x17aa   :  { %4170 = vrot.lane.b32.xlu0 %v8617_v35, %s7451_s26 }
0x17ae   :  { %4272 = vrot.lane.b32.xlu0 %v8623_v3, %s7451_s26 }
0x17b1   :  { %v3942_v13 = vpop.xlane.xlu0 %3941 }
0x17b2   :  { %7332 = vrcp.f32 %v3942_v13  ;;  %4456 = vrot.lane.b32.xlu0 %v8617_v35, %s7452_s27 }
0x17b6   :  { %4554 = vrot.lane.b32.xlu0 %v8621_v20, %s7452_s27 }
0x17ba   :  { %4552 = vrot.lane.b32.xlu0 %v8623_v3, %s7452_s27 }
0x17bf   :  { %v7333_v31 = vpop.eup %7332 }
0x17c0   :  { %v3964_v61 = vmul.f32 %v7333_v31, %v7321_v43 }
0x17c1   :  { %3956 = vadd.xlane.f32.xlu1 %v3955_v14 }
0x17c2   :  { %6905 = vmatmul.mubr.msk.f32.vlgmr.msra.gmra.mxu0 %vm658_vm7, %v3964_v61 }
0x17c3   :  { %6929 = vmatpush3.xpose.msk.msra.mxu0 %vm452_vm5, %v8808_v29  ;;  %6907 = vmatprep.mubr.msk.f32.mxu0 %vm7444_vm4, %v7442_v1 }
0x17c4   :  { %6930 = vmatprep.subr.mxu0 %v7442_v1 }
0x17c7   :  { %6931 = vmatpush3.xpose.msk.msra.mxu0 %vm452_vm5, %v8814_v26 }
0x17c8   :  { %6932 = vmatprep.subr.mxu0 %v7442_v1 }
0x17cb   :  { %6933 = vmatpush3.xpose.msk.msra.mxu0 %vm452_vm5, %v4173_v25 }
0x17cc   :  { %6958 = vmatprep.subr.mxu0 %v7442_v1 }
0x17d2   :  { %4270 = vrot.lane.b32.xlu1 %v8627_v6, %s7451_s26 }
0x17d4   :  { %v3945_v17 = vpop.xlane.xlu1 %3944 }
0x17d5   :  { %7334 = vrcp.f32 %v3945_v17 }
0x17d6   :  { %4274 = vrot.lane.b32.xlu1 %v8621_v20, %s7451_s26 }
0x17d8   :  { %v3948_v29 = vpop.xlane.xlu0 %3947  ;;  %v4279_v43 = vpop.permute.xlu1 %4278 }
0x17d9   :  { %7336 = vrcp.f32 %v3948_v29 }
0x17da   :  { %4454 = vrot.lane.b32.xlu1 %v8609_v5, %s7452_s27 }
0x17dc   :  { %v4167_v50 = vpop.permute.xlu0 %4166 }
0x17de   :  { %4452 = vrot.lane.b32.xlu1 %v8613_v32, %s7452_s27 }
0x17e2   :  { %v7335_v26 = vpop.eup %7334  ;;  %4658 = vrot.lane.b32.xlu1 %v8617_v35, %s7453_s4 }
0x17e3   :  { %v3965_v4 = vmul.f32 %v7335_v26, %v7323_v12 }
0x17e5   :  { %6908 = vmatmul.mubr.msk.f32.gmra.mxu0 %vm658_vm7, %v3965_v4 }
0x17e6   :  { %v7337_v39 = vpop.eup %7336  ;;  %4656 = vrot.lane.b32.xlu1 %v8609_v5, %s7453_s4  ;;  %6910 = vmatprep.mubr.msk.f32.mxu0 %vm7444_vm4, %v7442_v1 }
0x17e7   :  { %v3966_v60 = vmul.f32 %v7337_v39, %v7325_v22 }
0x17e9   :  { %6911 = vmatmul.mubr.msk.f32.gmra.mxu0 %vm658_vm7, %v3966_v60 }
0x17ea   :  { %4550 = vrot.lane.b32.xlu1 %v8627_v6, %s7452_s27  ;;  %6934 = vmatprep.mubr.msk.f32.mxu0 %vm7444_vm4, %v7442_v1 }
0x17ed   :  { %6935 = vmatmul.mubr.msk.f32.vlgmr.msra.gmra.mxu0 %vm452_vm5, %v4167_v50 }
0x17ee   :  { %6937 = vmatprep.mubr.msk.f32.mxu0 %vm7444_vm4, %v7442_v1 }
0x1815   :  { %v3951_v42 = vpop.xlane.xlu1 %3950 }
0x1816   :  { %7338 = vrcp.f32 %v3951_v42 }
0x1819   :  { %v3954_v54 = vpop.xlane.xlu0 %3953  ;;  %v4277_v0 = vpop.permute.xlu1 %4276 }
0x181a   :  { %7340 = vrcp.f32 %v3954_v54 }
0x181d   :  { %v4169_v2 = vpop.permute.xlu0 %4168 }
0x181e   :  { %6938 = vmatmul.mubr.msk.f32.gmra.mxu0 %vm452_vm5, %v4169_v2 }
0x181f   :  { %6940 = vmatprep.mubr.msk.f32.mxu0 %vm7444_vm4, %v7442_v1 }
0x1821   :  { %v4171_v7 = vpop.permute.xlu0 %4170 }
0x1822   :  { %6941 = vmatmul.mubr.msk.f32.gmra.mxu0 %vm452_vm5, %v4171_v7 }
0x1823   :  { %v7339_v41 = vpop.eup %7338  ;;  %6964 = vmatprep.mubr.msk.f32.mxu0 %vm7444_vm4, %v7442_v1 }
0x1824   :  { %v3967_v45 = vmul.f32 %v7339_v41, %v8859_v10 }
0x1825   :  { %v4273_v47 = vpop.permute.xlu0 %4272 }
0x1826   :  { %6920 = vmatmul.mubr.msk.f32.vlgmr.msra.gmra.mxu1 %vm658_vm7, %v3967_v45 }
0x1827   :  { %v7341_v12 = vpop.eup %7340  ;;  %6944 = vmatpush3.xpose.msk.msra.mxu1 %vm452_vm5, %v8869_v56  ;;  %6922 = vmatprep.mubr.msk.f32.mxu1 %vm7444_vm4, %v7442_v1 }
0x1828   :  { %6945 = vmatprep.subr.mxu1 %v7442_v1  ;;  %v3968_v53 = vmul.f32 %v7341_v12, %v8863_v18 }
0x1829   :  { %v4457_v22 = vpop.permute.xlu0 %4456 }
0x182a   :  { %6923 = vmatmul.mubr.msk.f32.gmra.mxu1 %vm658_vm7, %v3968_v53  ;;  %6959 = vmatpush3.msra.mxu0 %v4457_v22 }
0x182b   :  { %6946 = vmatpush3.xpose.msk.msra.mxu1 %vm452_vm5, %v4279_v43  ;;  %6960 = vmatprep.subr.mxu0 %v7442_v1 }
0x182c   :  { %6947 = vmatprep.subr.mxu1 %v7442_v1  ;;  %6925 = vmatprep.mubr.msk.f32.mxu1 %vm7444_vm4, %v7442_v1 }
0x182d   :  { %v4555_v36 = vpop.permute.xlu0 %4554 }
0x182f   :  { %6948 = vmatpush3.xpose.msk.msra.mxu1 %vm452_vm5, %v4277_v0 }
0x1830   :  { %6973 = vmatprep.subr.mxu1 %v7442_v1 }
0x1831   :  { %v4553_v40 = vpop.permute.xlu0 %4552 }
0x184a   :  { %v3957_v27 = vpop.xlane.xlu1 %3956 }
0x184b   :  { %7342 = vrcp.f32 %v3957_v27 }
0x184e   :  { %v4271_v15 = vpop.permute.xlu1 %4270 }
0x1852   :  { %v4275_v9 = vpop.permute.xlu1 %4274 }
0x1856   :  { %v4455_v48 = vpop.permute.xlu1 %4454 }
0x1857   :  { %6961 = vmatpush3.msra.mxu0 %v4455_v48 }
0x1858   :  { %v7343_v16 = vpop.eup %7342  ;;  %6962 = vmatprep.subr.mxu0 %v7442_v1 }
0x1859   :  { %v3969_v51 = vmul.f32 %v7343_v16, %v8883_v55 }
0x185a   :  { %v4453_v10 = vpop.permute.xlu1 %4452 }
0x185b   :  { %6926 = vmatmul.mubr.msk.f32.gmra.mxu1 %vm658_vm7, %v3969_v51  ;;  %6963 = vmatpush3.msra.mxu0 %v4453_v10 }
0x185c   :  { %6949 = vmatprep.mubr.msk.f32.mxu1 %vm7444_vm4, %v7442_v1  ;;  %6988 = vmatprep.subr.mxu0 %v7442_v1 }
0x185e   :  { %v8949_v18 = vpop.permute.xlu1 %4658 }
0x185f   :  { %6950 = vmatmul.mubr.msk.f32.vlgmr.msra.gmra.mxu1 %vm452_vm5, %v4271_v15 }
0x1860   :  { %6974 = vmatpush3.msra.mxu1 %v4555_v36  ;;  %6952 = vmatprep.mubr.msk.f32.mxu1 %vm7444_vm4, %v7442_v1 }
0x1861   :  { %6975 = vmatprep.subr.mxu1 %v7442_v1 }
0x1862   :  { %6976 = vmatpush3.msra.mxu1 %v4553_v40  ;;  %v8955_v56 = vpop.permute.xlu1 %4656 }
0x1863   :  { %6953 = vmatmul.mubr.msk.f32.gmra.mxu1 %vm452_vm5, %v4273_v47  ;;  %6977 = vmatprep.subr.mxu1 %v7442_v1 }
0x1864   :  { %6955 = vmatprep.mubr.msk.f32.mxu1 %vm7444_vm4, %v7442_v1 }
0x1866   :  { %v4551_v34 = vpop.permute.xlu1 %4550 }
0x1867   :  { %6956 = vmatmul.mubr.msk.f32.gmra.mxu1 %vm452_vm5, %v4275_v9 }
0x1868   :  { %6978 = vmatpush3.msra.mxu1 %v4551_v34  ;;  %6979 = vmatprep.mubr.msk.f32.mxu1 %vm7444_vm4, %v7442_v1 }
0x1869   :  { %7003 = vmatprep.subr.mxu1 %v7442_v1 }
0x1882   :  { %v8965_v23 = vpop.f32.mrf.mxu0 }
0x1884   :  { %v6906_v58 = vpop.f32.mrf.mxu0 }
0x18a5   :  { %v8967_v25 = vpop.f32.mrf.mxu0 }
0x18a7   :  { %v6909_v13 = vpop.f32.mrf.mxu0 }
0x18a9   :  { %v8969_v55 = vpop.f32.mrf.mxu0 }
0x18ab   :  { %v6912_v31 = vpop.f32.mrf.mxu0 }
0x18ad   :  { %v4256_v61 = vpop.f32.mrf.mxu0 }
0x18ae   :  { %v4374_v14 = vmul.f32 0.35355338, %v4256_v61 }
0x18af   :  { %v6936_v17 = vpop.f32.mrf.mxu0 }
0x18b0   :  { %v4380_v29 = vadd.f32 %v4374_v14, %v7851_v57 }
0x18b2   :  { %v4386_v26 = vsel %vm658_vm7, %v4380_v29, -inf }
0x18b3   :  { %4387 = vmax.xlane.f32.xlu0 %v4386_v26 }
0x18de   :  { %v4261_v4 = vpop.f32.mrf.mxu0 }
0x18df   :  { %v4375_v39 = vmul.f32 0.35355338, %v4261_v4 }
0x18e0   :  { %v6939_v60 = vpop.f32.mrf.mxu0 }
0x18e1   :  { %v4381_v50 = vadd.f32 %v4375_v39, %v7851_v57 }
0x18e2   :  { %v4266_v43 = vpop.f32.mrf.mxu0 }
0x18e3   :  { %v4376_v42 = vmul.f32 0.35355338, %v4266_v43  ;;  %v4389_v54 = vsel %vm658_vm7, %v4381_v50, -inf }
0x18e4   :  { %4390 = vmax.xlane.f32.xlu1 %v4389_v54  ;;  %v6942_v2 = vpop.f32.mrf.mxu0 }
0x18e5   :  { %v4382_v7 = vadd.f32 %v4376_v42, %v7851_v57 }
0x18e6   :  { %v8976_v41 = vpop.f32.mrf.mxu1 }
0x18e7   :  { %v4392_v45 = vsel %vm658_vm7, %v4382_v7, -inf }
0x18e8   :  { %v6921_v47 = vpop.f32.mrf.mxu1  ;;  %4393 = vmax.xlane.f32.xlu0 %v4392_v45 }
0x18ea   :  { %v8979_v12 = vpop.f32.mrf.mxu1 }
0x18ec   :  { %v6924_v53 = vpop.f32.mrf.mxu1 }
0x18f5   :  { %4762 = vrot.lane.b32.xlu1 %v8621_v20, %s7453_s4 }
0x191b   :  { %v8983_v22 = vpop.f32.mrf.mxu1 }
0x191d   :  { %v6927_v0 = vpop.f32.mrf.mxu1 }
0x191f   :  { %v4360_v27 = vpop.f32.mrf.mxu1 }
0x1920   :  { %v4377_v15 = vmul.f32 0.35355338, %v4360_v27 }
0x1921   :  { %v6951_v9 = vpop.f32.mrf.mxu1 }
0x1922   :  { %v4383_v48 = vadd.f32 %v4377_v15, %v7851_v57 }
0x1923   :  { %v4365_v16 = vpop.f32.mrf.mxu1 }
0x1924   :  { %v4378_v51 = vmul.f32 0.35355338, %v4365_v16  ;;  %v4395_v10 = vsel %vm658_vm7, %v4383_v48, -inf }
0x1925   :  { %4396 = vmax.xlane.f32.xlu0 %v4395_v10  ;;  %v6954_v36 = vpop.f32.mrf.mxu1 }
0x1926   :  { %v4384_v40 = vadd.f32 %v4378_v51, %v7851_v57 }
0x1927   :  { %v4370_v34 = vpop.f32.mrf.mxu1 }
0x1928   :  { %v4379_v58 = vmul.f32 0.35355338, %v4370_v34  ;;  %v4398_v13 = vsel %vm658_vm7, %v4384_v40, -inf }
0x1929   :  { %4399 = vmax.xlane.f32.xlu0 %v4398_v13  ;;  %v6957_v31 = vpop.f32.mrf.mxu1 }
0x192a   :  { %v4385_v61 = vadd.f32 %v4379_v58, %v7851_v57 }
0x192c   :  { %v4401_v14 = vsel %vm658_vm7, %v4385_v61, -inf }
0x192d   :  { %4402 = vmax.xlane.f32.xlu1 %v4401_v14 }
0x193c   :  { %v4388_v17 = vpop.xlane.xlu0 %4387 }
0x193d   :  { %v4404_v26 = vsub.f32 %v4380_v29, %v4388_v17 }
0x193f   :  { %4654 = vrot.lane.b32.xlu0 %v8613_v32, %s7453_s4  ;;  %v4410_v4 = vmul.f32 1.442695, %v4404_v26 }
0x1941   :  { %7344 = vpow2.f32 %v4410_v4 }
0x194e   :  { %v7345_v39 = vpop.eup %7344 }
0x194f   :  { %v4422_v60 = vsel %vm658_vm7, %v7345_v39, 0.0 }
0x195e   :  { %4423 = vadd.xlane.f32.xlu0 %v4422_v60 }
0x196d   :  { %v4391_v43 = vpop.xlane.xlu1 %4390 }
0x196e   :  { %v4405_v42 = vsub.f32 %v4381_v50, %v4391_v43 }
0x1970   :  { %v4412_v54 = vmul.f32 1.442695, %v4405_v42 }
0x1971   :  { %v4394_v2 = vpop.xlane.xlu0 %4393  ;;  %v4763_v13 = vpop.permute.xlu1 %4762 }
0x1972   :  { %7346 = vpow2.f32 %v4412_v54  ;;  %v4406_v45 = vsub.f32 %v4382_v7, %v4394_v2 }
0x1974   :  { %v4414_v47 = vmul.f32 1.442695, %v4406_v45 }
0x1976   :  { %7348 = vpow2.f32 %v4414_v47 }
0x197f   :  { %v7347_v53 = vpop.eup %7346 }
0x1980   :  { %v4425_v0 = vsel %vm658_vm7, %v7347_v53, 0.0 }
0x1981   :  { %4426 = vadd.xlane.f32.xlu1 %v4425_v0 }
0x1983   :  { %v7349_v27 = vpop.eup %7348 }
0x1984   :  { %v4428_v29 = vsel %vm658_vm7, %v7349_v27, 0.0 }
0x1985   :  { %4429 = vadd.xlane.f32.xlu0 %v4428_v29 }
0x1992   :  { %4760 = vrot.lane.b32.xlu1 %v8623_v3, %s7453_s4 }
0x199b   :  { %4648 = vrot.lane.b32.xlu0 %v8613_v32, %s7454_s28 }
0x19ae   :  { %v4397_v50 = vpop.xlane.xlu0 %4396 }
0x19af   :  { %v4407_v15 = vsub.f32 %v4383_v48, %v4397_v50 }
0x19b1   :  { %v4416_v9 = vmul.f32 1.442695, %v4407_v15 }
0x19b2   :  { %v4400_v7 = vpop.xlane.xlu0 %4399 }
0x19b3   :  { %7350 = vpow2.f32 %v4416_v9  ;;  %v4408_v16 = vsub.f32 %v4384_v40, %v4400_v7 }
0x19b5   :  { %v4418_v51 = vmul.f32 1.442695, %v4408_v16 }
0x19b6   :  { %v4403_v31 = vpop.xlane.xlu1 %4402  ;;  %v4655_v14 = vpop.permute.xlu0 %4654 }
0x19b7   :  { %7352 = vpow2.f32 %v4418_v51  ;;  %v4409_v48 = vsub.f32 %v4385_v61, %v4403_v31 }
0x19b9   :  { %v4420_v40 = vmul.f32 1.442695, %v4409_v48 }
0x19bb   :  { %7354 = vpow2.f32 %v4420_v40 }
0x19c0   :  { %v7351_v10 = vpop.eup %7350 }
0x19c1   :  { %v4431_v36 = vsel %vm658_vm7, %v7351_v10, 0.0 }
0x19c2   :  { %4432 = vadd.xlane.f32.xlu1 %v4431_v36 }
0x19c4   :  { %v7353_v34 = vpop.eup %7352 }
0x19c5   :  { %v4434_v58 = vsel %vm658_vm7, %v7353_v34, 0.0 }
0x19c6   :  { %4435 = vadd.xlane.f32.xlu0 %v4434_v58 }
0x19c8   :  { %v7355_v26 = vpop.eup %7354 }
0x19c9   :  { %v4437_v43 = vsel %vm658_vm7, %v7355_v26, 0.0 }
0x19d3   :  { %4758 = vrot.lane.b32.xlu1 %v8627_v6, %s7453_s4 }
0x19dc   :  { %4650 = vrot.lane.b32.xlu0 %v8609_v5, %s7454_s28 }
0x19e0   :  { %4652 = vrot.lane.b32.xlu0 %v8617_v35, %s7454_s28 }
0x19e7   :  { %v4424_v17 = vpop.xlane.xlu0 %4423 }
0x19e8   :  { %7356 = vrcp.f32 %v4424_v17 }
0x19f5   :  { %v7357_v4 = vpop.eup %7356 }
0x19f6   :  { %v4446_v60 = vmul.f32 %v7357_v4, %v7345_v39 }
0x19f7   :  { %4438 = vadd.xlane.f32.xlu1 %v4437_v43 }
0x19f8   :  { %6965 = vmatmul.mubr.msk.f32.vlgmr.msra.gmra.mxu0 %vm658_vm7, %v4446_v60 }
0x19f9   :  { %6989 = vmatpush3.xpose.msk.msra.mxu0 %vm452_vm5, %v8949_v18  ;;  %6967 = vmatprep.mubr.msk.f32.mxu0 %vm7444_vm4, %v7442_v1 }
0x19fa   :  { %6990 = vmatprep.subr.mxu0 %v7442_v1 }
0x19fd   :  { %6991 = vmatpush3.xpose.msk.msra.mxu0 %vm452_vm5, %v8955_v56 }
0x19fe   :  { %6992 = vmatprep.subr.mxu0 %v7442_v1 }
0x1a01   :  { %6993 = vmatpush3.xpose.msk.msra.mxu0 %vm452_vm5, %v4655_v14 }
0x1a02   :  { %7018 = vmatprep.subr.mxu0 %v7442_v1 }
0x1a08   :  { %4752 = vrot.lane.b32.xlu1 %v8627_v6, %s7454_s28 }
0x1a0a   :  { %v4427_v61 = vpop.xlane.xlu1 %4426 }
0x1a0b   :  { %7358 = vrcp.f32 %v4427_v61 }
0x1a0e   :  { %v4430_v18 = vpop.xlane.xlu0 %4429  ;;  %v4761_v45 = vpop.permute.xlu1 %4760 }
0x1a0f   :  { %7360 = vrcp.f32 %v4430_v18 }
0x1a12   :  { %v4649_v2 = vpop.permute.xlu0 %4648 }
0x1a18   :  { %v7359_v39 = vpop.eup %7358 }
0x1a19   :  { %v4447_v42 = vmul.f32 %v7359_v39, %v7347_v53 }
0x1a1b   :  { %6968 = vmatmul.mubr.msk.f32.gmra.mxu0 %vm658_vm7, %v4447_v42 }
0x1a1c   :  { %v7361_v54 = vpop.eup %7360  ;;  %6970 = vmatprep.mubr.msk.f32.mxu0 %vm7444_vm4, %v7442_v1 }
0x1a1d   :  { %v4448_v56 = vmul.f32 %v7361_v54, %v7349_v27 }
0x1a1f   :  { %6971 = vmatmul.mubr.msk.f32.gmra.mxu0 %vm658_vm7, %v4448_v56 }
0x1a20   :  { %6994 = vmatprep.mubr.msk.f32.mxu0 %vm7444_vm4, %v7442_v1 }
0x1a23   :  { %6995 = vmatmul.mubr.msk.f32.vlgmr.msra.gmra.mxu0 %vm452_vm5, %v4649_v2 }
0x1a24   :  { %6997 = vmatprep.mubr.msk.f32.mxu0 %vm7444_vm4, %v7442_v1 }
0x1a4b   :  { %v4433_v47 = vpop.xlane.xlu1 %4432 }
0x1a4c   :  { %7362 = vrcp.f32 %v4433_v47 }
0x1a4f   :  { %v4436_v53 = vpop.xlane.xlu0 %4435  ;;  %v4759_v7 = vpop.permute.xlu1 %4758 }
0x1a50   :  { %7364 = vrcp.f32 %v4436_v53 }
0x1a53   :  { %v4651_v0 = vpop.permute.xlu0 %4650 }
0x1a54   :  { %6998 = vmatmul.mubr.msk.f32.gmra.mxu0 %vm452_vm5, %v4651_v0 }
0x1a55   :  { %7000 = vmatprep.mubr.msk.f32.mxu0 %vm7444_vm4, %v7442_v1 }
0x1a57   :  { %v4653_v27 = vpop.permute.xlu0 %4652 }
0x1a58   :  { %7001 = vmatmul.mubr.msk.f32.gmra.mxu0 %vm452_vm5, %v4653_v27 }
0x1a59   :  { %v7363_v29 = vpop.eup %7362  ;;  %7024 = vmatprep.mubr.msk.f32.mxu0 %vm7444_vm4, %v7442_v1 }
0x1a5a   :  { %v4449_v50 = vmul.f32 %v7363_v29, %v7351_v10 }
0x1a5c   :  { %6980 = vmatmul.mubr.msk.f32.vlgmr.msra.gmra.mxu1 %vm658_vm7, %v4449_v50 }
0x1a5d   :  { %v7365_v15 = vpop.eup %7364  ;;  %7004 = vmatpush3.xpose.msk.msra.mxu1 %vm452_vm5, %v4763_v13  ;;  %6982 = vmatprep.mubr.msk.f32.mxu1 %vm7444_vm4, %v7442_v1 }
0x1a5e   :  { %7005 = vmatprep.subr.mxu1 %v7442_v1  ;;  %v4450_v9 = vmul.f32 %v7365_v15, %v7353_v34 }
0x1a60   :  { %6983 = vmatmul.mubr.msk.f32.gmra.mxu1 %vm658_vm7, %v4450_v9 }
0x1a61   :  { %7006 = vmatpush3.xpose.msk.msra.mxu1 %vm452_vm5, %v4761_v45  ;;  %6985 = vmatprep.mubr.msk.f32.mxu1 %vm7444_vm4, %v7442_v1 }
0x1a62   :  { %7007 = vmatprep.subr.mxu1 %v7442_v1 }
0x1a65   :  { %7008 = vmatpush3.xpose.msk.msra.mxu1 %vm452_vm5, %v4759_v7 }
0x1a66   :  { %7033 = vmatprep.subr.mxu1 %v7442_v1 }
0x1a80   :  { %v4439_v16 = vpop.xlane.xlu1 %4438 }
0x1a81   :  { %7366 = vrcp.f32 %v4439_v16 }
0x1a84   :  { %v4753_v36 = vpop.permute.xlu1 %4752 }
0x1a8e   :  { %v7367_v51 = vpop.eup %7366 }
0x1a8f   :  { %v4451_v10 = vmul.f32 %v7367_v51, %v7355_v26 }
0x1a91   :  { %6986 = vmatmul.mubr.msk.f32.gmra.mxu1 %vm658_vm7, %v4451_v10 }
0x1a92   :  { %7009 = vmatprep.mubr.msk.f32.mxu1 %vm7444_vm4, %v7442_v1 }
0x1a95   :  { %7010 = vmatmul.mubr.msk.f32.vlgmr.msra.gmra.mxu1 %vm452_vm5, %v4753_v36 }
0x1a96   :  { %7012 = vmatprep.mubr.msk.f32.mxu1 %vm7444_vm4, %v7442_v1 }
0x1ab8   :  { %v9055_v34 = vpop.f32.mrf.mxu0 }
0x1aba   :  { %v6966_v58 = vpop.f32.mrf.mxu0 }
0x1adb   :  { %v9057_v13 = vpop.f32.mrf.mxu0 }
0x1add   :  { %v6969_v31 = vpop.f32.mrf.mxu0 }
0x1adf   :  { %v9059_v48 = vpop.f32.mrf.mxu0 }
0x1ae1   :  { %v6972_v40 = vpop.f32.mrf.mxu0 }
0x1ae3   :  { %v4738_v14 = vpop.f32.mrf.mxu0 }
0x1ae4   :  { %v4856_v17 = vmul.f32 0.35355338, %v4738_v14 }
0x1ae5   :  { %v6996_v26 = vpop.f32.mrf.mxu0 }
0x1ae6   :  { %v4862_v4 = vadd.f32 %v4856_v17, %v7851_v57 }
0x1ae8   :  { %v4868_v60 = vsel %vm658_vm7, %v4862_v4, -inf }
0x1ae9   :  { %4869 = vmax.xlane.f32.xlu0 %v4868_v60 }
0x1b14   :  { %v4743_v43 = vpop.f32.mrf.mxu0 }
0x1b15   :  { %v4857_v61 = vmul.f32 0.35355338, %v4743_v43 }
0x1b16   :  { %v6999_v18 = vpop.f32.mrf.mxu0 }
0x1b17   :  { %v4863_v39 = vadd.f32 %v4857_v61, %v7851_v57 }
0x1b18   :  { %v4748_v42 = vpop.f32.mrf.mxu0 }
0x1b19   :  { %v4858_v54 = vmul.f32 0.35355338, %v4748_v42  ;;  %v4871_v56 = vsel %vm658_vm7, %v4863_v39, -inf }
0x1b1a   :  { %4872 = vmax.xlane.f32.xlu1 %v4871_v56  ;;  %v7002_v2 = vpop.f32.mrf.mxu0 }
0x1b1b   :  { %v4864_v45 = vadd.f32 %v4858_v54, %v7851_v57 }
0x1b1c   :  { %v9066_v47 = vpop.f32.mrf.mxu1 }
0x1b1d   :  { %v4874_v53 = vsel %vm658_vm7, %v4864_v45, -inf }
0x1b1e   :  { %v6981_v0 = vpop.f32.mrf.mxu1  ;;  %4875 = vmax.xlane.f32.xlu0 %v4874_v53 }
0x1b20   :  { %v9069_v27 = vpop.f32.mrf.mxu1 }
0x1b22   :  { %v6984_v29 = vpop.f32.mrf.mxu1 }
0x1b2b   :  { %4936 = vrot.lane.b32.xlu1 %v8609_v5, %s9405_s6 }
0x1b2f   :  { %4934 = vrot.lane.b32.xlu1 %v8613_v32, %s9405_s6 }
0x1b33   :  { %4754 = vrot.lane.b32.xlu1 %v8623_v3, %s7454_s28 }
0x1b37   :  { %4756 = vrot.lane.b32.xlu1 %v8621_v20, %s7454_s28 }
0x1b51   :  { %v9079_v50 = vpop.f32.mrf.mxu1 }
0x1b53   :  { %v6987_v15 = vpop.f32.mrf.mxu1 }
0x1b55   :  { %v4842_v9 = vpop.f32.mrf.mxu1 }
0x1b56   :  { %v4859_v7 = vmul.f32 0.35355338, %v4842_v9 }
0x1b57   :  { %v7011_v16 = vpop.f32.mrf.mxu1 }
0x1b58   :  { %v4865_v51 = vadd.f32 %v4859_v7, %v7851_v57 }
0x1b5a   :  { %v4877_v10 = vsel %vm658_vm7, %v4865_v51, -inf }
0x1b5b   :  { %4878 = vmax.xlane.f32.xlu0 %v4877_v10 }
0x1b71   :  { %4938 = vrot.lane.b32.xlu0 %v8617_v35, %s9405_s6 }
0x1b72   :  { %v4870_v5 = vpop.xlane.xlu0 %4869 }
0x1b73   :  { %v4886_v32 = vsub.f32 %v4862_v4, %v4870_v5 }
0x1b75   :  { %5036 = vrot.lane.b32.xlu0 %v8621_v20, %s9405_s6  ;;  %v4892_v36 = vmul.f32 1.442695, %v4886_v32 }
0x1b77   :  { %7368 = vpow2.f32 %v4892_v36 }
0x1b84   :  { %v7369_v58 = vpop.eup %7368 }
0x1b85   :  { %v4904_v31 = vsel %vm658_vm7, %v7369_v58, 0.0 }
0x1b94   :  { %4905 = vadd.xlane.f32.xlu0 %v4904_v31 }
0x1ba3   :  { %v4873_v40 = vpop.xlane.xlu1 %4872 }
0x1ba4   :  { %v4887_v14 = vsub.f32 %v4863_v39, %v4873_v40  ;;  %v6119_v40 = vld [vmem:[%s9392_s7 + $0x38] sm:$0xff] }
0x1ba6   :  { %v4894_v17 = vmul.f32 1.442695, %v4887_v14  ;;  %v6118_v14 = vld [vmem:[%s9392_s7 + $0x30] sm:$0xff] }
0x1ba7   :  { %v4937_v26 = vpop.permute.xlu1 %4936  ;;  %v4876_v60 = vpop.xlane.xlu0 %4875 }
0x1ba8   :  { %7370 = vpow2.f32 %v4894_v17  ;;  %v4888_v43 = vsub.f32 %v4864_v45, %v4876_v60  ;;  %v6117_v17 = vld [vmem:[%s9392_s7 + $0x28] sm:$0xff] }
0x1baa   :  { %v4896_v61 = vmul.f32 1.442695, %v4888_v43 }
0x1bab   :  { %v4935_v35 = vpop.permute.xlu1 %4934 }
0x1bac   :  { %7372 = vpow2.f32 %v4896_v61 }
0x1baf   :  { %v4755_v18 = vpop.permute.xlu1 %4754 }
0x1bb0   :  { %7013 = vmatmul.mubr.msk.f32.gmra.mxu1 %vm452_vm5, %v4755_v18 }
0x1bb1   :  { %7015 = vmatprep.mubr.msk.f32.mxu1 %vm7444_vm4, %v7442_v1 }
0x1bb3   :  { %v4757_v20 = vpop.permute.xlu1 %4756 }
0x1bb4   :  { %7016 = vmatmul.mubr.msk.f32.gmra.mxu1 %vm452_vm5, %v4757_v20 }
0x1bb5   :  { %v7371_v4 = vpop.eup %7370  ;;  %7039 = vmatprep.mubr.msk.f32.mxu1 %vm7444_vm4, %v7442_v1 }
0x1bb6   :  { %v4907_v39 = vsel %vm658_vm7, %v7371_v4, 0.0 }
0x1bb7   :  { %4908 = vadd.xlane.f32.xlu1 %v4907_v39 }
0x1bb9   :  { %v7373_v42 = vpop.eup %7372 }
0x1bba   :  { %v4910_v54 = vsel %vm658_vm7, %v7373_v42, 0.0 }
0x1bbb   :  { %4911 = vadd.xlane.f32.xlu0 %v4910_v54 }
0x1bd1   :  { %5034 = vrot.lane.b32.xlu0 %v8623_v3, %s9405_s6 }
0x1bd5   :  { %5136 = vrot.lane.b32.xlu0 %v8965_v23, %s7456_s29 }
0x1bd9   :  { %5160 = vrot.lane.b32.xlu0 %v9055_v34, %s7457_s30 }
0x1bdd   :  { %5140 = vrot.lane.b32.xlu0 %v8969_v55, %s7456_s29 }
0x1be1   :  { %5164 = vrot.lane.b32.xlu0 %v9059_v48, %s7457_s30 }
0x1be4   :  { %v4879_v56 = vpop.xlane.xlu0 %4878 }
0x1be5   :  { %v4889_v2 = vsub.f32 %v4865_v51, %v4879_v56 }
0x1be7   :  { %v4898_v45 = vmul.f32 1.442695, %v4889_v2 }
0x1be8   :  { %v4939_v53 = vpop.permute.xlu0 %4938 }
0x1be9   :  { %7374 = vpow2.f32 %v4898_v45  ;;  %7019 = vmatpush3.msra.mxu0 %v4939_v53 }
0x1bea   :  { %7020 = vmatprep.subr.mxu0 %v7442_v1 }
0x1beb   :  { %7021 = vmatpush3.msra.mxu0 %v4937_v26  ;;  %v6116_v26 = vld [vmem:[%s9392_s7 + $0x20] sm:$0xff] }
0x1bec   :  { %7022 = vmatprep.subr.mxu0 %v7442_v1  ;;  %v5037_v3 = vpop.permute.xlu0 %5036 }
0x1bed   :  { %7023 = vmatpush3.msra.mxu0 %v4935_v35  ;;  %7034 = vmatpush3.msra.mxu1 %v5037_v3 }
0x1bee   :  { %7035 = vmatprep.subr.mxu1 %v7442_v1  ;;  %7048 = vmatprep.subr.mxu0 %v6119_v40 }
0x1bf6   :  { %v7375_v23 = vpop.eup %7374 }
0x1bf7   :  { %v4913_v55 = vsel %vm658_vm7, %v7375_v23, 0.0 }
0x1bf8   :  { %4914 = vadd.xlane.f32.xlu1 %v4913_v55 }
0x1c09   :  { %5032 = vrot.lane.b32.xlu1 %v8627_v6, %s9405_s6 }
0x1c0d   :  { %5138 = vrot.lane.b32.xlu1 %v8967_v25, %s7456_s29 }
0x1c11   :  { %5162 = vrot.lane.b32.xlu1 %v9057_v13, %s7457_s30 }
0x1c15   :  { %5142 = vrot.lane.b32.xlu1 %v8976_v41, %s7456_s29 }
0x1c19   :  { %5166 = vrot.lane.b32.xlu1 %v9066_v47, %s7457_s30 }
0x1c1d   :  { %v4906_v34 = vpop.xlane.xlu0 %4905 }
0x1c1e   :  { %7376 = vrcp.f32 %v4906_v34 }
0x1c2b   :  { %v7377_v48 = vpop.eup %7376 }
0x1c2c   :  { %v4928_v0 = vmul.f32 %v7377_v48, %v7369_v58 }
0x1c2e   :  { %7025 = vmatmul.mubr.msk.f32.vlgmr.msra.gmra.mxu0 %vm658_vm7, %v4928_v0 }
0x1c2f   :  { %7027 = vmatprep.mubr.msk.f32.mxu0 %vm7444_vm4, %v7442_v1  ;;  %7049 = vmatpush3.msra.mxu0 %v6119_v40 }
0x1c30   :  { %7050 = vmatprep.subr.mxu0 %v6118_v14 }
0x1c31   :  { %7051 = vmatpush3.msra.mxu0 %v6118_v14 }
0x1c32   :  { %7052 = vmatprep.subr.mxu0 %v6117_v17 }
0x1c33   :  { %7053 = vmatpush3.msra.mxu0 %v6117_v17 }
0x1c34   :  { %7054 = vmatprep.subr.mxu0 %v6116_v26 }
0x1c35   :  { %7055 = vmatpush3.msra.mxu0 %v6116_v26 }
0x1c40   :  { %v4909_v6 = vpop.xlane.xlu1 %4908 }
0x1c41   :  { %7378 = vrcp.f32 %v4909_v6 }
0x1c44   :  { %v4912_v25 = vpop.xlane.xlu0 %4911 }
0x1c45   :  { %7380 = vrcp.f32 %v4912_v25 }
0x1c48   :  { %v5035_v13 = vpop.permute.xlu0 %5034 }
0x1c49   :  { %7036 = vmatpush3.msra.mxu1 %v5035_v13 }
0x1c4a   :  { %7037 = vmatprep.subr.mxu1 %v7442_v1 }
0x1c4c   :  { %v5137_v39 = vpop.permute.xlu0 %5136 }
0x1c4d   :  { %v5202_v53 = vsel %vm452_vm5, %v8824_v33, %v5137_v39 }
0x1c4e   :  { %v7379_v41 = vpop.eup %7378 }
0x1c4f   :  { %v4929_v29 = vmul.f32 %v7379_v41, %v7371_v4 }
0x1c51   :  { %7028 = vmatmul.mubr.msk.f32.gmra.mxu0 %vm658_vm7, %v4929_v29 }
0x1c52   :  { %v7381_v47 = vpop.eup %7380  ;;  %7030 = vmatprep.mubr.msk.f32.mxu0 %vm7444_vm4, %v7442_v1 }
0x1c53   :  { %v4930_v15 = vmul.f32 %v7381_v47, %v7373_v42  ;;  %v5161_v42 = vpop.permute.xlu0 %5160 }
0x1c54   :  { %v5208_v3 = vsel %vm2445_vm8, %v5202_v53, %v5161_v42 }
0x1c55   :  { %7031 = vmatmul.mubr.msk.f32.gmra.mxu0 %vm658_vm7, %v4930_v15 }
0x1c57   :  { %v5141_v2 = vpop.permute.xlu0 %5140 }
0x1c5b   :  { %v5165_v45 = vpop.permute.xlu0 %5164 }
0x1c70   :  { %v4847_v9 = vpop.f32.mrf.mxu1 }
0x1c71   :  { %v4860_v18 = vmul.f32 0.35355338, %v4847_v9  ;;  %v5204_v9 = vsel %vm452_vm5, %v8828_v24, %v5141_v2 }
0x1c72   :  { %v7014_v7 = vpop.f32.mrf.mxu1 }
0x1c73   :  { %v4866_v20 = vadd.f32 %v4860_v18, %v7851_v57 }
0x1c74   :  { %v4852_v16 = vpop.f32.mrf.mxu1 }
0x1c75   :  { %v4880_v4 = vsel %vm658_vm7, %v4866_v20, -inf  ;;  %v4861_v34 = vmul.f32 0.35355338, %v4852_v16 }
0x1c76   :  { %v7017_v51 = vpop.f32.mrf.mxu1 }
0x1c77   :  { %v4867_v0 = vadd.f32 %v4861_v34, %v7851_v57  ;;  %v5210_v57 = vsel %vm2445_vm8, %v5204_v9, %v5165_v45 }
0x1c79   :  { %v4883_v25 = vsel %vm658_vm7, %v4867_v0, -inf }
0x1c81   :  { %v4915_v10 = vpop.xlane.xlu1 %4914 }
0x1c82   :  { %7382 = vrcp.f32 %v4915_v10 }
0x1c85   :  { %v5033_v5 = vpop.permute.xlu1 %5032 }
0x1c86   :  { %7038 = vmatpush3.msra.mxu1 %v5033_v5 }
0x1c89   :  { %v5139_v48 = vpop.permute.xlu1 %5138 }
0x1c8a   :  { %v5203_v33 = vsel %vm452_vm5, %v8826_v44, %v5139_v48 }
0x1c8d   :  { %v5163_v6 = vpop.permute.xlu1 %5162 }
0x1c8e   :  { %v5209_v29 = vsel %vm2445_vm8, %v5203_v33, %v5163_v6 }
0x1c8f   :  { %v7383_v32 = vpop.eup %7382 }
0x1c90   :  { %v4931_v36 = vmul.f32 %v7383_v32, %v7375_v23 }
0x1c91   :  { %v5143_v13 = vpop.permute.xlu1 %5142 }
0x1c92   :  { %7040 = vmatmul.mubr.msk.f32.vlgmr.msra.gmra.mxu1 %vm658_vm7, %v4931_v36  ;;  %v5205_v5 = vsel %vm452_vm5, %v8835_v59, %v5143_v13  ;;  %v9176_v59 = vld [vmem:[%s9393_s8 + $0x8] sm:$0x3f] }
0x1c93   :  { %7042 = vmatprep.mubr.msk.f32.mxu1 %vm7444_vm4, %v7442_v1 }
0x1c95   :  { %v5167_v41 = vpop.permute.xlu1 %5166 }
0x1c96   :  { %v5211_v32 = vsel %vm2445_vm8, %v5205_v5, %v5167_v41 }
0x1cee   :  { %v5018_v58 = vpop.f32.mrf.mxu0 }
0x1cef   :  { %5184 = vrot.lane.b32.xlu0 %v5018_v58, %s9406_s23 }
0x1cf0   :  { %v7026_v31 = vpop.f32.mrf.mxu0 }
0x1d11   :  { %v5023_v60 = vpop.f32.mrf.mxu0 }
0x1d12   :  { %5186 = vrot.lane.b32.xlu1 %v5023_v60, %s9406_s23 }
0x1d13   :  { %v7029_v43 = vpop.f32.mrf.mxu0 }
0x1d14   :  { %v9181_v43 = vrot.slane %v9176_v59, %v2464_v21 }
0x1d15   :  { %v5028_v61 = vpop.f32.mrf.mxu0 }
0x1d16   :  { %5188 = vrot.lane.b32.xlu0 %v5028_v61, %s9406_s23 }
0x1d17   :  { %v7032_v35 = vpop.f32.mrf.mxu0 }
0x1d35   :  { %4881 = vmax.xlane.f32.xlu0 %v4880_v4 }
0x1d52   :  { %v5116_v54 = vpop.f32.mrf.mxu1 }
0x1d53   :  { %5190 = vrot.lane.b32.xlu1 %v5116_v54, %s9406_s23 }
0x1d54   :  { %v7041_v56 = vpop.f32.mrf.mxu1 }
0x1d61   :  { %v5185_v23 = vpop.permute.xlu0 %5184 }
0x1d62   :  { %v5214_v55 = vsel %vm658_vm7, %v5208_v3, %v5185_v23 }
0x1d63   :  { %7056 = vmatprep.mubr.msk.f32.mxu0 %vm192_vm3, %v5214_v55 }
0x1d77   :  { %4884 = vmax.xlane.f32.xlu1 %v4883_v25 }
0x1d84   :  { %v5187_v47 = vpop.permute.xlu1 %5186 }
0x1d85   :  { %v5215_v15 = vsel %vm658_vm7, %v5209_v29, %v5187_v47 }
0x1d86   :  { %7057 = vmatmul.mubr.msk.f32.vlgmr.msra.gmra.mxu0 %vm192_vm3, %v5215_v15 }
0x1d88   :  { %v5189_v7 = vpop.permute.xlu0 %5188 }
0x1d89   :  { %v5216_v16 = vsel %vm658_vm7, %v5210_v57, %v5189_v7  ;;  %v6129_v57 = vld [vmem:[%s9394_s9 + $0x38] sm:$0xff]  ;;  %v6128_v7 = vld [vmem:[%s9394_s9 + $0x30] sm:$0xff] }
0x1d8a   :  { %7059 = vmatprep.mubr.msk.f32.mxu0 %vm192_vm3, %v5216_v16  ;;  %7065 = vmatprep.subr.mxu1 %v6129_v57  ;;  %v6127_v16 = vld [vmem:[%s9394_s9 + $0x28] sm:$0xff] }
0x1d8b   :  { %7066 = vmatpush3.msra.mxu1 %v6129_v57 }
0x1d8c   :  { %7067 = vmatprep.subr.mxu1 %v6128_v7 }
0x1d8d   :  { %7068 = vmatpush3.msra.mxu1 %v6128_v7  ;;  %v6153_v7 = vld [vmem:[%s9396_s11 + $0xf8] sm:$0xff] }
0x1d8e   :  { %7069 = vmatprep.subr.mxu1 %v6127_v16  ;;  %7082 = vmatprep.subr.mxu0 %v6153_v7 }
0x1d8f   :  { %7070 = vmatpush3.msra.mxu1 %v6127_v16  ;;  %7083 = vmatpush3.msra.mxu0 %v6153_v7  ;;  %v6152_v16 = vld [vmem:[%s9396_s11 + $0xf0] sm:$0xff] }
0x1d90   :  { %7084 = vmatprep.subr.mxu0 %v6152_v16 }
0x1d91   :  { %7085 = vmatpush3.msra.mxu0 %v6152_v16 }
0x1dbe   :  { %v4882_v51 = vpop.xlane.xlu0 %4881 }
0x1dbf   :  { %v4890_v10 = vsub.f32 %v4866_v20, %v4882_v51  ;;  %v6126_v51 = vld [vmem:[%s9394_s9 + $0x20] sm:$0xff] }
0x1dc0   :  { %7071 = vmatprep.subr.mxu1 %v6126_v51 }
0x1dc1   :  { %v4900_v44 = vmul.f32 1.442695, %v4890_v10  ;;  %7072 = vmatpush3.msra.mxu1 %v6126_v51  ;;  %v6151_v51 = vld [vmem:[%s9396_s11 + $0xe8] sm:$0xff] }
0x1dc2   :  { %7123 = vmatprep.subr.mxu1 %v7442_v1  ;;  %7086 = vmatprep.subr.mxu0 %v6151_v51 }
0x1dc3   :  { %7384 = vpow2.f32 %v4900_v44  ;;  %7087 = vmatpush3.msra.mxu0 %v6151_v51 }
0x1dc5   :  { %v5191_v36 = vpop.permute.xlu1 %5190 }
0x1dc6   :  { %v5217_v58 = vsel %vm658_vm7, %v5211_v32, %v5191_v36 }
0x1dc7   :  { %7060 = vmatmul.mubr.msk.f32.gmra.mxu0 %vm192_vm3, %v5217_v58 }
0x1dd0   :  { %v7385_v24 = vpop.eup %7384 }
0x1dd1   :  { %v4916_v31 = vsel %vm658_vm7, %v7385_v24, 0.0 }
0x1dd2   :  { %4917 = vadd.xlane.f32.xlu0 %v4916_v31 }
0x1e00   :  { %v4885_v40 = vpop.xlane.xlu1 %4884 }
0x1e01   :  { %v4891_v14 = vsub.f32 %v4867_v0, %v4885_v40 }
0x1e03   :  { %v4902_v17 = vmul.f32 1.442695, %v4891_v14 }
0x1e05   :  { %7386 = vpow2.f32 %v4902_v17 }
0x1e12   :  { %v7387_v26 = vpop.eup %7386 }
0x1e13   :  { %v4919_v60 = vsel %vm658_vm7, %v7387_v26, 0.0 }
0x1e14   :  { %4920 = vadd.xlane.f32.xlu0 %v4919_v60 }
0x1e46   :  { %v7058_v61 = vpop.f32.mrf.mxu0 }
0x1e47   :  { %v5319_v35 = vadd.f32 %v7058_v61, %v9181_v43 }
0x1e48   :  { %v5313_v18 = vpop.f32.mrf.mxu0 }
0x1e49   :  { %v5343_v20 = vadd.f32 %v5319_v35, %v8537_v62  ;;  %v5314_v4 = vadd.f32 %v5313_v18, %v9181_v43 }
0x1e4b   :  { %v9187_v39 = vadd.f32 %v5314_v4, %v8540_v37  ;;  %v5351_v42 = vsel %vm192_vm3, %v5343_v20, 0.0 }
0x1e4c   :  { %5352 = vadd.xlane.f32.xlu1 %v5351_v42 }
0x1e4d   :  { %v5348_v54 = vsel %vm192_vm3, %v9187_v39, 0.0 }
0x1e4e   :  { %5349 = vadd.xlane.f32.xlu0 %v5348_v54 }
0x1e5b   :  { %v4918_v21 = vpop.xlane.xlu0 %4917 }
0x1e5c   :  { %7388 = vrcp.f32 %v4918_v21 }
0x1e69   :  { %v7389_v56 = vpop.eup %7388 }
0x1e6a   :  { %v4932_v2 = vmul.f32 %v7389_v56, %v7385_v24  ;;  %v9242_v56 = vrot.slane %v9176_v59, %v2675_v46 }
0x1e6c   :  { %7043 = vmatmul.mubr.msk.f32.gmra.mxu1 %vm658_vm7, %v4932_v2 }
0x1e6d   :  { %7045 = vmatprep.mubr.msk.f32.mxu1 %vm7444_vm4, %v7442_v1 }
0x1e87   :  { %v7061_v62 = vpop.f32.mrf.mxu0 }
0x1e88   :  { %v5329_v37 = vadd.f32 %v7061_v62, %v9181_v43 }
0x1e89   :  { %v5323_v45 = vpop.f32.mrf.mxu0 }
0x1e8a   :  { %v9197_v53 = vadd.f32 %v5329_v37, %v8547_v28  ;;  %v5324_v3 = vadd.f32 %v5323_v45, %v9181_v43 }
0x1e8c   :  { %v5344_v23 = vadd.f32 %v5324_v3, %v8550_v38  ;;  %v5357_v55 = vsel %vm192_vm3, %v9197_v53, 0.0 }
0x1e8d   :  { %5358 = vadd.xlane.f32.xlu1 %v5357_v55 }
0x1e8e   :  { %v5354_v34 = vsel %vm192_vm3, %v5344_v23, 0.0 }
0x1e8f   :  { %5355 = vadd.xlane.f32.xlu0 %v5354_v34 }
0x1e9d   :  { %v4921_v48 = vpop.xlane.xlu0 %4920 }
0x1e9e   :  { %7390 = vrcp.f32 %v4921_v48 }
0x1eab   :  { %v7391_v0 = vpop.eup %7390 }
0x1eac   :  { %v4933_v6 = vmul.f32 %v7391_v0, %v7387_v26 }
0x1eae   :  { %7046 = vmatmul.mubr.msk.f32.gmra.mxu1 %vm658_vm7, %v4933_v6 }
0x1ed5   :  { %v5353_v25 = vpop.xlane.xlu1 %5352 }
0x1ed6   :  { %v5367_v28 = vmul.f32 0.03125, %v5353_v25 }
0x1ed7   :  { %v5350_v13 = vpop.xlane.xlu0 %5349 }
0x1ed8   :  { %v5373_v41 = vsub.f32 %v5343_v20, %v5367_v28  ;;  %v5366_v33 = vmul.f32 0.03125, %v5350_v13 }
0x1eda   :  { %v5372_v38 = vsub.f32 %v9187_v39, %v5366_v33  ;;  %v5379_v29 = vmul.f32 %v5373_v41, %v5373_v41 }
0x1edc   :  { %v5387_v47 = vsel %vm192_vm3, %v5379_v29, 0.0  ;;  %v5378_v15 = vmul.f32 %v5372_v38, %v5372_v38 }
0x1edd   :  { %5388 = vadd.xlane.f32.xlu1 %v5387_v47 }
0x1ede   :  { %v5384_v9 = vsel %vm192_vm3, %v5378_v15, 0.0 }
0x1edf   :  { %5385 = vadd.xlane.f32.xlu0 %v5384_v9 }
0x1f16   :  { %v5359_v10 = vpop.xlane.xlu1 %5358 }
0x1f17   :  { %v5369_v44 = vmul.f32 0.03125, %v5359_v10  ;;  %v6150_v10 = vld [vmem:[%s9396_s11 + $0xe0] sm:$0xff] }
0x1f18   :  { %v5356_v5 = vpop.xlane.xlu0 %5355  ;;  %7088 = vmatprep.subr.mxu0 %v6150_v10 }
0x1f19   :  { %v5375_v32 = vsub.f32 %v9197_v53, %v5369_v44  ;;  %v5368_v36 = vmul.f32 0.03125, %v5356_v5  ;;  %7089 = vmatpush3.msra.mxu0 %v6150_v10  ;;  %v6149_v44 = vld [vmem:[%s9396_s11 + $0xd8] sm:$0xff]  ;;  %v6148_v5 = vld [vmem:[%s9396_s11 + $0xd0] sm:$0xff] }
0x1f1a   :  { %7090 = vmatprep.subr.mxu0 %v6149_v44 }
0x1f1b   :  { %v5374_v58 = vsub.f32 %v5344_v23, %v5368_v36  ;;  %v5381_v24 = vmul.f32 %v5375_v32, %v5375_v32  ;;  %7091 = vmatpush3.msra.mxu0 %v6149_v44  ;;  %v6146_v36 = vld [vmem:[%s9396_s11 + $0xc0] sm:$0xff] }
0x1f1c   :  { %7092 = vmatprep.subr.mxu0 %v6148_v5 }
0x1f1d   :  { %v5393_v31 = vsel %vm192_vm3, %v5381_v24, 0.0  ;;  %v5380_v40 = vmul.f32 %v5374_v58, %v5374_v58  ;;  %7093 = vmatpush3.msra.mxu0 %v6148_v5  ;;  %v6144_v24 = vld [vmem:[%s9396_s11 + $0xb0] sm:$0xff] }
0x1f1e   :  { %5394 = vadd.xlane.f32.xlu1 %v5393_v31  ;;  %v6143_v31 = vld [vmem:[%s9396_s11 + $0xa8] sm:$0xff] }
0x1f1f   :  { %v5390_v14 = vsel %vm192_vm3, %v5380_v40, 0.0  ;;  %v6142_v40 = vld [vmem:[%s9396_s11 + $0xa0] sm:$0xff] }
0x1f20   :  { %5391 = vadd.xlane.f32.xlu0 %v5390_v14  ;;  %v6141_v14 = vld [vmem:[%s9396_s11 + $0x98] sm:$0xff] }
0x1f2c   :  { %v5121_v17 = vpop.f32.mrf.mxu1 }
0x1f2e   :  { %v7044_v26 = vpop.f32.mrf.mxu1 }
0x1f2f   :  { %5146 = vrot.lane.b32.xlu1 %v8983_v22, %s7456_s29 }
0x1f33   :  { %5168 = vrot.lane.b32.xlu1 %v9069_v27, %s7457_s30 }
0x1f36   :  { %5144 = vrot.lane.b32.xlu0 %v8979_v12, %s7456_s29  ;;  %v9237_v12 = vrot.slane %v9176_v59, %v2665_v30 }
0x1f37   :  { %5170 = vrot.lane.b32.xlu1 %v9079_v50, %s7457_s30 }
0x1f3a   :  { %5192 = vrot.lane.b32.xlu0 %v5121_v17, %s9406_s23  ;;  %v6140_v17 = vld [vmem:[%s9396_s11 + $0x90] sm:$0xff] }
0x1f66   :  { %v5389_v60 = vpop.xlane.xlu1 %5388 }
0x1f67   :  { %v5403_v61 = vmul.f32 0.03125, %v5389_v60  ;;  %v6139_v60 = vld [vmem:[%s9396_s11 + $0x88] sm:$0xff] }
0x1f68   :  { %v5386_v35 = vpop.xlane.xlu0 %5385 }
0x1f69   :  { %v5409_v18 = vadd.f32 1e-12, %v5403_v61  ;;  %v5402_v20 = vmul.f32 0.03125, %v5386_v35  ;;  %v6138_v35 = vld [vmem:[%s9396_s11 + $0x80] sm:$0xff] }
0x1f6b   :  { %7392 = vrsqrt.f32 %v5409_v18  ;;  %v5408_v4 = vadd.f32 1e-12, %v5402_v20 }
0x1f6d   :  { %7394 = vrsqrt.f32 %v5408_v4 }
0x1f6e   :  { %v5126_v22 = vpop.f32.mrf.mxu1 }
0x1f6f   :  { %5194 = vrot.lane.b32.xlu1 %v5126_v22, %s9406_s23 }
0x1f70   :  { %v7047_v27 = vpop.f32.mrf.mxu1 }
0x1f78   :  { %v7393_v42 = vpop.eup %7392 }
0x1f79   :  { %v5421_v50 = vmul.f32 %v7393_v42, %v5373_v41 }
0x1f7a   :  { %v7395_v54 = vpop.eup %7394 }
0x1f7b   :  { %v5420_v21 = vmul.f32 %v7395_v54, %v5372_v38  ;;  %v5431_v2 = vmul.f32 %v9237_v12, %v5421_v50 }
0x1f7d   :  { %v5430_v62 = vmul.f32 %v9237_v12, %v5420_v21  ;;  %v5441_v45 = vadd.f32 %v9242_v56, %v5431_v2 }
0x1f7f   :  { %v5440_v37 = vadd.f32 %v9242_v56, %v5430_v62 }
0x1f81   :  { %7073 = vmatprep.mubr.msk.f32.mxu1 %vm192_vm3, %v5440_v37 }
0x1f82   :  { %7074 = vmatmul.mubr.msk.f32.vlgmr.msra.gmra.mxu1 %vm192_vm3, %v5441_v45 }
0x1fa7   :  { %v5395_v30 = vpop.xlane.xlu1 %5394 }
0x1fa8   :  { %v5405_v3 = vmul.f32 0.03125, %v5395_v30 }
0x1fa9   :  { %v5392_v23 = vpop.xlane.xlu0 %5391 }
0x1faa   :  { %v5411_v55 = vadd.f32 1e-12, %v5405_v3  ;;  %v5404_v34 = vmul.f32 0.03125, %v5392_v23 }
0x1fab   :  { %v9250_v48 = vpop.permute.xlu1 %5146 }
0x1fac   :  { %7396 = vrsqrt.f32 %v5411_v55  ;;  %v5410_v46 = vadd.f32 1e-12, %v5404_v34  ;;  %v5207_v61 = vsel %vm452_vm5, %v8842_v11, %v9250_v48  ;;  %v9320_v11 = vld [vmem:[%s9395_s10 + $0x1] ss:$0 sm:$0xff] }
0x1fad   :  { %v5145_v0 = vpop.permute.xlu0 %5144 }
0x1fae   :  { %7398 = vrsqrt.f32 %v5410_v46  ;;  %v5206_v6 = vsel %vm452_vm5, %v8838_v63, %v5145_v0 }
0x1faf   :  { %v5169_v25 = vpop.permute.xlu1 %5168 }
0x1fb0   :  { %v5212_v28 = vsel %vm2445_vm8, %v5206_v6, %v5169_v25 }
0x1fb1   :  { %v5193_v13 = vpop.permute.xlu0 %5192 }
0x1fb2   :  { %v5218_v41 = vsel %vm658_vm7, %v5212_v28, %v5193_v13 }
0x1fb3   :  { %7062 = vmatprep.mubr.msk.f32.mxu0 %vm192_vm3, %v5218_v41  ;;  %v5171_v26 = vpop.permute.xlu1 %5170 }
0x1fb4   :  { %v5213_v18 = vsel %vm2445_vm8, %v5207_v61, %v5171_v26 }
0x1fb9   :  { %v7397_v33 = vpop.eup %7396 }
0x1fba   :  { %v5423_v38 = vmul.f32 %v7397_v33, %v5375_v32  ;;  %v6147_v32 = vld [vmem:[%s9396_s11 + $0xc8] sm:$0xff] }
0x1fbb   :  { %v7399_v29 = vpop.eup %7398  ;;  %7094 = vmatprep.subr.mxu0 %v6147_v32 }
0x1fbc   :  { %v5422_v47 = vmul.f32 %v7399_v29, %v5374_v58  ;;  %v5433_v15 = vmul.f32 %v9237_v12, %v5423_v38  ;;  %7095 = vmatpush3.msra.mxu0 %v6147_v32  ;;  %v6145_v58 = vld [vmem:[%s9396_s11 + $0xb8] sm:$0xff] }
0x1fbd   :  { %7096 = vmatprep.subr.mxu0 %v6146_v36 }
0x1fbe   :  { %v5432_v9 = vmul.f32 %v9237_v12, %v5422_v47  ;;  %v5443_v63 = vadd.f32 %v9242_v56, %v5433_v15  ;;  %7097 = vmatpush3.msra.mxu0 %v6146_v36 }
0x1fbf   :  { %7098 = vmatprep.subr.mxu0 %v6145_v58 }
0x1fc0   :  { %v5442_v57 = vadd.f32 %v9242_v56, %v5432_v9  ;;  %7099 = vmatpush3.msra.mxu0 %v6145_v58 }
0x1fc1   :  { %7100 = vmatprep.subr.mxu0 %v6144_v24 }
0x1fc2   :  { %7076 = vmatprep.mubr.msk.f32.mxu1 %vm192_vm3, %v5442_v57  ;;  %7101 = vmatpush3.msra.mxu0 %v6144_v24 }
0x1fc3   :  { %7077 = vmatmul.mubr.msk.f32.gmra.mxu1 %vm192_vm3, %v5443_v63  ;;  %7102 = vmatprep.subr.mxu0 %v6143_v31 }
0x1fc4   :  { %7103 = vmatpush3.msra.mxu0 %v6143_v31 }
0x1fc5   :  { %7104 = vmatprep.subr.mxu0 %v6142_v40 }
0x1fc6   :  { %7105 = vmatpush3.msra.mxu0 %v6142_v40 }
0x1fc7   :  { %7106 = vmatprep.subr.mxu0 %v6141_v14 }
0x1fc8   :  { %7107 = vmatpush3.msra.mxu0 %v6141_v14 }
0x1fc9   :  { %7108 = vmatprep.subr.mxu0 %v6140_v17 }
0x1fca   :  { %7109 = vmatpush3.msra.mxu0 %v6140_v17 }
0x1fcb   :  { %7110 = vmatprep.subr.mxu0 %v6139_v60 }
0x1fcc   :  { %7111 = vmatpush3.msra.mxu0 %v6139_v60 }
0x1fcd   :  { %7112 = vmatprep.subr.mxu0 %v6138_v35 }
0x1fce   :  { %7113 = vmatpush3.msra.mxu0 %v6138_v35 }
0x1fe1   :  { %v5195_v20 = vpop.permute.xlu1 %5194 }
0x1fe2   :  { %v5219_v4 = vsel %vm658_vm7, %v5213_v18, %v5195_v20 }
0x1fe3   :  { %7063 = vmatmul.mubr.msk.f32.gmra.mxu0 %vm192_vm3, %v5219_v4 }
0x2042   :  { %v7075_v22 = vpop.f32.mrf.mxu1 }
0x2043   :  { %v5549_v27 = vadd.f32 %v7075_v22, %v9320_v11 }
0x2044   :  { %v5543_v42 = vpop.f32.mrf.mxu1 }
0x2045   :  { %v5579_v50 = vmul.f32 0.044715, %v5549_v27  ;;  %v5544_v54 = vadd.f32 %v9320_v11, %v5543_v42  ;;  %v5573_v25 = vmul.f32 0.5, %v5549_v27 }
0x2047   :  { %v5585_v21 = vmul.f32 %v5579_v50, %v5549_v27  ;;  %v5578_v2 = vmul.f32 0.044715, %v5544_v54  ;;  %v5572_v0 = vmul.f32 0.5, %v5544_v54 }
0x2049   :  { %v5591_v62 = vmul.f32 %v5585_v21, %v5549_v27  ;;  %v5584_v37 = vmul.f32 %v5578_v2, %v5544_v54 }
0x204b   :  { %v5597_v45 = vadd.f32 %v5591_v62, %v5549_v27  ;;  %v5590_v30 = vmul.f32 %v5584_v37, %v5544_v54 }
0x204d   :  { %v5603_v3 = vmul.f32 0.7978846, %v5597_v45  ;;  %v5596_v23 = vadd.f32 %v5590_v30, %v5544_v54 }
0x204f   :  { %7400 = vtanh.f32 %v5603_v3  ;;  %v5602_v55 = vmul.f32 0.7978846, %v5596_v23 }
0x2051   :  { %7402 = vtanh.f32 %v5602_v55 }
0x205c   :  { %v7401_v34 = vpop.eup %7400 }
0x205d   :  { %v5615_v46 = vadd.f32 1.0, %v7401_v34 }
0x205e   :  { %v7403_v48 = vpop.eup %7402 }
0x205f   :  { %v5614_v6 = vadd.f32 1.0, %v7403_v48  ;;  %v5621_v13 = vmul.f32 %v5615_v46, %v5573_v25 }
0x2061   :  { %v5620_v28 = vmul.f32 %v5614_v6, %v5572_v0 }
0x2063   :  { %7114 = vmatprep.mubr.f32.mxu0 %v5620_v28 }
0x2064   :  { %7115 = vmatmul.mubr.f32.vlgmr.msra.gmra.mxu0 %v5621_v13 }
0x2083   :  { %v7078_v41 = vpop.f32.mrf.mxu1 }
0x2084   :  { %v5559_v33 = vadd.f32 %v7078_v41, %v9320_v11 }
0x2085   :  { %v5553_v38 = vpop.f32.mrf.mxu1 }
0x2086   :  { %v5581_v29 = vmul.f32 0.044715, %v5559_v33  ;;  %v5554_v47 = vadd.f32 %v9320_v11, %v5553_v38  ;;  %v5575_v31 = vmul.f32 0.5, %v5559_v33 }
0x2088   :  { %v5587_v15 = vmul.f32 %v5581_v29, %v5559_v33  ;;  %v5580_v9 = vmul.f32 0.044715, %v5554_v47  ;;  %v5574_v58 = vmul.f32 0.5, %v5554_v47 }
0x208a   :  { %v5586_v57 = vmul.f32 %v5580_v9, %v5554_v47  ;;  %v5593_v63 = vmul.f32 %v5587_v15, %v5559_v33 }
0x208c   :  { %v5592_v7 = vmul.f32 %v5586_v57, %v5554_v47  ;;  %v5599_v16 = vadd.f32 %v5593_v63, %v5559_v33 }
0x208e   :  { %v5598_v51 = vadd.f32 %v5592_v7, %v5554_v47  ;;  %v5605_v10 = vmul.f32 0.7978846, %v5599_v16 }
0x2090   :  { %v5604_v44 = vmul.f32 0.7978846, %v5598_v51  ;;  %7404 = vtanh.f32 %v5605_v10 }
0x2092   :  { %7406 = vtanh.f32 %v5604_v44 }
0x209d   :  { %v7405_v5 = vpop.eup %7404 }
0x209e   :  { %v5617_v36 = vadd.f32 1.0, %v7405_v5 }
0x209f   :  { %v7407_v32 = vpop.eup %7406 }
0x20a0   :  { %v5616_v24 = vadd.f32 1.0, %v7407_v32  ;;  %v5623_v17 = vmul.f32 %v5617_v36, %v5575_v31 }
0x20a2   :  { %v5622_v40 = vmul.f32 %v5616_v24, %v5574_v58 }
0x20a3   :  { %v7064_v14 = vpop.f32.mrf.mxu0 }
0x20a4   :  { %v5339_v26 = vadd.f32 %v7064_v14, %v9181_v43  ;;  %7117 = vmatprep.mubr.f32.mxu0 %v5622_v40 }
0x20a5   :  { %v5333_v60 = vpop.f32.mrf.mxu0  ;;  %7118 = vmatmul.mubr.f32.gmra.mxu0 %v5623_v17 }
0x20a6   :  { %v5347_v61 = vadd.f32 %v5339_v26, %v8557_v8  ;;  %v5334_v35 = vadd.f32 %v5333_v60, %v9181_v43  ;;  %v5646_v43 = vrot.slane %v9176_v59, %v2879_v49 }
0x20a8   :  { %v5346_v18 = vadd.f32 %v5334_v35, %v8560_v19  ;;  %v5363_v20 = vsel %vm192_vm3, %v5347_v61, 0.0 }
0x20a9   :  { %5364 = vadd.xlane.f32.xlu1 %v5363_v20 }
0x20aa   :  { %v5360_v4 = vsel %vm192_vm3, %v5346_v18, 0.0 }
0x20ab   :  { %5361 = vadd.xlane.f32.xlu0 %v5360_v4 }
0x2124   :  { %v7116_v22 = vpop.f32.mrf.mxu0 }
0x2126   :  { %v5713_v45 = vpop.f32.mrf.mxu0 }
0x2127   :  { %v5714_v30 = vadd.f32 %v5713_v45, %v5646_v43 }
0x2129   :  { %v5742_v3 = vadd.f32 %v5714_v30, %v9187_v39 }
0x212b   :  { %v5755_v23 = vsel %vm5752_vm9, %v5742_v3, 0.0 }
0x212c   :  { %v5761_v55 = vsel %vm192_vm3, %v5755_v23, 0.0 }
0x212d   :  { %v5766_v34 = vrot.slane %v5761_v55, 4 }
0x212f   :  { %v5767_v46 = vadd.f32 %v5766_v34, %v5761_v55 }
0x2131   :  { %v5768_v28 = vrot.slane %v5767_v46, 2 }
0x2132   :  { %v5365_v27 = vpop.xlane.xlu1 %5364 }
0x2133   :  { %v5371_v42 = vmul.f32 0.03125, %v5365_v27  ;;  %v5769_v41 = vadd.f32 %v5768_v28, %v5767_v46  ;;  %v5833_v27 = vld [vmem:[%s9398_s13 + $0x8] sm:$0xff]  ;;  %v6154_v46 = vld [vmem:[%s9397_s12] ss:$0 sm:$0xff] }
0x2134   :  { %v5362_v50 = vpop.xlane.xlu0 %5361 }
0x2135   :  { %v5370_v54 = vmul.f32 0.03125, %v5362_v50  ;;  %v5377_v21 = vsub.f32 %v5347_v61, %v5371_v42  ;;  %v5770_v52 = vrot.slane %v5769_v41, 1  ;;  %v5832_v42 = vld [vmem:[%s9398_s13] sm:$0xff] }
0x2137   :  { %v5376_v2 = vsub.f32 %v5346_v18, %v5370_v54  ;;  %v5383_v37 = vmul.f32 %v5377_v21, %v5377_v21  ;;  %v5771_v47 = vadd.f32 %v5770_v52, %v5769_v41 }
0x2139   :  { %v5382_v62 = vmul.f32 %v5376_v2, %v5376_v2  ;;  %v5399_v19 = vsel %vm192_vm3, %v5383_v37, 0.0 }
0x213b   :  { %v5396_v8 = vsel %vm192_vm3, %v5382_v62, 0.0 }
0x213c   :  { %5397 = vadd.xlane.f32.xlu0 %v5396_v8 }
0x2140   :  { %5400 = vadd.xlane.f32.xlu0 %v5399_v19 }
0x2165   :  { %v7119_v48 = vpop.f32.mrf.mxu0 }
0x2166   :  { %v5729_v0 = vadd.f32 %v7119_v48, %v5646_v43 }
0x2167   :  { %v5723_v6 = vpop.f32.mrf.mxu0 }
0x2168   :  { %v5745_v25 = vadd.f32 %v5729_v0, %v9197_v53 }
0x216a   :  { %v5758_v13 = vsel %vm5752_vm9, %v5745_v25, 0.0 }
0x216b   :  { %v5772_v49 = vsel %vm192_vm3, %v5758_v13, 0.0 }
0x216c   :  { %v5777_v59 = vrot.slane %v5772_v49, 4 }
0x216e   :  { %v5778_v33 = vadd.f32 %v5777_v59, %v5772_v49  ;;  %v6155_v49 = vld [vmem:[%s9397_s12 + $0x1] ss:$0 sm:$0xff] }
0x2170   :  { %v5779_v39 = vrot.slane %v5778_v33, 2 }
0x2172   :  { %v5780_v38 = vadd.f32 %v5779_v39, %v5778_v33 }
0x2174   :  { %v5781_v29 = vrot.slane %v5780_v38, 1 }
0x2176   :  { %v5782_v15 = vadd.f32 %v5781_v29, %v5780_v38 }
0x2178   :  { %v5788_v9 = vsel %vm5787_vm10, %v5782_v15, %v5771_v47 }
0x2179   :  { %v5791_v57 = vsel %vm5790_vm11, %v5788_v9, 0.0 }
0x217a   :  { %5792 = vadd.xlane.f32.xlu0 %v5791_v57 }
0x21c5   :  { %v5398_v53 = vpop.xlane.xlu0 %5397 }
0x21c6   :  { %v5406_v63 = vmul.f32 0.03125, %v5398_v53 }
0x21c8   :  { %v5412_v7 = vadd.f32 1e-12, %v5406_v63  ;;  %v6156_v63 = vld [vmem:[%s9399_s14] ss:$0 sm:$0xff] }
0x21c9   :  { %v5401_v16 = vpop.xlane.xlu0 %5400 }
0x21ca   :  { %7408 = vrsqrt.f32 %v5412_v7  ;;  %v5407_v51 = vmul.f32 0.03125, %v5401_v16 }
0x21cc   :  { %v5413_v10 = vadd.f32 1e-12, %v5407_v51 }
0x21ce   :  { %7410 = vrsqrt.f32 %v5413_v10 }
0x21d7   :  { %v7409_v44 = vpop.eup %7408 }
0x21d8   :  { %v5424_v5 = vmul.f32 %v7409_v44, %v5376_v2 }
0x21da   :  { %v5434_v32 = vmul.f32 %v9237_v12, %v5424_v5 }
0x21db   :  { %v7411_v36 = vpop.eup %7410 }
0x21dc   :  { %v5425_v58 = vmul.f32 %v7411_v36, %v5377_v21  ;;  %v5444_v24 = vadd.f32 %v9242_v56, %v5434_v32 }
0x21de   :  { %7079 = vmatprep.mubr.msk.f32.mxu1 %vm192_vm3, %v5444_v24  ;;  %v5435_v31 = vmul.f32 %v9237_v12, %v5425_v58  ;;  %v5835_v12 = vld [vmem:[%s9398_s13 + $0x18] sm:$0xff] }
0x21df   :  { %7124 = vmatpush3.msra.mxu1 %v5835_v12 }
0x21e0   :  { %v5445_v40 = vadd.f32 %v9242_v56, %v5435_v31  ;;  %v5834_v56 = vld [vmem:[%s9398_s13 + $0x10] sm:$0xff]  ;;  %7125 = vmatprep.subr.mxu1 %v7442_v1 }
0x21e1   :  { %7126 = vmatpush3.msra.mxu1 %v5834_v56 }
0x21e2   :  { %7080 = vmatmul.mubr.msk.f32.gmra.mxu1 %vm192_vm3, %v5445_v40  ;;  %7127 = vmatprep.subr.mxu1 %v7442_v1 }
0x21e3   :  { %7131 = vmatprep.mubr.msk.f32.mxu1 %vm7444_vm4, %v7442_v1  ;;  %7128 = vmatpush3.msra.mxu1 %v5833_v27 }
0x21e4   :  { %7129 = vmatprep.subr.mxu1 %v7442_v1 }
0x21e5   :  { %7130 = vmatpush3.msra.mxu1 %v5832_v42 }
0x2203   :  { %v5793_v14 = vpop.xlane.xlu0 %5792 }
0x2204   :  { %v5794_v17 = vmul.f32 0.03125, %v5793_v14 }
0x2206   :  { %v5796_v26 = vrot.slane %v5794_v17, 1  ;;  %v5799_v60 = vsub.f32 %v5771_v47, %v5794_v17 }
0x2208   :  { %v5800_v61 = vsub.f32 %v5782_v15, %v5796_v26  ;;  %v5801_v18 = vmul.f32 %v5799_v60, %v5799_v60 }
0x220a   :  { %v5802_v35 = vmul.f32 %v5800_v61, %v5800_v61 }
0x220c   :  { %v5805_v20 = vrot.slane %v5802_v35, 7 }
0x220e   :  { %v5806_v4 = vsel %vm5787_vm10, %v5805_v20, %v5801_v18 }
0x220f   :  { %v5808_v22 = vsel %vm5790_vm11, %v5806_v4, 0.0 }
0x2210   :  { %5809 = vadd.xlane.f32.xlu1 %v5808_v22 }
0x2299   :  { %v5810_v50 = vpop.xlane.xlu1 %5809 }
0x229a   :  { %v5811_v54 = vmul.f32 0.03125, %v5810_v50 }
0x229c   :  { %v5812_v21 = vadd.f32 1e-12, %v5811_v54 }
0x229e   :  { %7412 = vrsqrt.f32 %v5812_v21 }
0x22a2   :  { %v7081_v2 = vpop.f32.mrf.mxu1 }
0x22a3   :  { %v5569_v62 = vadd.f32 %v7081_v2, %v9320_v11 }
0x22a4   :  { %v5563_v8 = vpop.f32.mrf.mxu1 }
0x22a5   :  { %v5583_v37 = vmul.f32 0.044715, %v5569_v62  ;;  %v5564_v19 = vadd.f32 %v9320_v11, %v5563_v8  ;;  %v5577_v9 = vmul.f32 0.5, %v5569_v62 }
0x22a7   :  { %v5589_v43 = vmul.f32 %v5583_v37, %v5569_v62  ;;  %v5582_v45 = vmul.f32 0.044715, %v5564_v19  ;;  %v5576_v47 = vmul.f32 0.5, %v5564_v19 }
0x22a9   :  { %v5588_v30 = vmul.f32 %v5582_v45, %v5564_v19  ;;  %v5595_v3 = vmul.f32 %v5589_v43, %v5569_v62 }
0x22ab   :  { %v7413_v23 = vpop.eup %7412  ;;  %v5594_v55 = vmul.f32 %v5588_v30, %v5564_v19  ;;  %v5601_v34 = vadd.f32 %v5595_v3, %v5569_v62 }
0x22ac   :  { %v5815_v1 = vrot.slane %v7413_v23, 1  ;;  %v5818_v48 = vmul.f32 %v7413_v23, %v5799_v60 }
0x22ad   :  { %v5600_v0 = vadd.f32 %v5594_v55, %v5564_v19  ;;  %v5607_v6 = vmul.f32 0.7978846, %v5601_v34 }
0x22ae   :  { %v5819_v25 = vmul.f32 %v5815_v1, %v5800_v61  ;;  %v5824_v13 = vmul.f32 %v6154_v46, %v5818_v48 }
0x22af   :  { %v5606_v28 = vmul.f32 0.7978846, %v5600_v0  ;;  %7414 = vtanh.f32 %v5607_v6 }
0x22b0   :  { %v5825_v11 = vmul.f32 %v6154_v46, %v5819_v25  ;;  %v5830_v41 = vadd.f32 %v6155_v49, %v5824_v13 }
0x22b1   :  { %7416 = vtanh.f32 %v5606_v28 }
0x22b2   :  { %v5831_v59 = vadd.f32 %v6155_v49, %v5825_v11 }
0x22b4   :  { %v5845_v33 = vrot.slane %v5831_v59, 7 }
0x22b6   :  { %v5846_v39 = vsel %vm5787_vm10, %v5845_v33, %v5830_v41 }
0x22b7   :  { %7132 = vmatmul.mubr.msk.f32.vlgmr.msra.gmra.mxu1 %vm192_vm3, %v5846_v39 }
0x22bc   :  { %v7415_v38 = vpop.eup %7414 }
0x22bd   :  { %v5619_v29 = vadd.f32 1.0, %v7415_v38 }
0x22be   :  { %v7417_v52 = vpop.eup %7416 }
0x22bf   :  { %v5618_v15 = vadd.f32 1.0, %v7417_v52  ;;  %v5625_v53 = vmul.f32 %v5619_v29, %v5577_v9 }
0x22c1   :  { %v5624_v57 = vmul.f32 %v5618_v15, %v5576_v47 }
0x22c3   :  { %7120 = vmatprep.mubr.f32.mxu0 %v5624_v57 }
0x22c4   :  { %7121 = vmatmul.mubr.f32.gmra.mxu0 %v5625_v53 }
0x2377   :  { %v5915_v7 = vpop.f32.mrf.mxu1 }
0x2378   :  { %v5916_v16 = vadd.f32 %v6156_v63, %v5915_v7 }
0x2379   :  { %v7133_v51 = vpop.f32.mrf.mxu1 }
0x237a   :  { %5919 = vst [vmem:[#allocation3] sm:$0x3] %v5916_v16 }
0x237b   :  { %7431 = shalt.err (!%p7428_p4)
}
0x237c   :  { %5929 = dma.vmem_to_hbm [thread:$0]  %s5927_s17, 32, %s9400_s15, [#allocation4]  }
0x2384   :  { %v7122_v10 = vpop.f32.mrf.mxu0 }
0x2386   :  { %v5733_v44 = vpop.f32.mrf.mxu0 }
0x2387   :  { %7440 = dma.done.wait [#allocation4], 32  }
0x2388   :  { %7441 = vsyncadd [#allocation4], 4294967264 }
0x2389   :  { %5933 = vsyncpa [#allocation4], 1 }

</bundles_post_ra>
